<compile_context>
chip_gen: v5e
topology: v5e:2x2
jax: 0.10.0
libtpu: 0.0.40
codegen_flags: <defaults>
</compile_context>

<pallas_src>
import functools

import jax
import jax.numpy as jnp
from jax.experimental import pallas as pl
from jax.experimental.pallas import tpu as pltpu

# ----- config (mirrors TrajGPT `configs`) -----
NUM_LAYERS = 2
NUM_HEADS = 2
D_MODEL = 32
QK_DIM = 32
V_DIM = 32
D_FF = 4 * D_MODEL               # 128
N_TOKENS = 16                    # token_embedding.get_num_tokens()
PADDING_IDX = 0                  # token_embedding.padding_idx
LN_EPS = 1e-5                    # torch.nn.LayerNorm default
GN_EPS = 1e-5                    # torch.nn.GroupNorm default

DK = QK_DIM // NUM_HEADS         # 16
DV = V_DIM // NUM_HEADS          # 16
LANES = 128                      # vreg lane width; hidden state is kept 128-lane dense
N_SLABS = 3 * NUM_HEADS + 1      # q/k/v slab per head + gamma slab
PROJ_W = N_SLABS * LANES         # 896
SCALE = float(DK) ** -0.5

assert D_MODEL < LANES           # lane 127 is free -> used as the constant-1 bias lane
assert D_FF <= LANES and N_TOKENS <= LANES and QK_DIM <= LANES and V_DIM <= LANES


# ---------------- fused Pallas kernel (entire forward) ----------------

def traj_gpt_fwd_kernel(h_ref, tcol_ref, trow_ref, tgt_ref,
                        wp_ref, wo_ref, w1_ref, w2_ref, vec_ref,
                        whead_ref, hvec_ref,
                        logits_ref, loss_ref):
    """Full TrajGPT pretrain forward for all B*T tokens in one invocation.

    h_ref      : (B*T, 128) f32  hidden states, lanes >= D_MODEL are zero
    tcol/trow  : (B, T, 1) / (B, 1, T) f32 event times
    tgt_ref    : (B*T, 1) int32 next-token targets
    wp_ref     : (L, 128, 896) fused qkv+gamma projection, per-head whole-vreg slabs,
                 row 127 = bias (consumed via the constant-1 lane)
    wo/w1/w2   : (L, 128, 128) zero-padded out-proj / FFN weights
    vec_ref    : (L, 8, 128)  rows: ln1_g, ln1_b, b_o, ln2_g, ln2_b, b1, b2, -
    whead_ref  : (128, 128)   zero-padded pretrain head weight
    hvec_ref   : (8, 128)     rows: ln_f gamma, ln_f beta, head bias, -
    outputs    : logits slab (B*T, 128) and scalar masked-CE loss (1, 1)
    """
    B, T = tcol_ref.shape[0], tcol_ref.shape[1]
    BT = B * T
    L = wp_ref.shape[0]

    lane = jax.lax.broadcasted_iota(jnp.int32, (BT, LANES), 1)
    lane_t = jax.lax.broadcasted_iota(jnp.int32, (T, LANES), 1)
    model_mask = lane < D_MODEL
    bias_lane = lane == (LANES - 1)

    row_tt = jax.lax.broadcasted_iota(jnp.int32, (T, T), 0)
    col_tt = jax.lax.broadcasted_iota(jnp.int32, (T, T), 1)
    causal = row_tt >= col_tt

    def layernorm(x, g, b):
        # LayerNorm over the first D_MODEL lanes of a 128-lane-dense slab (pads stay zero).
        xm = jnp.where(model_mask, x, 0.0)
        mean = jnp.sum(xm, axis=-1, keepdims=True) * (1.0 / D_MODEL)
        xc = jnp.where(model_mask, xm - mean, 0.0)
        var = jnp.sum(xc * xc, axis=-1, keepdims=True) * (1.0 / D_MODEL)
        return xc * jax.lax.rsqrt(var + LN_EPS) * g + b

    h = h_ref[...]                                         # (BT, 128), resident in VMEM throughout

    for l in range(L):                                     # layers unrolled at trace time
        vec = vec_ref[l]
        ln1_g, ln1_b = vec[0:1], vec[1:2]
        b_o = vec[2:3]
        ln2_g, ln2_b = vec[3:4], vec[4:5]
        b1, b2 = vec[5:6], vec[6:7]

        # ---- retention sub-block (pre-LN) ----
        x = layernorm(h, ln1_g, ln1_b)
        x = jnp.where(bias_lane, 1.0, x)                   # constant-1 lane -> bias row of wp
        proj = jnp.dot(x, wp_ref[l], preferred_element_type=jnp.float32)      # (BT, 896)

        zg = proj[:, 3 * NUM_HEADS * LANES:]               # gamma-logit slab (BT, 128)
        # exact log-sigmoid (<= 0), no clamp, no overflow
        log_g = jnp.minimum(zg, 0.0) - jnp.log(1.0 + jnp.exp(-jnp.abs(zg)))

        att_rows = []
        for b in range(B):                                  # B, H unrolled; only (T,T) work here
            r0 = b * T
            dt = jnp.maximum(tcol_ref[b] - trow_ref[b], 0.0)                  # (T, T), >= 0
            acc = jnp.zeros((T, LANES), jnp.float32)
            for hd in range(NUM_HEADS):
                q = proj[r0:r0 + T, hd * LANES:(hd + 1) * LANES]              # whole-vreg slabs
                k = proj[r0:r0 + T, (NUM_HEADS + hd) * LANES:(NUM_HEADS + hd + 1) * LANES]
                v = proj[r0:r0 + T, (2 * NUM_HEADS + hd) * LANES:(2 * NUM_HEADS + hd + 1) * LANES]
                lg = log_g[r0:r0 + T, hd:hd + 1]                              # (T, 1), <= 0

                scores = jax.lax.dot_general(
                    q, k, (((1,), (1,)), ((), ())),
                    preferred_element_type=jnp.float32) * SCALE               # (T, T)
                # single fused causal mask + time-aware decay: gamma_i ** (t_i - t_j)
                decay = jnp.exp(jnp.where(causal, dt * lg, -1e30))
                o = jnp.dot(scores * decay, v, preferred_element_type=jnp.float32)  # (T, 128)

                # per-head GroupNorm over the dv head lanes (pad lanes are zero -> sums exact)
                mean = jnp.sum(o, axis=-1, keepdims=True) * (1.0 / DV)
                var = jnp.sum(o * o, axis=-1, keepdims=True) * (1.0 / DV) - mean * mean
                gn = (o - mean) * jax.lax.rsqrt(var + GN_EPS)
                head_mask = (lane_t >= hd * DV) & (lane_t < (hd + 1) * DV)
                acc = acc + jnp.where(head_mask, gn, 0.0)                     # natural v lanes
            att_rows.append(acc)
        att_out = jnp.concatenate(att_rows, axis=0)                            # (BT, 128)

        h = h + jnp.dot(att_out, wo_ref[l], preferred_element_type=jnp.float32) + b_o

        # ---- LN + GELU FFN sub-block ----
        x2 = layernorm(h, ln2_g, ln2_b)
        u = jax.nn.gelu(jnp.dot(x2, w1_ref[l], preferred_element_type=jnp.float32) + b1[:, :D_FF])
        h = h + jnp.dot(u, w2_ref[l], preferred_element_type=jnp.float32) + b2

    # ---- final LayerNorm (ln_f) + PretrainHead + masked cross-entropy ----
    hv = hvec_ref[...]
    xf = layernorm(h, hv[0:1], hv[1:2])
    logits = jnp.dot(xf, whead_ref[...], preferred_element_type=jnp.float32) + hv[2:3]  # (BT, 128)
    logits_ref[...] = logits                              # lane-dense output slab (pads are zero)

    token_mask = lane < N_TOKENS
    ml = jnp.where(token_mask, logits, -1e30)
    m = jnp.max(ml, axis=-1, keepdims=True)
    z = ml - m
    lse = jnp.log(jnp.sum(jnp.exp(z), axis=-1, keepdims=True))
    logp = z - lse
    tgt = tgt_ref[...]                                                         # (BT, 1) int32
    nll = -jnp.sum(jnp.where(lane == tgt, logp, 0.0), axis=-1, keepdims=True)  # (BT, 1)
    valid = (tgt != PADDING_IDX).astype(jnp.float32)
    num = jnp.sum(nll * valid, axis=0, keepdims=True)                          # (1, 1)
    den = jnp.sum(valid, axis=0, keepdims=True)                                # (1, 1)
    loss_ref[...] = num / jnp.maximum(den, 1.0)


# ---------------- wrapper: embedding/shift glue + single pallas_call ----------------

def traj_gpt_forward(params, X, input_time, y):
    """TrajGPT.forward with head_type='pretrain' -> returns (token_loss, logits)."""
    B, T = X.shape
    emb = params["emb"][X]                                            # token embedding lookup
    sos = jnp.broadcast_to(params["sos"][None, None, :], (B, 1, D_MODEL))
    h = jnp.concatenate([sos, emb[:, :-1, :]], axis=1)                # shift-right with SOS
    h = jnp.pad(h, ((0, 0), (0, 0), (0, LANES - D_MODEL)))            # lane-dense hidden slab
    h = h.reshape(B * T, LANES)

    t_f = input_time.astype(jnp.float32)
    t_col = t_f[:, :, None]                                           # (B, T, 1)
    t_row = t_f[:, None, :]                                           # (B, 1, T)
    tgt = y.reshape(B * T, 1).astype(jnp.int32)

    vmem_spec = pl.BlockSpec(memory_space=pltpu.MemorySpace.VMEM)     # full-array blocks, no grid
    logits_slab, loss = pl.pallas_call(
        traj_gpt_fwd_kernel,
        out_shape=(jax.ShapeDtypeStruct((B * T, LANES), jnp.float32),
                   jax.ShapeDtypeStruct((1, 1), jnp.float32)),
        in_specs=[vmem_spec] * 11,
        out_specs=(vmem_spec, vmem_spec),
    )(h, t_col, t_row, tgt,
      params["wp"], params["wo"], params["w1"], params["w2"], params["vec"],
      params["w_head"], params["head_vec"])

    logits = logits_slab[:, :N_TOKENS].reshape(B, T, N_TOKENS)
    return loss[0, 0], logits


# ---------------- deterministic parameter init + lane-dense packing ----------------

def init_params(key):
    def nrm(k, shape, scale=0.02):
        return scale * jax.random.normal(k, shape, dtype=jnp.float32)

    keys = jax.random.split(key, 4 + NUM_LAYERS)
    emb = nrm(keys[0], (N_TOKENS, D_MODEL), 1.0)
    sos = nrm(keys[1], (D_MODEL,), 1.0)                               # nn.init.normal_(self.sos)
    w_head = nrm(keys[2], (D_MODEL, N_TOKENS))
    b_head = jnp.zeros((N_TOKENS,), jnp.float32)

    wp_l, wo_l, w1_l, w2_l, vec_l = [], [], [], [], []
    for l in range(NUM_LAYERS):
        lk = jax.random.split(keys[4 + l], 6)
        w_qkv = nrm(lk[0], (D_MODEL, 2 * QK_DIM + V_DIM))             # cols: [q | k | v]
        b_qkv = jnp.zeros((2 * QK_DIM + V_DIM,), jnp.float32)
        w_g = nrm(lk[1], (D_MODEL, NUM_HEADS))
        b_g = jnp.full((NUM_HEADS,), 2.0, jnp.float32)                # bias decay gamma toward 1
        w_o = nrm(lk[2], (V_DIM, D_MODEL))
        b_o = jnp.zeros((D_MODEL,), jnp.float32)
        w1 = nrm(lk[3], (D_MODEL, D_FF))
        b1 = jnp.zeros((D_FF,), jnp.float32)
        w2 = nrm(lk[4], (D_FF, D_MODEL))
        b2 = jnp.zeros((D_MODEL,), jnp.float32)

        # fused qkv+gamma projection, packed as per-head whole-vreg slabs; row 127 = bias
        wp = jnp.zeros((LANES, PROJ_W), jnp.float32)
        bp = jnp.zeros((PROJ_W,), jnp.float32)
        for hd in range(NUM_HEADS):
            qs = hd * LANES + hd * DK
            ks = (NUM_HEADS + hd) * LANES + hd * DK
            vs = (2 * NUM_HEADS + hd) * LANES + hd * DV
            gc = 3 * NUM_HEADS * LANES + hd
            wp = wp.at[:D_MODEL, qs:qs + DK].set(w_qkv[:, hd * DK:(hd + 1) * DK])
            bp = bp.at[qs:qs + DK].set(b_qkv[hd * DK:(hd + 1) * DK])
            wp = wp.at[:D_MODEL, ks:ks + DK].set(w_qkv[:, QK_DIM + hd * DK:QK_DIM + (hd + 1) * DK])
            bp = bp.at[ks:ks + DK].set(b_qkv[QK_DIM + hd * DK:QK_DIM + (hd + 1) * DK])
            wp = wp.at[:D_MODEL, vs:vs + DV].set(
                w_qkv[:, 2 * QK_DIM + hd * DV:2 * QK_DIM + (hd + 1) * DV])
            bp = bp.at[vs:vs + DV].set(b_qkv[2 * QK_DIM + hd * DV:2 * QK_DIM + (hd + 1) * DV])
            wp = wp.at[:D_MODEL, gc].set(w_g[:, hd])
            bp = bp.at[gc].set(b_g[hd])
        wp = wp.at[LANES - 1, :].set(bp)                              # bias via constant-1 lane

        wo = jnp.zeros((LANES, LANES), jnp.float32).at[:V_DIM, :D_MODEL].set(w_o)
        w1p = jnp.zeros((LANES, D_FF), jnp.float32).at[:D_MODEL, :].set(w1)
        w2p = jnp.zeros((D_FF, LANES), jnp.float32).at[:, :D_MODEL].set(w2)

        vec = jnp.zeros((8, LANES), jnp.float32)
        vec = vec.at[0, :D_MODEL].set(jnp.ones((D_MODEL,), jnp.float32))   # ln1_g
        vec = vec.at[2, :D_MODEL].set(b_o)                                  # b_o   (ln1_b row1 = 0)
        vec = vec.at[3, :D_MODEL].set(jnp.ones((D_MODEL,), jnp.float32))   # ln2_g
        vec = vec.at[5, :D_FF].set(b1)                                      # b1    (ln2_b row4 = 0)
        vec = vec.at[6, :D_MODEL].set(b2)                                   # b2

        wp_l.append(wp); wo_l.append(wo); w1_l.append(w1p); w2_l.append(w2p); vec_l.append(vec)

    head_vec = jnp.zeros((8, LANES), jnp.float32)
    head_vec = head_vec.at[0, :D_MODEL].set(jnp.ones((D_MODEL,), jnp.float32))  # ln_f gamma
    head_vec = head_vec.at[2, :N_TOKENS].set(b_head)                             # head bias
    w_head_p = jnp.zeros((LANES, LANES), jnp.float32).at[:D_MODEL, :N_TOKENS].set(w_head)

    return {
        "emb": emb, "sos": sos,
        "wp": jnp.stack(wp_l), "wo": jnp.stack(wo_l),
        "w1": jnp.stack(w1_l), "w2": jnp.stack(w2_l),
        "vec": jnp.stack(vec_l),
        "w_head": w_head_p, "head_vec": head_vec,
    }


if __name__ == "__main__":
    B, T = 2, 8
    root = jax.random.PRNGKey(0)
    kp, kx, kt, ky = jax.random.split(root, 4)

    params = init_params(kp)
    X = jax.random.randint(kx, (B, T), 1, N_TOKENS, dtype=jnp.int32)        # phecode token ids
    input_time = jnp.cumsum(jax.random.uniform(kt, (B, T), minval=0.5, maxval=2.0), axis=1)
    y = jax.random.randint(ky, (B, T), 1, N_TOKENS, dtype=jnp.int32)        # next-token targets

    fwd = jax.jit(functools.partial(traj_gpt_forward, params))
    loss, logits = fwd(X, input_time, y)
    jax.block_until_ready((loss, logits))

    assert logits.shape == (B, T, N_TOKENS)
    assert bool(jnp.isfinite(loss))
    print("KERNEL_OK")
</pallas_src>

<mosaic_0001>
module attributes {stable_mosaic.version = 11 : i64} {
  func.func @traj_gpt_fwd_kernel(%arg0: memref<16x128xf32, #tpu.memory_space<vmem>>, %arg1: memref<2x8x1xf32, #tpu.memory_space<vmem>>, %arg2: memref<2x1x8xf32, #tpu.memory_space<vmem>>, %arg3: memref<16x1xi32, #tpu.memory_space<vmem>>, %arg4: memref<2x128x896xf32, #tpu.memory_space<vmem>>, %arg5: memref<2x128x128xf32, #tpu.memory_space<vmem>>, %arg6: memref<2x128x128xf32, #tpu.memory_space<vmem>>, %arg7: memref<2x128x128xf32, #tpu.memory_space<vmem>>, %arg8: memref<2x8x128xf32, #tpu.memory_space<vmem>>, %arg9: memref<128x128xf32, #tpu.memory_space<vmem>>, %arg10: memref<8x128xf32, #tpu.memory_space<vmem>>, %arg11: memref<16x128xf32, #tpu.memory_space<vmem>>, %arg12: memref<1x1xf32, #tpu.memory_space<vmem>>) attributes {dimension_semantics = [], scalar_prefetch = 0 : i64, scratch_operands = 0 : i64, tpu.core_type = #tpu.core_type<tc>} {
    %0 = tpu.iota {dimensions = array<i32: 1>} : vector<16x128xi32>
    %1 = tpu.iota {dimensions = array<i32: 1>} : vector<8x128xi32>
    %c32_i32 = arith.constant 32 : i32
    %2 = vector.broadcast %c32_i32 : i32 to vector<16x128xi32>
    %3 = arith.cmpi slt, %0, %2 : vector<16x128xi32>
    %c127_i32 = arith.constant 127 : i32
    %4 = vector.broadcast %c127_i32 : i32 to vector<16x128xi32>
    %5 = arith.cmpi eq, %0, %4 : vector<16x128xi32>
    %6 = tpu.iota {dimensions = array<i32: 0>} : vector<8x8xi32>
    %7 = tpu.iota {dimensions = array<i32: 1>} : vector<8x8xi32>
    %8 = arith.cmpi sge, %6, %7 : vector<8x8xi32>
    %c0 = arith.constant 0 : index
    %c0_0 = arith.constant 0 : index
    %9 = vector.load %arg0[%c0, %c0_0] : memref<16x128xf32, #tpu.memory_space<vmem>>, vector<16x128xf32>
    %c0_1 = arith.constant 0 : index
    %c0_2 = arith.constant 0 : index
    %c0_3 = arith.constant 0 : index
    %10 = vector.load %arg8[%c0_1, %c0_2, %c0_3] : memref<2x8x128xf32, #tpu.memory_space<vmem>>, vector<1x8x128xf32>
    %11 = vector.shape_cast %10 : vector<1x8x128xf32> to vector<8x128xf32>
    %12 = vector.extract_strided_slice %11 {offsets = [0, 0], sizes = [1, 128], strides = [1, 1]} : vector<8x128xf32> to vector<1x128xf32>
    %13 = vector.extract_strided_slice %11 {offsets = [1, 0], sizes = [1, 128], strides = [1, 1]} : vector<8x128xf32> to vector<1x128xf32>
    %14 = vector.extract_strided_slice %11 {offsets = [2, 0], sizes = [1, 128], strides = [1, 1]} : vector<8x128xf32> to vector<1x128xf32>
    %15 = vector.extract_strided_slice %11 {offsets = [3, 0], sizes = [1, 128], strides = [1, 1]} : vector<8x128xf32> to vector<1x128xf32>
    %16 = vector.extract_strided_slice %11 {offsets = [4, 0], sizes = [1, 128], strides = [1, 1]} : vector<8x128xf32> to vector<1x128xf32>
    %17 = vector.extract_strided_slice %11 {offsets = [5, 0], sizes = [1, 128], strides = [1, 1]} : vector<8x128xf32> to vector<1x128xf32>
    %18 = vector.extract_strided_slice %11 {offsets = [6, 0], sizes = [1, 128], strides = [1, 1]} : vector<8x128xf32> to vector<1x128xf32>
    %cst = arith.constant 0.000000e+00 : f32
    %19 = vector.broadcast %cst : f32 to vector<16x128xf32>
    %20 = arith.select %3, %9, %19 : vector<16x128xi1>, vector<16x128xf32>
    %cst_4 = arith.constant dense<0.000000e+00> : vector<16xf32>
    %21 = vector.multi_reduction <add>, %20, %cst_4 [1] : vector<16x128xf32> to vector<16xf32>
    %22 = vector.shape_cast %21 : vector<16xf32> to vector<16x1xf32>
    %cst_5 = arith.constant 3.125000e-02 : f32
    %23 = vector.broadcast %cst_5 : f32 to vector<16x1xf32>
    %24 = arith.mulf %22, %23 : vector<16x1xf32>
    %25 = vector.broadcast %24 : vector<16x1xf32> to vector<16x128xf32>
    %26 = arith.subf %20, %25 : vector<16x128xf32>
    %cst_6 = arith.constant 0.000000e+00 : f32
    %27 = vector.broadcast %cst_6 : f32 to vector<16x128xf32>
    %28 = arith.select %3, %26, %27 : vector<16x128xi1>, vector<16x128xf32>
    %29 = arith.mulf %28, %28 : vector<16x128xf32>
    %cst_7 = arith.constant dense<0.000000e+00> : vector<16xf32>
    %30 = vector.multi_reduction <add>, %29, %cst_7 [1] : vector<16x128xf32> to vector<16xf32>
    %31 = vector.shape_cast %30 : vector<16xf32> to vector<16x1xf32>
    %cst_8 = arith.constant 3.125000e-02 : f32
    %32 = vector.broadcast %cst_8 : f32 to vector<16x1xf32>
    %33 = arith.mulf %31, %32 : vector<16x1xf32>
    %cst_9 = arith.constant 9.99999974E-6 : f32
    %34 = vector.broadcast %cst_9 : f32 to vector<16x1xf32>
    %35 = arith.addf %33, %34 : vector<16x1xf32>
    %36 = math.rsqrt %35 : vector<16x1xf32>
    %37 = vector.broadcast %36 : vector<16x1xf32> to vector<16x128xf32>
    %38 = arith.mulf %28, %37 : vector<16x128xf32>
    %39 = vector.broadcast %12 : vector<1x128xf32> to vector<16x128xf32>
    %40 = arith.mulf %38, %39 : vector<16x128xf32>
    %41 = vector.broadcast %13 : vector<1x128xf32> to vector<16x128xf32>
    %42 = arith.addf %40, %41 : vector<16x128xf32>
    %cst_10 = arith.constant 1.000000e+00 : f32
    %43 = vector.broadcast %cst_10 : f32 to vector<16x128xf32>
    %44 = arith.select %5, %43, %42 : vector<16x128xi1>, vector<16x128xf32>
    %c0_11 = arith.constant 0 : index
    %c0_12 = arith.constant 0 : index
    %c0_13 = arith.constant 0 : index
    %45 = vector.load %arg4[%c0_11, %c0_12, %c0_13] : memref<2x128x896xf32, #tpu.memory_space<vmem>>, vector<1x128x896xf32>
    %46 = vector.shape_cast %45 : vector<1x128x896xf32> to vector<128x896xf32>
    %cst_14 = arith.constant dense<0.000000e+00> : vector<16x896xf32>
    %47 = tpu.matmul %44, %46, %cst_14 {dimension_numbers = #tpu.dot_dimension_numbers<[1], [0], [0], [1], [0, 0, 1, 1], [], []>} : vector<16x128xf32>, vector<128x896xf32>, vector<16x896xf32> -> vector<16x896xf32>
    %48 = vector.extract_strided_slice %47 {offsets = [0, 768], sizes = [16, 128], strides = [1, 1]} : vector<16x896xf32> to vector<16x128xf32>
    %cst_15 = arith.constant 0.000000e+00 : f32
    %49 = vector.broadcast %cst_15 : f32 to vector<16x128xf32>
    %50 = arith.minimumf %48, %49 : vector<16x128xf32>
    %51 = math.absf %48 : vector<16x128xf32>
    %cst_16 = arith.constant 0.000000e+00 : f32
    %52 = vector.broadcast %cst_16 : f32 to vector<16x128xf32>
    %53 = arith.subf %52, %51 : vector<16x128xf32>
    %54 = math.exp %53 : vector<16x128xf32>
    %cst_17 = arith.constant 1.000000e+00 : f32
    %55 = vector.broadcast %cst_17 : f32 to vector<16x128xf32>
    %56 = arith.addf %55, %54 : vector<16x128xf32>
    %57 = math.log %56 : vector<16x128xf32>
    %58 = arith.subf %50, %57 : vector<16x128xf32>
    %c0_18 = arith.constant 0 : index
    %c0_19 = arith.constant 0 : index
    %c0_20 = arith.constant 0 : index
    %59 = vector.load %arg1[%c0_18, %c0_19, %c0_20] : memref<2x8x1xf32, #tpu.memory_space<vmem>>, vector<1x8x1xf32>
    %60 = vector.shape_cast %59 : vector<1x8x1xf32> to vector<8x1xf32>
    %c0_21 = arith.constant 0 : index
    %c0_22 = arith.constant 0 : index
    %c0_23 = arith.constant 0 : index
    %61 = vector.load %arg2[%c0_21, %c0_22, %c0_23] : memref<2x1x8xf32, #tpu.memory_space<vmem>>, vector<1x1x8xf32>
    %62 = vector.shape_cast %61 : vector<1x1x8xf32> to vector<1x8xf32>
    %63 = vector.broadcast %60 : vector<8x1xf32> to vector<8x8xf32>
    %64 = vector.broadcast %62 : vector<1x8xf32> to vector<8x8xf32>
    %65 = arith.subf %63, %64 : vector<8x8xf32>
    %cst_24 = arith.constant 0.000000e+00 : f32
    %66 = vector.broadcast %cst_24 : f32 to vector<8x8xf32>
    %67 = arith.maximumf %65, %66 : vector<8x8xf32>
    %cst_25 = arith.constant 0.000000e+00 : f32
    %68 = vector.broadcast %cst_25 : f32 to vector<8x128xf32>
    %69 = vector.extract_strided_slice %47 {offsets = [0, 0], sizes = [8, 128], strides = [1, 1]} : vector<16x896xf32> to vector<8x128xf32>
    %70 = vector.extract_strided_slice %47 {offsets = [0, 256], sizes = [8, 128], strides = [1, 1]} : vector<16x896xf32> to vector<8x128xf32>
    %71 = vector.extract_strided_slice %47 {offsets = [0, 512], sizes = [8, 128], strides = [1, 1]} : vector<16x896xf32> to vector<8x128xf32>
    %72 = vector.extract_strided_slice %58 {offsets = [0, 0], sizes = [8, 1], strides = [1, 1]} : vector<16x128xf32> to vector<8x1xf32>
    %cst_26 = arith.constant dense<0.000000e+00> : vector<8x8xf32>
    %73 = tpu.matmul %69, %70, %cst_26 {dimension_numbers = #tpu.dot_dimension_numbers<[1], [1], [0], [0], [0, 0, 1, 0], [], []>} : vector<8x128xf32>, vector<8x128xf32>, vector<8x8xf32> -> vector<8x8xf32>
    %cst_27 = arith.constant 2.500000e-01 : f32
    %74 = vector.broadcast %cst_27 : f32 to vector<8x8xf32>
    %75 = arith.mulf %73, %74 : vector<8x8xf32>
    %76 = vector.broadcast %72 : vector<8x1xf32> to vector<8x8xf32>
    %77 = arith.mulf %67, %76 : vector<8x8xf32>
    %cst_28 = arith.constant -1.000000e+30 : f32
    %78 = vector.broadcast %cst_28 : f32 to vector<8x8xf32>
    %79 = arith.select %8, %77, %78 : vector<8x8xi1>, vector<8x8xf32>
    %80 = math.exp %79 : vector<8x8xf32>
    %81 = arith.mulf %75, %80 : vector<8x8xf32>
    %cst_29 = arith.constant dense<0.000000e+00> : vector<8x128xf32>
    %82 = tpu.matmul %81, %71, %cst_29 {dimension_numbers = #tpu.dot_dimension_numbers<[1], [0], [0], [1], [0, 0, 1, 1], [], []>} : vector<8x8xf32>, vector<8x128xf32>, vector<8x128xf32> -> vector<8x128xf32>
    %cst_30 = arith.constant dense<0.000000e+00> : vector<8xf32>
    %83 = vector.multi_reduction <add>, %82, %cst_30 [1] : vector<8x128xf32> to vector<8xf32>
    %84 = vector.shape_cast %83 : vector<8xf32> to vector<8x1xf32>
    %cst_31 = arith.constant 6.250000e-02 : f32
    %85 = vector.broadcast %cst_31 : f32 to vector<8x1xf32>
    %86 = arith.mulf %84, %85 : vector<8x1xf32>
    %87 = arith.mulf %82, %82 : vector<8x128xf32>
    %cst_32 = arith.constant dense<0.000000e+00> : vector<8xf32>
    %88 = vector.multi_reduction <add>, %87, %cst_32 [1] : vector<8x128xf32> to vector<8xf32>
    %89 = vector.shape_cast %88 : vector<8xf32> to vector<8x1xf32>
    %cst_33 = arith.constant 6.250000e-02 : f32
    %90 = vector.broadcast %cst_33 : f32 to vector<8x1xf32>
    %91 = arith.mulf %89, %90 : vector<8x1xf32>
    %92 = arith.mulf %86, %86 : vector<8x1xf32>
    %93 = arith.subf %91, %92 : vector<8x1xf32>
    %94 = vector.broadcast %86 : vector<8x1xf32> to vector<8x128xf32>
    %95 = arith.subf %82, %94 : vector<8x128xf32>
    %cst_34 = arith.constant 9.99999974E-6 : f32
    %96 = vector.broadcast %cst_34 : f32 to vector<8x1xf32>
    %97 = arith.addf %93, %96 : vector<8x1xf32>
    %98 = math.rsqrt %97 : vector<8x1xf32>
    %99 = vector.broadcast %98 : vector<8x1xf32> to vector<8x128xf32>
    %100 = arith.mulf %95, %99 : vector<8x128xf32>
    %c0_i32 = arith.constant 0 : i32
    %101 = vector.broadcast %c0_i32 : i32 to vector<8x128xi32>
    %102 = arith.cmpi sge, %1, %101 : vector<8x128xi32>
    %c16_i32 = arith.constant 16 : i32
    %103 = vector.broadcast %c16_i32 : i32 to vector<8x128xi32>
    %104 = arith.cmpi slt, %1, %103 : vector<8x128xi32>
    %105 = arith.andi %102, %104 : vector<8x128xi1>
    %cst_35 = arith.constant 0.000000e+00 : f32
    %106 = vector.broadcast %cst_35 : f32 to vector<8x128xf32>
    %107 = arith.select %105, %100, %106 : vector<8x128xi1>, vector<8x128xf32>
    %108 = arith.addf %68, %107 : vector<8x128xf32>
    %109 = vector.extract_strided_slice %47 {offsets = [0, 128], sizes = [8, 128], strides = [1, 1]} : vector<16x896xf32> to vector<8x128xf32>
    %110 = vector.extract_strided_slice %47 {offsets = [0, 384], sizes = [8, 128], strides = [1, 1]} : vector<16x896xf32> to vector<8x128xf32>
    %111 = vector.extract_strided_slice %47 {offsets = [0, 640], sizes = [8, 128], strides = [1, 1]} : vector<16x896xf32> to vector<8x128xf32>
    %112 = vector.extract_strided_slice %58 {offsets = [0, 1], sizes = [8, 1], strides = [1, 1]} : vector<16x128xf32> to vector<8x1xf32>
    %cst_36 = arith.constant dense<0.000000e+00> : vector<8x8xf32>
    %113 = tpu.matmul %109, %110, %cst_36 {dimension_numbers = #tpu.dot_dimension_numbers<[1], [1], [0], [0], [0, 0, 1, 0], [], []>} : vector<8x128xf32>, vector<8x128xf32>, vector<8x8xf32> -> vector<8x8xf32>
    %cst_37 = arith.constant 2.500000e-01 : f32
    %114 = vector.broadcast %cst_37 : f32 to vector<8x8xf32>
    %115 = arith.mulf %113, %114 : vector<8x8xf32>
    %116 = vector.broadcast %112 : vector<8x1xf32> to vector<8x8xf32>
    %117 = arith.mulf %67, %116 : vector<8x8xf32>
    %cst_38 = arith.constant -1.000000e+30 : f32
    %118 = vector.broadcast %cst_38 : f32 to vector<8x8xf32>
    %119 = arith.select %8, %117, %118 : vector<8x8xi1>, vector<8x8xf32>
    %120 = math.exp %119 : vector<8x8xf32>
    %121 = arith.mulf %115, %120 : vector<8x8xf32>
    %cst_39 = arith.constant dense<0.000000e+00> : vector<8x128xf32>
    %122 = tpu.matmul %121, %111, %cst_39 {dimension_numbers = #tpu.dot_dimension_numbers<[1], [0], [0], [1], [0, 0, 1, 1], [], []>} : vector<8x8xf32>, vector<8x128xf32>, vector<8x128xf32> -> vector<8x128xf32>
    %cst_40 = arith.constant dense<0.000000e+00> : vector<8xf32>
    %123 = vector.multi_reduction <add>, %122, %cst_40 [1] : vector<8x128xf32> to vector<8xf32>
    %124 = vector.shape_cast %123 : vector<8xf32> to vector<8x1xf32>
    %cst_41 = arith.constant 6.250000e-02 : f32
    %125 = vector.broadcast %cst_41 : f32 to vector<8x1xf32>
    %126 = arith.mulf %124, %125 : vector<8x1xf32>
    %127 = arith.mulf %122, %122 : vector<8x128xf32>
    %cst_42 = arith.constant dense<0.000000e+00> : vector<8xf32>
    %128 = vector.multi_reduction <add>, %127, %cst_42 [1] : vector<8x128xf32> to vector<8xf32>
    %129 = vector.shape_cast %128 : vector<8xf32> to vector<8x1xf32>
    %cst_43 = arith.constant 6.250000e-02 : f32
    %130 = vector.broadcast %cst_43 : f32 to vector<8x1xf32>
    %131 = arith.mulf %129, %130 : vector<8x1xf32>
    %132 = arith.mulf %126, %126 : vector<8x1xf32>
    %133 = arith.subf %131, %132 : vector<8x1xf32>
    %134 = vector.broadcast %126 : vector<8x1xf32> to vector<8x128xf32>
    %135 = arith.subf %122, %134 : vector<8x128xf32>
    %cst_44 = arith.constant 9.99999974E-6 : f32
    %136 = vector.broadcast %cst_44 : f32 to vector<8x1xf32>
    %137 = arith.addf %133, %136 : vector<8x1xf32>
    %138 = math.rsqrt %137 : vector<8x1xf32>
    %139 = vector.broadcast %138 : vector<8x1xf32> to vector<8x128xf32>
    %140 = arith.mulf %135, %139 : vector<8x128xf32>
    %c16_i32_45 = arith.constant 16 : i32
    %141 = vector.broadcast %c16_i32_45 : i32 to vector<8x128xi32>
    %142 = arith.cmpi sge, %1, %141 : vector<8x128xi32>
    %c32_i32_46 = arith.constant 32 : i32
    %143 = vector.broadcast %c32_i32_46 : i32 to vector<8x128xi32>
    %144 = arith.cmpi slt, %1, %143 : vector<8x128xi32>
    %145 = arith.andi %142, %144 : vector<8x128xi1>
    %cst_47 = arith.constant 0.000000e+00 : f32
    %146 = vector.broadcast %cst_47 : f32 to vector<8x128xf32>
    %147 = arith.select %145, %140, %146 : vector<8x128xi1>, vector<8x128xf32>
    %148 = arith.addf %108, %147 : vector<8x128xf32>
    %c1 = arith.constant 1 : index
    %c0_48 = arith.constant 0 : index
    %c0_49 = arith.constant 0 : index
    %149 = vector.load %arg1[%c1, %c0_48, %c0_49] : memref<2x8x1xf32, #tpu.memory_space<vmem>>, vector<1x8x1xf32>
    %150 = vector.shape_cast %149 : vector<1x8x1xf32> to vector<8x1xf32>
    %c1_50 = arith.constant 1 : index
    %c0_51 = arith.constant 0 : index
    %c0_52 = arith.constant 0 : index
    %151 = vector.load %arg2[%c1_50, %c0_51, %c0_52] : memref<2x1x8xf32, #tpu.memory_space<vmem>>, vector<1x1x8xf32>
    %152 = vector.shape_cast %151 : vector<1x1x8xf32> to vector<1x8xf32>
    %153 = vector.broadcast %150 : vector<8x1xf32> to vector<8x8xf32>
    %154 = vector.broadcast %152 : vector<1x8xf32> to vector<8x8xf32>
    %155 = arith.subf %153, %154 : vector<8x8xf32>
    %cst_53 = arith.constant 0.000000e+00 : f32
    %156 = vector.broadcast %cst_53 : f32 to vector<8x8xf32>
    %157 = arith.maximumf %155, %156 : vector<8x8xf32>
    %cst_54 = arith.constant 0.000000e+00 : f32
    %158 = vector.broadcast %cst_54 : f32 to vector<8x128xf32>
    %159 = vector.extract_strided_slice %47 {offsets = [8, 0], sizes = [8, 128], strides = [1, 1]} : vector<16x896xf32> to vector<8x128xf32>
    %160 = vector.extract_strided_slice %47 {offsets = [8, 256], sizes = [8, 128], strides = [1, 1]} : vector<16x896xf32> to vector<8x128xf32>
    %161 = vector.extract_strided_slice %47 {offsets = [8, 512], sizes = [8, 128], strides = [1, 1]} : vector<16x896xf32> to vector<8x128xf32>
    %162 = vector.extract_strided_slice %58 {offsets = [8, 0], sizes = [8, 1], strides = [1, 1]} : vector<16x128xf32> to vector<8x1xf32>
    %cst_55 = arith.constant dense<0.000000e+00> : vector<8x8xf32>
    %163 = tpu.matmul %159, %160, %cst_55 {dimension_numbers = #tpu.dot_dimension_numbers<[1], [1], [0], [0], [0, 0, 1, 0], [], []>} : vector<8x128xf32>, vector<8x128xf32>, vector<8x8xf32> -> vector<8x8xf32>
    %cst_56 = arith.constant 2.500000e-01 : f32
    %164 = vector.broadcast %cst_56 : f32 to vector<8x8xf32>
    %165 = arith.mulf %163, %164 : vector<8x8xf32>
    %166 = vector.broadcast %162 : vector<8x1xf32> to vector<8x8xf32>
    %167 = arith.mulf %157, %166 : vector<8x8xf32>
    %cst_57 = arith.constant -1.000000e+30 : f32
    %168 = vector.broadcast %cst_57 : f32 to vector<8x8xf32>
    %169 = arith.select %8, %167, %168 : vector<8x8xi1>, vector<8x8xf32>
    %170 = math.exp %169 : vector<8x8xf32>
    %171 = arith.mulf %165, %170 : vector<8x8xf32>
    %cst_58 = arith.constant dense<0.000000e+00> : vector<8x128xf32>
    %172 = tpu.matmul %171, %161, %cst_58 {dimension_numbers = #tpu.dot_dimension_numbers<[1], [0], [0], [1], [0, 0, 1, 1], [], []>} : vector<8x8xf32>, vector<8x128xf32>, vector<8x128xf32> -> vector<8x128xf32>
    %cst_59 = arith.constant dense<0.000000e+00> : vector<8xf32>
    %173 = vector.multi_reduction <add>, %172, %cst_59 [1] : vector<8x128xf32> to vector<8xf32>
    %174 = vector.shape_cast %173 : vector<8xf32> to vector<8x1xf32>
    %cst_60 = arith.constant 6.250000e-02 : f32
    %175 = vector.broadcast %cst_60 : f32 to vector<8x1xf32>
    %176 = arith.mulf %174, %175 : vector<8x1xf32>
    %177 = arith.mulf %172, %172 : vector<8x128xf32>
    %cst_61 = arith.constant dense<0.000000e+00> : vector<8xf32>
    %178 = vector.multi_reduction <add>, %177, %cst_61 [1] : vector<8x128xf32> to vector<8xf32>
    %179 = vector.shape_cast %178 : vector<8xf32> to vector<8x1xf32>
    %cst_62 = arith.constant 6.250000e-02 : f32
    %180 = vector.broadcast %cst_62 : f32 to vector<8x1xf32>
    %181 = arith.mulf %179, %180 : vector<8x1xf32>
    %182 = arith.mulf %176, %176 : vector<8x1xf32>
    %183 = arith.subf %181, %182 : vector<8x1xf32>
    %184 = vector.broadcast %176 : vector<8x1xf32> to vector<8x128xf32>
    %185 = arith.subf %172, %184 : vector<8x128xf32>
    %cst_63 = arith.constant 9.99999974E-6 : f32
    %186 = vector.broadcast %cst_63 : f32 to vector<8x1xf32>
    %187 = arith.addf %183, %186 : vector<8x1xf32>
    %188 = math.rsqrt %187 : vector<8x1xf32>
    %189 = vector.broadcast %188 : vector<8x1xf32> to vector<8x128xf32>
    %190 = arith.mulf %185, %189 : vector<8x128xf32>
    %c0_i32_64 = arith.constant 0 : i32
    %191 = vector.broadcast %c0_i32_64 : i32 to vector<8x128xi32>
    %192 = arith.cmpi sge, %1, %191 : vector<8x128xi32>
    %c16_i32_65 = arith.constant 16 : i32
    %193 = vector.broadcast %c16_i32_65 : i32 to vector<8x128xi32>
    %194 = arith.cmpi slt, %1, %193 : vector<8x128xi32>
    %195 = arith.andi %192, %194 : vector<8x128xi1>
    %cst_66 = arith.constant 0.000000e+00 : f32
    %196 = vector.broadcast %cst_66 : f32 to vector<8x128xf32>
    %197 = arith.select %195, %190, %196 : vector<8x128xi1>, vector<8x128xf32>
    %198 = arith.addf %158, %197 : vector<8x128xf32>
    %199 = vector.extract_strided_slice %47 {offsets = [8, 128], sizes = [8, 128], strides = [1, 1]} : vector<16x896xf32> to vector<8x128xf32>
    %200 = vector.extract_strided_slice %47 {offsets = [8, 384], sizes = [8, 128], strides = [1, 1]} : vector<16x896xf32> to vector<8x128xf32>
    %201 = vector.extract_strided_slice %47 {offsets = [8, 640], sizes = [8, 128], strides = [1, 1]} : vector<16x896xf32> to vector<8x128xf32>
    %202 = vector.extract_strided_slice %58 {offsets = [8, 1], sizes = [8, 1], strides = [1, 1]} : vector<16x128xf32> to vector<8x1xf32>
    %cst_67 = arith.constant dense<0.000000e+00> : vector<8x8xf32>
    %203 = tpu.matmul %199, %200, %cst_67 {dimension_numbers = #tpu.dot_dimension_numbers<[1], [1], [0], [0], [0, 0, 1, 0], [], []>} : vector<8x128xf32>, vector<8x128xf32>, vector<8x8xf32> -> vector<8x8xf32>
    %cst_68 = arith.constant 2.500000e-01 : f32
    %204 = vector.broadcast %cst_68 : f32 to vector<8x8xf32>
    %205 = arith.mulf %203, %204 : vector<8x8xf32>
    %206 = vector.broadcast %202 : vector<8x1xf32> to vector<8x8xf32>
    %207 = arith.mulf %157, %206 : vector<8x8xf32>
    %cst_69 = arith.constant -1.000000e+30 : f32
    %208 = vector.broadcast %cst_69 : f32 to vector<8x8xf32>
    %209 = arith.select %8, %207, %208 : vector<8x8xi1>, vector<8x8xf32>
    %210 = math.exp %209 : vector<8x8xf32>
    %211 = arith.mulf %205, %210 : vector<8x8xf32>
    %cst_70 = arith.constant dense<0.000000e+00> : vector<8x128xf32>
    %212 = tpu.matmul %211, %201, %cst_70 {dimension_numbers = #tpu.dot_dimension_numbers<[1], [0], [0], [1], [0, 0, 1, 1], [], []>} : vector<8x8xf32>, vector<8x128xf32>, vector<8x128xf32> -> vector<8x128xf32>
    %cst_71 = arith.constant dense<0.000000e+00> : vector<8xf32>
    %213 = vector.multi_reduction <add>, %212, %cst_71 [1] : vector<8x128xf32> to vector<8xf32>
    %214 = vector.shape_cast %213 : vector<8xf32> to vector<8x1xf32>
    %cst_72 = arith.constant 6.250000e-02 : f32
    %215 = vector.broadcast %cst_72 : f32 to vector<8x1xf32>
    %216 = arith.mulf %214, %215 : vector<8x1xf32>
    %217 = arith.mulf %212, %212 : vector<8x128xf32>
    %cst_73 = arith.constant dense<0.000000e+00> : vector<8xf32>
    %218 = vector.multi_reduction <add>, %217, %cst_73 [1] : vector<8x128xf32> to vector<8xf32>
    %219 = vector.shape_cast %218 : vector<8xf32> to vector<8x1xf32>
    %cst_74 = arith.constant 6.250000e-02 : f32
    %220 = vector.broadcast %cst_74 : f32 to vector<8x1xf32>
    %221 = arith.mulf %219, %220 : vector<8x1xf32>
    %222 = arith.mulf %216, %216 : vector<8x1xf32>
    %223 = arith.subf %221, %222 : vector<8x1xf32>
    %224 = vector.broadcast %216 : vector<8x1xf32> to vector<8x128xf32>
    %225 = arith.subf %212, %224 : vector<8x128xf32>
    %cst_75 = arith.constant 9.99999974E-6 : f32
    %226 = vector.broadcast %cst_75 : f32 to vector<8x1xf32>
    %227 = arith.addf %223, %226 : vector<8x1xf32>
    %228 = math.rsqrt %227 : vector<8x1xf32>
    %229 = vector.broadcast %228 : vector<8x1xf32> to vector<8x128xf32>
    %230 = arith.mulf %225, %229 : vector<8x128xf32>
    %c16_i32_76 = arith.constant 16 : i32
    %231 = vector.broadcast %c16_i32_76 : i32 to vector<8x128xi32>
    %232 = arith.cmpi sge, %1, %231 : vector<8x128xi32>
    %c32_i32_77 = arith.constant 32 : i32
    %233 = vector.broadcast %c32_i32_77 : i32 to vector<8x128xi32>
    %234 = arith.cmpi slt, %1, %233 : vector<8x128xi32>
    %235 = arith.andi %232, %234 : vector<8x128xi1>
    %cst_78 = arith.constant 0.000000e+00 : f32
    %236 = vector.broadcast %cst_78 : f32 to vector<8x128xf32>
    %237 = arith.select %235, %230, %236 : vector<8x128xi1>, vector<8x128xf32>
    %238 = arith.addf %198, %237 : vector<8x128xf32>
    %239 = tpu.concatenate %148, %238 in 0 : vector<8x128xf32>, vector<8x128xf32> -> vector<16x128xf32>
    %c0_79 = arith.constant 0 : index
    %c0_80 = arith.constant 0 : index
    %c0_81 = arith.constant 0 : index
    %240 = vector.load %arg5[%c0_79, %c0_80, %c0_81] : memref<2x128x128xf32, #tpu.memory_space<vmem>>, vector<1x128x128xf32>
    %241 = vector.shape_cast %240 : vector<1x128x128xf32> to vector<128x128xf32>
    %cst_82 = arith.constant dense<0.000000e+00> : vector<16x128xf32>
    %242 = tpu.matmul %239, %241, %cst_82 {dimension_numbers = #tpu.dot_dimension_numbers<[1], [0], [0], [1], [0, 0, 1, 1], [], []>} : vector<16x128xf32>, vector<128x128xf32>, vector<16x128xf32> -> vector<16x128xf32>
    %243 = arith.addf %9, %242 : vector<16x128xf32>
    %244 = vector.broadcast %14 : vector<1x128xf32> to vector<16x128xf32>
    %245 = arith.addf %243, %244 : vector<16x128xf32>
    %cst_83 = arith.constant 0.000000e+00 : f32
    %246 = vector.broadcast %cst_83 : f32 to vector<16x128xf32>
    %247 = arith.select %3, %245, %246 : vector<16x128xi1>, vector<16x128xf32>
    %cst_84 = arith.constant dense<0.000000e+00> : vector<16xf32>
    %248 = vector.multi_reduction <add>, %247, %cst_84 [1] : vector<16x128xf32> to vector<16xf32>
    %249 = vector.shape_cast %248 : vector<16xf32> to vector<16x1xf32>
    %cst_85 = arith.constant 3.125000e-02 : f32
    %250 = vector.broadcast %cst_85 : f32 to vector<16x1xf32>
    %251 = arith.mulf %249, %250 : vector<16x1xf32>
    %252 = vector.broadcast %251 : vector<16x1xf32> to vector<16x128xf32>
    %253 = arith.subf %247, %252 : vector<16x128xf32>
    %cst_86 = arith.constant 0.000000e+00 : f32
    %254 = vector.broadcast %cst_86 : f32 to vector<16x128xf32>
    %255 = arith.select %3, %253, %254 : vector<16x128xi1>, vector<16x128xf32>
    %256 = arith.mulf %255, %255 : vector<16x128xf32>
    %cst_87 = arith.constant dense<0.000000e+00> : vector<16xf32>
    %257 = vector.multi_reduction <add>, %256, %cst_87 [1] : vector<16x128xf32> to vector<16xf32>
    %258 = vector.shape_cast %257 : vector<16xf32> to vector<16x1xf32>
    %cst_88 = arith.constant 3.125000e-02 : f32
    %259 = vector.broadcast %cst_88 : f32 to vector<16x1xf32>
    %260 = arith.mulf %258, %259 : vector<16x1xf32>
    %cst_89 = arith.constant 9.99999974E-6 : f32
    %261 = vector.broadcast %cst_89 : f32 to vector<16x1xf32>
    %262 = arith.addf %260, %261 : vector<16x1xf32>
    %263 = math.rsqrt %262 : vector<16x1xf32>
    %264 = vector.broadcast %263 : vector<16x1xf32> to vector<16x128xf32>
    %265 = arith.mulf %255, %264 : vector<16x128xf32>
    %266 = vector.broadcast %15 : vector<1x128xf32> to vector<16x128xf32>
    %267 = arith.mulf %265, %266 : vector<16x128xf32>
    %268 = vector.broadcast %16 : vector<1x128xf32> to vector<16x128xf32>
    %269 = arith.addf %267, %268 : vector<16x128xf32>
    %c0_90 = arith.constant 0 : index
    %c0_91 = arith.constant 0 : index
    %c0_92 = arith.constant 0 : index
    %270 = vector.load %arg6[%c0_90, %c0_91, %c0_92] : memref<2x128x128xf32, #tpu.memory_space<vmem>>, vector<1x128x128xf32>
    %271 = vector.shape_cast %270 : vector<1x128x128xf32> to vector<128x128xf32>
    %cst_93 = arith.constant dense<0.000000e+00> : vector<16x128xf32>
    %272 = tpu.matmul %269, %271, %cst_93 {dimension_numbers = #tpu.dot_dimension_numbers<[1], [0], [0], [1], [0, 0, 1, 1], [], []>} : vector<16x128xf32>, vector<128x128xf32>, vector<16x128xf32> -> vector<16x128xf32>
    %273 = vector.broadcast %17 : vector<1x128xf32> to vector<16x128xf32>
    %274 = arith.addf %272, %273 : vector<16x128xf32>
    %275 = arith.mulf %274, %274 : vector<16x128xf32>
    %276 = arith.mulf %274, %275 : vector<16x128xf32>
    %cst_94 = arith.constant 4.471500e-02 : f32
    %277 = vector.broadcast %cst_94 : f32 to vector<16x128xf32>
    %278 = arith.mulf %277, %276 : vector<16x128xf32>
    %279 = arith.addf %274, %278 : vector<16x128xf32>
    %cst_95 = arith.constant 0.797884583 : f32
    %280 = vector.broadcast %cst_95 : f32 to vector<16x128xf32>
    %281 = arith.mulf %280, %279 : vector<16x128xf32>
    %282 = math.tanh %281 : vector<16x128xf32>
    %cst_96 = arith.constant 1.000000e+00 : f32
    %283 = vector.broadcast %cst_96 : f32 to vector<16x128xf32>
    %284 = arith.addf %283, %282 : vector<16x128xf32>
    %cst_97 = arith.constant 5.000000e-01 : f32
    %285 = vector.broadcast %cst_97 : f32 to vector<16x128xf32>
    %286 = arith.mulf %285, %284 : vector<16x128xf32>
    %287 = arith.mulf %274, %286 : vector<16x128xf32>
    %c0_98 = arith.constant 0 : index
    %c0_99 = arith.constant 0 : index
    %c0_100 = arith.constant 0 : index
    %288 = vector.load %arg7[%c0_98, %c0_99, %c0_100] : memref<2x128x128xf32, #tpu.memory_space<vmem>>, vector<1x128x128xf32>
    %289 = vector.shape_cast %288 : vector<1x128x128xf32> to vector<128x128xf32>
    %cst_101 = arith.constant dense<0.000000e+00> : vector<16x128xf32>
    %290 = tpu.matmul %287, %289, %cst_101 {dimension_numbers = #tpu.dot_dimension_numbers<[1], [0], [0], [1], [0, 0, 1, 1], [], []>} : vector<16x128xf32>, vector<128x128xf32>, vector<16x128xf32> -> vector<16x128xf32>
    %291 = arith.addf %245, %290 : vector<16x128xf32>
    %292 = vector.broadcast %18 : vector<1x128xf32> to vector<16x128xf32>
    %293 = arith.addf %291, %292 : vector<16x128xf32>
    %c1_102 = arith.constant 1 : index
    %c0_103 = arith.constant 0 : index
    %c0_104 = arith.constant 0 : index
    %294 = vector.load %arg8[%c1_102, %c0_103, %c0_104] : memref<2x8x128xf32, #tpu.memory_space<vmem>>, vector<1x8x128xf32>
    %295 = vector.shape_cast %294 : vector<1x8x128xf32> to vector<8x128xf32>
    %296 = vector.extract_strided_slice %295 {offsets = [0, 0], sizes = [1, 128], strides = [1, 1]} : vector<8x128xf32> to vector<1x128xf32>
    %297 = vector.extract_strided_slice %295 {offsets = [1, 0], sizes = [1, 128], strides = [1, 1]} : vector<8x128xf32> to vector<1x128xf32>
    %298 = vector.extract_strided_slice %295 {offsets = [2, 0], sizes = [1, 128], strides = [1, 1]} : vector<8x128xf32> to vector<1x128xf32>
    %299 = vector.extract_strided_slice %295 {offsets = [3, 0], sizes = [1, 128], strides = [1, 1]} : vector<8x128xf32> to vector<1x128xf32>
    %300 = vector.extract_strided_slice %295 {offsets = [4, 0], sizes = [1, 128], strides = [1, 1]} : vector<8x128xf32> to vector<1x128xf32>
    %301 = vector.extract_strided_slice %295 {offsets = [5, 0], sizes = [1, 128], strides = [1, 1]} : vector<8x128xf32> to vector<1x128xf32>
    %302 = vector.extract_strided_slice %295 {offsets = [6, 0], sizes = [1, 128], strides = [1, 1]} : vector<8x128xf32> to vector<1x128xf32>
    %cst_105 = arith.constant 0.000000e+00 : f32
    %303 = vector.broadcast %cst_105 : f32 to vector<16x128xf32>
    %304 = arith.select %3, %293, %303 : vector<16x128xi1>, vector<16x128xf32>
    %cst_106 = arith.constant dense<0.000000e+00> : vector<16xf32>
    %305 = vector.multi_reduction <add>, %304, %cst_106 [1] : vector<16x128xf32> to vector<16xf32>
    %306 = vector.shape_cast %305 : vector<16xf32> to vector<16x1xf32>
    %cst_107 = arith.constant 3.125000e-02 : f32
    %307 = vector.broadcast %cst_107 : f32 to vector<16x1xf32>
    %308 = arith.mulf %306, %307 : vector<16x1xf32>
    %309 = vector.broadcast %308 : vector<16x1xf32> to vector<16x128xf32>
    %310 = arith.subf %304, %309 : vector<16x128xf32>
    %cst_108 = arith.constant 0.000000e+00 : f32
    %311 = vector.broadcast %cst_108 : f32 to vector<16x128xf32>
    %312 = arith.select %3, %310, %311 : vector<16x128xi1>, vector<16x128xf32>
    %313 = arith.mulf %312, %312 : vector<16x128xf32>
    %cst_109 = arith.constant dense<0.000000e+00> : vector<16xf32>
    %314 = vector.multi_reduction <add>, %313, %cst_109 [1] : vector<16x128xf32> to vector<16xf32>
    %315 = vector.shape_cast %314 : vector<16xf32> to vector<16x1xf32>
    %cst_110 = arith.constant 3.125000e-02 : f32
    %316 = vector.broadcast %cst_110 : f32 to vector<16x1xf32>
    %317 = arith.mulf %315, %316 : vector<16x1xf32>
    %cst_111 = arith.constant 9.99999974E-6 : f32
    %318 = vector.broadcast %cst_111 : f32 to vector<16x1xf32>
    %319 = arith.addf %317, %318 : vector<16x1xf32>
    %320 = math.rsqrt %319 : vector<16x1xf32>
    %321 = vector.broadcast %320 : vector<16x1xf32> to vector<16x128xf32>
    %322 = arith.mulf %312, %321 : vector<16x128xf32>
    %323 = vector.broadcast %296 : vector<1x128xf32> to vector<16x128xf32>
    %324 = arith.mulf %322, %323 : vector<16x128xf32>
    %325 = vector.broadcast %297 : vector<1x128xf32> to vector<16x128xf32>
    %326 = arith.addf %324, %325 : vector<16x128xf32>
    %cst_112 = arith.constant 1.000000e+00 : f32
    %327 = vector.broadcast %cst_112 : f32 to vector<16x128xf32>
    %328 = arith.select %5, %327, %326 : vector<16x128xi1>, vector<16x128xf32>
    %c1_113 = arith.constant 1 : index
    %c0_114 = arith.constant 0 : index
    %c0_115 = arith.constant 0 : index
    %329 = vector.load %arg4[%c1_113, %c0_114, %c0_115] : memref<2x128x896xf32, #tpu.memory_space<vmem>>, vector<1x128x896xf32>
    %330 = vector.shape_cast %329 : vector<1x128x896xf32> to vector<128x896xf32>
    %cst_116 = arith.constant dense<0.000000e+00> : vector<16x896xf32>
    %331 = tpu.matmul %328, %330, %cst_116 {dimension_numbers = #tpu.dot_dimension_numbers<[1], [0], [0], [1], [0, 0, 1, 1], [], []>} : vector<16x128xf32>, vector<128x896xf32>, vector<16x896xf32> -> vector<16x896xf32>
    %332 = vector.extract_strided_slice %331 {offsets = [0, 768], sizes = [16, 128], strides = [1, 1]} : vector<16x896xf32> to vector<16x128xf32>
    %cst_117 = arith.constant 0.000000e+00 : f32
    %333 = vector.broadcast %cst_117 : f32 to vector<16x128xf32>
    %334 = arith.minimumf %332, %333 : vector<16x128xf32>
    %335 = math.absf %332 : vector<16x128xf32>
    %cst_118 = arith.constant 0.000000e+00 : f32
    %336 = vector.broadcast %cst_118 : f32 to vector<16x128xf32>
    %337 = arith.subf %336, %335 : vector<16x128xf32>
    %338 = math.exp %337 : vector<16x128xf32>
    %cst_119 = arith.constant 1.000000e+00 : f32
    %339 = vector.broadcast %cst_119 : f32 to vector<16x128xf32>
    %340 = arith.addf %339, %338 : vector<16x128xf32>
    %341 = math.log %340 : vector<16x128xf32>
    %342 = arith.subf %334, %341 : vector<16x128xf32>
    %c0_120 = arith.constant 0 : index
    %c0_121 = arith.constant 0 : index
    %c0_122 = arith.constant 0 : index
    %343 = vector.load %arg1[%c0_120, %c0_121, %c0_122] : memref<2x8x1xf32, #tpu.memory_space<vmem>>, vector<1x8x1xf32>
    %344 = vector.shape_cast %343 : vector<1x8x1xf32> to vector<8x1xf32>
    %c0_123 = arith.constant 0 : index
    %c0_124 = arith.constant 0 : index
    %c0_125 = arith.constant 0 : index
    %345 = vector.load %arg2[%c0_123, %c0_124, %c0_125] : memref<2x1x8xf32, #tpu.memory_space<vmem>>, vector<1x1x8xf32>
    %346 = vector.shape_cast %345 : vector<1x1x8xf32> to vector<1x8xf32>
    %347 = vector.broadcast %344 : vector<8x1xf32> to vector<8x8xf32>
    %348 = vector.broadcast %346 : vector<1x8xf32> to vector<8x8xf32>
    %349 = arith.subf %347, %348 : vector<8x8xf32>
    %cst_126 = arith.constant 0.000000e+00 : f32
    %350 = vector.broadcast %cst_126 : f32 to vector<8x8xf32>
    %351 = arith.maximumf %349, %350 : vector<8x8xf32>
    %cst_127 = arith.constant 0.000000e+00 : f32
    %352 = vector.broadcast %cst_127 : f32 to vector<8x128xf32>
    %353 = vector.extract_strided_slice %331 {offsets = [0, 0], sizes = [8, 128], strides = [1, 1]} : vector<16x896xf32> to vector<8x128xf32>
    %354 = vector.extract_strided_slice %331 {offsets = [0, 256], sizes = [8, 128], strides = [1, 1]} : vector<16x896xf32> to vector<8x128xf32>
    %355 = vector.extract_strided_slice %331 {offsets = [0, 512], sizes = [8, 128], strides = [1, 1]} : vector<16x896xf32> to vector<8x128xf32>
    %356 = vector.extract_strided_slice %342 {offsets = [0, 0], sizes = [8, 1], strides = [1, 1]} : vector<16x128xf32> to vector<8x1xf32>
    %cst_128 = arith.constant dense<0.000000e+00> : vector<8x8xf32>
    %357 = tpu.matmul %353, %354, %cst_128 {dimension_numbers = #tpu.dot_dimension_numbers<[1], [1], [0], [0], [0, 0, 1, 0], [], []>} : vector<8x128xf32>, vector<8x128xf32>, vector<8x8xf32> -> vector<8x8xf32>
    %cst_129 = arith.constant 2.500000e-01 : f32
    %358 = vector.broadcast %cst_129 : f32 to vector<8x8xf32>
    %359 = arith.mulf %357, %358 : vector<8x8xf32>
    %360 = vector.broadcast %356 : vector<8x1xf32> to vector<8x8xf32>
    %361 = arith.mulf %351, %360 : vector<8x8xf32>
    %cst_130 = arith.constant -1.000000e+30 : f32
    %362 = vector.broadcast %cst_130 : f32 to vector<8x8xf32>
    %363 = arith.select %8, %361, %362 : vector<8x8xi1>, vector<8x8xf32>
    %364 = math.exp %363 : vector<8x8xf32>
    %365 = arith.mulf %359, %364 : vector<8x8xf32>
    %cst_131 = arith.constant dense<0.000000e+00> : vector<8x128xf32>
    %366 = tpu.matmul %365, %355, %cst_131 {dimension_numbers = #tpu.dot_dimension_numbers<[1], [0], [0], [1], [0, 0, 1, 1], [], []>} : vector<8x8xf32>, vector<8x128xf32>, vector<8x128xf32> -> vector<8x128xf32>
    %cst_132 = arith.constant dense<0.000000e+00> : vector<8xf32>
    %367 = vector.multi_reduction <add>, %366, %cst_132 [1] : vector<8x128xf32> to vector<8xf32>
    %368 = vector.shape_cast %367 : vector<8xf32> to vector<8x1xf32>
    %cst_133 = arith.constant 6.250000e-02 : f32
    %369 = vector.broadcast %cst_133 : f32 to vector<8x1xf32>
    %370 = arith.mulf %368, %369 : vector<8x1xf32>
    %371 = arith.mulf %366, %366 : vector<8x128xf32>
    %cst_134 = arith.constant dense<0.000000e+00> : vector<8xf32>
    %372 = vector.multi_reduction <add>, %371, %cst_134 [1] : vector<8x128xf32> to vector<8xf32>
    %373 = vector.shape_cast %372 : vector<8xf32> to vector<8x1xf32>
    %cst_135 = arith.constant 6.250000e-02 : f32
    %374 = vector.broadcast %cst_135 : f32 to vector<8x1xf32>
    %375 = arith.mulf %373, %374 : vector<8x1xf32>
    %376 = arith.mulf %370, %370 : vector<8x1xf32>
    %377 = arith.subf %375, %376 : vector<8x1xf32>
    %378 = vector.broadcast %370 : vector<8x1xf32> to vector<8x128xf32>
    %379 = arith.subf %366, %378 : vector<8x128xf32>
    %cst_136 = arith.constant 9.99999974E-6 : f32
    %380 = vector.broadcast %cst_136 : f32 to vector<8x1xf32>
    %381 = arith.addf %377, %380 : vector<8x1xf32>
    %382 = math.rsqrt %381 : vector<8x1xf32>
    %383 = vector.broadcast %382 : vector<8x1xf32> to vector<8x128xf32>
    %384 = arith.mulf %379, %383 : vector<8x128xf32>
    %c0_i32_137 = arith.constant 0 : i32
    %385 = vector.broadcast %c0_i32_137 : i32 to vector<8x128xi32>
    %386 = arith.cmpi sge, %1, %385 : vector<8x128xi32>
    %c16_i32_138 = arith.constant 16 : i32
    %387 = vector.broadcast %c16_i32_138 : i32 to vector<8x128xi32>
    %388 = arith.cmpi slt, %1, %387 : vector<8x128xi32>
    %389 = arith.andi %386, %388 : vector<8x128xi1>
    %cst_139 = arith.constant 0.000000e+00 : f32
    %390 = vector.broadcast %cst_139 : f32 to vector<8x128xf32>
    %391 = arith.select %389, %384, %390 : vector<8x128xi1>, vector<8x128xf32>
    %392 = arith.addf %352, %391 : vector<8x128xf32>
    %393 = vector.extract_strided_slice %331 {offsets = [0, 128], sizes = [8, 128], strides = [1, 1]} : vector<16x896xf32> to vector<8x128xf32>
    %394 = vector.extract_strided_slice %331 {offsets = [0, 384], sizes = [8, 128], strides = [1, 1]} : vector<16x896xf32> to vector<8x128xf32>
    %395 = vector.extract_strided_slice %331 {offsets = [0, 640], sizes = [8, 128], strides = [1, 1]} : vector<16x896xf32> to vector<8x128xf32>
    %396 = vector.extract_strided_slice %342 {offsets = [0, 1], sizes = [8, 1], strides = [1, 1]} : vector<16x128xf32> to vector<8x1xf32>
    %cst_140 = arith.constant dense<0.000000e+00> : vector<8x8xf32>
    %397 = tpu.matmul %393, %394, %cst_140 {dimension_numbers = #tpu.dot_dimension_numbers<[1], [1], [0], [0], [0, 0, 1, 0], [], []>} : vector<8x128xf32>, vector<8x128xf32>, vector<8x8xf32> -> vector<8x8xf32>
    %cst_141 = arith.constant 2.500000e-01 : f32
    %398 = vector.broadcast %cst_141 : f32 to vector<8x8xf32>
    %399 = arith.mulf %397, %398 : vector<8x8xf32>
    %400 = vector.broadcast %396 : vector<8x1xf32> to vector<8x8xf32>
    %401 = arith.mulf %351, %400 : vector<8x8xf32>
    %cst_142 = arith.constant -1.000000e+30 : f32
    %402 = vector.broadcast %cst_142 : f32 to vector<8x8xf32>
    %403 = arith.select %8, %401, %402 : vector<8x8xi1>, vector<8x8xf32>
    %404 = math.exp %403 : vector<8x8xf32>
    %405 = arith.mulf %399, %404 : vector<8x8xf32>
    %cst_143 = arith.constant dense<0.000000e+00> : vector<8x128xf32>
    %406 = tpu.matmul %405, %395, %cst_143 {dimension_numbers = #tpu.dot_dimension_numbers<[1], [0], [0], [1], [0, 0, 1, 1], [], []>} : vector<8x8xf32>, vector<8x128xf32>, vector<8x128xf32> -> vector<8x128xf32>
    %cst_144 = arith.constant dense<0.000000e+00> : vector<8xf32>
    %407 = vector.multi_reduction <add>, %406, %cst_144 [1] : vector<8x128xf32> to vector<8xf32>
    %408 = vector.shape_cast %407 : vector<8xf32> to vector<8x1xf32>
    %cst_145 = arith.constant 6.250000e-02 : f32
    %409 = vector.broadcast %cst_145 : f32 to vector<8x1xf32>
    %410 = arith.mulf %408, %409 : vector<8x1xf32>
    %411 = arith.mulf %406, %406 : vector<8x128xf32>
    %cst_146 = arith.constant dense<0.000000e+00> : vector<8xf32>
    %412 = vector.multi_reduction <add>, %411, %cst_146 [1] : vector<8x128xf32> to vector<8xf32>
    %413 = vector.shape_cast %412 : vector<8xf32> to vector<8x1xf32>
    %cst_147 = arith.constant 6.250000e-02 : f32
    %414 = vector.broadcast %cst_147 : f32 to vector<8x1xf32>
    %415 = arith.mulf %413, %414 : vector<8x1xf32>
    %416 = arith.mulf %410, %410 : vector<8x1xf32>
    %417 = arith.subf %415, %416 : vector<8x1xf32>
    %418 = vector.broadcast %410 : vector<8x1xf32> to vector<8x128xf32>
    %419 = arith.subf %406, %418 : vector<8x128xf32>
    %cst_148 = arith.constant 9.99999974E-6 : f32
    %420 = vector.broadcast %cst_148 : f32 to vector<8x1xf32>
    %421 = arith.addf %417, %420 : vector<8x1xf32>
    %422 = math.rsqrt %421 : vector<8x1xf32>
    %423 = vector.broadcast %422 : vector<8x1xf32> to vector<8x128xf32>
    %424 = arith.mulf %419, %423 : vector<8x128xf32>
    %c16_i32_149 = arith.constant 16 : i32
    %425 = vector.broadcast %c16_i32_149 : i32 to vector<8x128xi32>
    %426 = arith.cmpi sge, %1, %425 : vector<8x128xi32>
    %c32_i32_150 = arith.constant 32 : i32
    %427 = vector.broadcast %c32_i32_150 : i32 to vector<8x128xi32>
    %428 = arith.cmpi slt, %1, %427 : vector<8x128xi32>
    %429 = arith.andi %426, %428 : vector<8x128xi1>
    %cst_151 = arith.constant 0.000000e+00 : f32
    %430 = vector.broadcast %cst_151 : f32 to vector<8x128xf32>
    %431 = arith.select %429, %424, %430 : vector<8x128xi1>, vector<8x128xf32>
    %432 = arith.addf %392, %431 : vector<8x128xf32>
    %c1_152 = arith.constant 1 : index
    %c0_153 = arith.constant 0 : index
    %c0_154 = arith.constant 0 : index
    %433 = vector.load %arg1[%c1_152, %c0_153, %c0_154] : memref<2x8x1xf32, #tpu.memory_space<vmem>>, vector<1x8x1xf32>
    %434 = vector.shape_cast %433 : vector<1x8x1xf32> to vector<8x1xf32>
    %c1_155 = arith.constant 1 : index
    %c0_156 = arith.constant 0 : index
    %c0_157 = arith.constant 0 : index
    %435 = vector.load %arg2[%c1_155, %c0_156, %c0_157] : memref<2x1x8xf32, #tpu.memory_space<vmem>>, vector<1x1x8xf32>
    %436 = vector.shape_cast %435 : vector<1x1x8xf32> to vector<1x8xf32>
    %437 = vector.broadcast %434 : vector<8x1xf32> to vector<8x8xf32>
    %438 = vector.broadcast %436 : vector<1x8xf32> to vector<8x8xf32>
    %439 = arith.subf %437, %438 : vector<8x8xf32>
    %cst_158 = arith.constant 0.000000e+00 : f32
    %440 = vector.broadcast %cst_158 : f32 to vector<8x8xf32>
    %441 = arith.maximumf %439, %440 : vector<8x8xf32>
    %cst_159 = arith.constant 0.000000e+00 : f32
    %442 = vector.broadcast %cst_159 : f32 to vector<8x128xf32>
    %443 = vector.extract_strided_slice %331 {offsets = [8, 0], sizes = [8, 128], strides = [1, 1]} : vector<16x896xf32> to vector<8x128xf32>
    %444 = vector.extract_strided_slice %331 {offsets = [8, 256], sizes = [8, 128], strides = [1, 1]} : vector<16x896xf32> to vector<8x128xf32>
    %445 = vector.extract_strided_slice %331 {offsets = [8, 512], sizes = [8, 128], strides = [1, 1]} : vector<16x896xf32> to vector<8x128xf32>
    %446 = vector.extract_strided_slice %342 {offsets = [8, 0], sizes = [8, 1], strides = [1, 1]} : vector<16x128xf32> to vector<8x1xf32>
    %cst_160 = arith.constant dense<0.000000e+00> : vector<8x8xf32>
    %447 = tpu.matmul %443, %444, %cst_160 {dimension_numbers = #tpu.dot_dimension_numbers<[1], [1], [0], [0], [0, 0, 1, 0], [], []>} : vector<8x128xf32>, vector<8x128xf32>, vector<8x8xf32> -> vector<8x8xf32>
    %cst_161 = arith.constant 2.500000e-01 : f32
    %448 = vector.broadcast %cst_161 : f32 to vector<8x8xf32>
    %449 = arith.mulf %447, %448 : vector<8x8xf32>
    %450 = vector.broadcast %446 : vector<8x1xf32> to vector<8x8xf32>
    %451 = arith.mulf %441, %450 : vector<8x8xf32>
    %cst_162 = arith.constant -1.000000e+30 : f32
    %452 = vector.broadcast %cst_162 : f32 to vector<8x8xf32>
    %453 = arith.select %8, %451, %452 : vector<8x8xi1>, vector<8x8xf32>
    %454 = math.exp %453 : vector<8x8xf32>
    %455 = arith.mulf %449, %454 : vector<8x8xf32>
    %cst_163 = arith.constant dense<0.000000e+00> : vector<8x128xf32>
    %456 = tpu.matmul %455, %445, %cst_163 {dimension_numbers = #tpu.dot_dimension_numbers<[1], [0], [0], [1], [0, 0, 1, 1], [], []>} : vector<8x8xf32>, vector<8x128xf32>, vector<8x128xf32> -> vector<8x128xf32>
    %cst_164 = arith.constant dense<0.000000e+00> : vector<8xf32>
    %457 = vector.multi_reduction <add>, %456, %cst_164 [1] : vector<8x128xf32> to vector<8xf32>
    %458 = vector.shape_cast %457 : vector<8xf32> to vector<8x1xf32>
    %cst_165 = arith.constant 6.250000e-02 : f32
    %459 = vector.broadcast %cst_165 : f32 to vector<8x1xf32>
    %460 = arith.mulf %458, %459 : vector<8x1xf32>
    %461 = arith.mulf %456, %456 : vector<8x128xf32>
    %cst_166 = arith.constant dense<0.000000e+00> : vector<8xf32>
    %462 = vector.multi_reduction <add>, %461, %cst_166 [1] : vector<8x128xf32> to vector<8xf32>
    %463 = vector.shape_cast %462 : vector<8xf32> to vector<8x1xf32>
    %cst_167 = arith.constant 6.250000e-02 : f32
    %464 = vector.broadcast %cst_167 : f32 to vector<8x1xf32>
    %465 = arith.mulf %463, %464 : vector<8x1xf32>
    %466 = arith.mulf %460, %460 : vector<8x1xf32>
    %467 = arith.subf %465, %466 : vector<8x1xf32>
    %468 = vector.broadcast %460 : vector<8x1xf32> to vector<8x128xf32>
    %469 = arith.subf %456, %468 : vector<8x128xf32>
    %cst_168 = arith.constant 9.99999974E-6 : f32
    %470 = vector.broadcast %cst_168 : f32 to vector<8x1xf32>
    %471 = arith.addf %467, %470 : vector<8x1xf32>
    %472 = math.rsqrt %471 : vector<8x1xf32>
    %473 = vector.broadcast %472 : vector<8x1xf32> to vector<8x128xf32>
    %474 = arith.mulf %469, %473 : vector<8x128xf32>
    %c0_i32_169 = arith.constant 0 : i32
    %475 = vector.broadcast %c0_i32_169 : i32 to vector<8x128xi32>
    %476 = arith.cmpi sge, %1, %475 : vector<8x128xi32>
    %c16_i32_170 = arith.constant 16 : i32
    %477 = vector.broadcast %c16_i32_170 : i32 to vector<8x128xi32>
    %478 = arith.cmpi slt, %1, %477 : vector<8x128xi32>
    %479 = arith.andi %476, %478 : vector<8x128xi1>
    %cst_171 = arith.constant 0.000000e+00 : f32
    %480 = vector.broadcast %cst_171 : f32 to vector<8x128xf32>
    %481 = arith.select %479, %474, %480 : vector<8x128xi1>, vector<8x128xf32>
    %482 = arith.addf %442, %481 : vector<8x128xf32>
    %483 = vector.extract_strided_slice %331 {offsets = [8, 128], sizes = [8, 128], strides = [1, 1]} : vector<16x896xf32> to vector<8x128xf32>
    %484 = vector.extract_strided_slice %331 {offsets = [8, 384], sizes = [8, 128], strides = [1, 1]} : vector<16x896xf32> to vector<8x128xf32>
    %485 = vector.extract_strided_slice %331 {offsets = [8, 640], sizes = [8, 128], strides = [1, 1]} : vector<16x896xf32> to vector<8x128xf32>
    %486 = vector.extract_strided_slice %342 {offsets = [8, 1], sizes = [8, 1], strides = [1, 1]} : vector<16x128xf32> to vector<8x1xf32>
    %cst_172 = arith.constant dense<0.000000e+00> : vector<8x8xf32>
    %487 = tpu.matmul %483, %484, %cst_172 {dimension_numbers = #tpu.dot_dimension_numbers<[1], [1], [0], [0], [0, 0, 1, 0], [], []>} : vector<8x128xf32>, vector<8x128xf32>, vector<8x8xf32> -> vector<8x8xf32>
    %cst_173 = arith.constant 2.500000e-01 : f32
    %488 = vector.broadcast %cst_173 : f32 to vector<8x8xf32>
    %489 = arith.mulf %487, %488 : vector<8x8xf32>
    %490 = vector.broadcast %486 : vector<8x1xf32> to vector<8x8xf32>
    %491 = arith.mulf %441, %490 : vector<8x8xf32>
    %cst_174 = arith.constant -1.000000e+30 : f32
    %492 = vector.broadcast %cst_174 : f32 to vector<8x8xf32>
    %493 = arith.select %8, %491, %492 : vector<8x8xi1>, vector<8x8xf32>
    %494 = math.exp %493 : vector<8x8xf32>
    %495 = arith.mulf %489, %494 : vector<8x8xf32>
    %cst_175 = arith.constant dense<0.000000e+00> : vector<8x128xf32>
    %496 = tpu.matmul %495, %485, %cst_175 {dimension_numbers = #tpu.dot_dimension_numbers<[1], [0], [0], [1], [0, 0, 1, 1], [], []>} : vector<8x8xf32>, vector<8x128xf32>, vector<8x128xf32> -> vector<8x128xf32>
    %cst_176 = arith.constant dense<0.000000e+00> : vector<8xf32>
    %497 = vector.multi_reduction <add>, %496, %cst_176 [1] : vector<8x128xf32> to vector<8xf32>
    %498 = vector.shape_cast %497 : vector<8xf32> to vector<8x1xf32>
    %cst_177 = arith.constant 6.250000e-02 : f32
    %499 = vector.broadcast %cst_177 : f32 to vector<8x1xf32>
    %500 = arith.mulf %498, %499 : vector<8x1xf32>
    %501 = arith.mulf %496, %496 : vector<8x128xf32>
    %cst_178 = arith.constant dense<0.000000e+00> : vector<8xf32>
    %502 = vector.multi_reduction <add>, %501, %cst_178 [1] : vector<8x128xf32> to vector<8xf32>
    %503 = vector.shape_cast %502 : vector<8xf32> to vector<8x1xf32>
    %cst_179 = arith.constant 6.250000e-02 : f32
    %504 = vector.broadcast %cst_179 : f32 to vector<8x1xf32>
    %505 = arith.mulf %503, %504 : vector<8x1xf32>
    %506 = arith.mulf %500, %500 : vector<8x1xf32>
    %507 = arith.subf %505, %506 : vector<8x1xf32>
    %508 = vector.broadcast %500 : vector<8x1xf32> to vector<8x128xf32>
    %509 = arith.subf %496, %508 : vector<8x128xf32>
    %cst_180 = arith.constant 9.99999974E-6 : f32
    %510 = vector.broadcast %cst_180 : f32 to vector<8x1xf32>
    %511 = arith.addf %507, %510 : vector<8x1xf32>
    %512 = math.rsqrt %511 : vector<8x1xf32>
    %513 = vector.broadcast %512 : vector<8x1xf32> to vector<8x128xf32>
    %514 = arith.mulf %509, %513 : vector<8x128xf32>
    %c16_i32_181 = arith.constant 16 : i32
    %515 = vector.broadcast %c16_i32_181 : i32 to vector<8x128xi32>
    %516 = arith.cmpi sge, %1, %515 : vector<8x128xi32>
    %c32_i32_182 = arith.constant 32 : i32
    %517 = vector.broadcast %c32_i32_182 : i32 to vector<8x128xi32>
    %518 = arith.cmpi slt, %1, %517 : vector<8x128xi32>
    %519 = arith.andi %516, %518 : vector<8x128xi1>
    %cst_183 = arith.constant 0.000000e+00 : f32
    %520 = vector.broadcast %cst_183 : f32 to vector<8x128xf32>
    %521 = arith.select %519, %514, %520 : vector<8x128xi1>, vector<8x128xf32>
    %522 = arith.addf %482, %521 : vector<8x128xf32>
    %523 = tpu.concatenate %432, %522 in 0 : vector<8x128xf32>, vector<8x128xf32> -> vector<16x128xf32>
    %c1_184 = arith.constant 1 : index
    %c0_185 = arith.constant 0 : index
    %c0_186 = arith.constant 0 : index
    %524 = vector.load %arg5[%c1_184, %c0_185, %c0_186] : memref<2x128x128xf32, #tpu.memory_space<vmem>>, vector<1x128x128xf32>
    %525 = vector.shape_cast %524 : vector<1x128x128xf32> to vector<128x128xf32>
    %cst_187 = arith.constant dense<0.000000e+00> : vector<16x128xf32>
    %526 = tpu.matmul %523, %525, %cst_187 {dimension_numbers = #tpu.dot_dimension_numbers<[1], [0], [0], [1], [0, 0, 1, 1], [], []>} : vector<16x128xf32>, vector<128x128xf32>, vector<16x128xf32> -> vector<16x128xf32>
    %527 = arith.addf %293, %526 : vector<16x128xf32>
    %528 = vector.broadcast %298 : vector<1x128xf32> to vector<16x128xf32>
    %529 = arith.addf %527, %528 : vector<16x128xf32>
    %cst_188 = arith.constant 0.000000e+00 : f32
    %530 = vector.broadcast %cst_188 : f32 to vector<16x128xf32>
    %531 = arith.select %3, %529, %530 : vector<16x128xi1>, vector<16x128xf32>
    %cst_189 = arith.constant dense<0.000000e+00> : vector<16xf32>
    %532 = vector.multi_reduction <add>, %531, %cst_189 [1] : vector<16x128xf32> to vector<16xf32>
    %533 = vector.shape_cast %532 : vector<16xf32> to vector<16x1xf32>
    %cst_190 = arith.constant 3.125000e-02 : f32
    %534 = vector.broadcast %cst_190 : f32 to vector<16x1xf32>
    %535 = arith.mulf %533, %534 : vector<16x1xf32>
    %536 = vector.broadcast %535 : vector<16x1xf32> to vector<16x128xf32>
    %537 = arith.subf %531, %536 : vector<16x128xf32>
    %cst_191 = arith.constant 0.000000e+00 : f32
    %538 = vector.broadcast %cst_191 : f32 to vector<16x128xf32>
    %539 = arith.select %3, %537, %538 : vector<16x128xi1>, vector<16x128xf32>
    %540 = arith.mulf %539, %539 : vector<16x128xf32>
    %cst_192 = arith.constant dense<0.000000e+00> : vector<16xf32>
    %541 = vector.multi_reduction <add>, %540, %cst_192 [1] : vector<16x128xf32> to vector<16xf32>
    %542 = vector.shape_cast %541 : vector<16xf32> to vector<16x1xf32>
    %cst_193 = arith.constant 3.125000e-02 : f32
    %543 = vector.broadcast %cst_193 : f32 to vector<16x1xf32>
    %544 = arith.mulf %542, %543 : vector<16x1xf32>
    %cst_194 = arith.constant 9.99999974E-6 : f32
    %545 = vector.broadcast %cst_194 : f32 to vector<16x1xf32>
    %546 = arith.addf %544, %545 : vector<16x1xf32>
    %547 = math.rsqrt %546 : vector<16x1xf32>
    %548 = vector.broadcast %547 : vector<16x1xf32> to vector<16x128xf32>
    %549 = arith.mulf %539, %548 : vector<16x128xf32>
    %550 = vector.broadcast %299 : vector<1x128xf32> to vector<16x128xf32>
    %551 = arith.mulf %549, %550 : vector<16x128xf32>
    %552 = vector.broadcast %300 : vector<1x128xf32> to vector<16x128xf32>
    %553 = arith.addf %551, %552 : vector<16x128xf32>
    %c1_195 = arith.constant 1 : index
    %c0_196 = arith.constant 0 : index
    %c0_197 = arith.constant 0 : index
    %554 = vector.load %arg6[%c1_195, %c0_196, %c0_197] : memref<2x128x128xf32, #tpu.memory_space<vmem>>, vector<1x128x128xf32>
    %555 = vector.shape_cast %554 : vector<1x128x128xf32> to vector<128x128xf32>
    %cst_198 = arith.constant dense<0.000000e+00> : vector<16x128xf32>
    %556 = tpu.matmul %553, %555, %cst_198 {dimension_numbers = #tpu.dot_dimension_numbers<[1], [0], [0], [1], [0, 0, 1, 1], [], []>} : vector<16x128xf32>, vector<128x128xf32>, vector<16x128xf32> -> vector<16x128xf32>
    %557 = vector.broadcast %301 : vector<1x128xf32> to vector<16x128xf32>
    %558 = arith.addf %556, %557 : vector<16x128xf32>
    %559 = arith.mulf %558, %558 : vector<16x128xf32>
    %560 = arith.mulf %558, %559 : vector<16x128xf32>
    %cst_199 = arith.constant 4.471500e-02 : f32
    %561 = vector.broadcast %cst_199 : f32 to vector<16x128xf32>
    %562 = arith.mulf %561, %560 : vector<16x128xf32>
    %563 = arith.addf %558, %562 : vector<16x128xf32>
    %cst_200 = arith.constant 0.797884583 : f32
    %564 = vector.broadcast %cst_200 : f32 to vector<16x128xf32>
    %565 = arith.mulf %564, %563 : vector<16x128xf32>
    %566 = math.tanh %565 : vector<16x128xf32>
    %cst_201 = arith.constant 1.000000e+00 : f32
    %567 = vector.broadcast %cst_201 : f32 to vector<16x128xf32>
    %568 = arith.addf %567, %566 : vector<16x128xf32>
    %cst_202 = arith.constant 5.000000e-01 : f32
    %569 = vector.broadcast %cst_202 : f32 to vector<16x128xf32>
    %570 = arith.mulf %569, %568 : vector<16x128xf32>
    %571 = arith.mulf %558, %570 : vector<16x128xf32>
    %c1_203 = arith.constant 1 : index
    %c0_204 = arith.constant 0 : index
    %c0_205 = arith.constant 0 : index
    %572 = vector.load %arg7[%c1_203, %c0_204, %c0_205] : memref<2x128x128xf32, #tpu.memory_space<vmem>>, vector<1x128x128xf32>
    %573 = vector.shape_cast %572 : vector<1x128x128xf32> to vector<128x128xf32>
    %cst_206 = arith.constant dense<0.000000e+00> : vector<16x128xf32>
    %574 = tpu.matmul %571, %573, %cst_206 {dimension_numbers = #tpu.dot_dimension_numbers<[1], [0], [0], [1], [0, 0, 1, 1], [], []>} : vector<16x128xf32>, vector<128x128xf32>, vector<16x128xf32> -> vector<16x128xf32>
    %575 = arith.addf %529, %574 : vector<16x128xf32>
    %576 = vector.broadcast %302 : vector<1x128xf32> to vector<16x128xf32>
    %577 = arith.addf %575, %576 : vector<16x128xf32>
    %c0_207 = arith.constant 0 : index
    %c0_208 = arith.constant 0 : index
    %578 = vector.load %arg10[%c0_207, %c0_208] : memref<8x128xf32, #tpu.memory_space<vmem>>, vector<8x128xf32>
    %579 = vector.extract_strided_slice %578 {offsets = [0, 0], sizes = [1, 128], strides = [1, 1]} : vector<8x128xf32> to vector<1x128xf32>
    %580 = vector.extract_strided_slice %578 {offsets = [1, 0], sizes = [1, 128], strides = [1, 1]} : vector<8x128xf32> to vector<1x128xf32>
    %cst_209 = arith.constant 0.000000e+00 : f32
    %581 = vector.broadcast %cst_209 : f32 to vector<16x128xf32>
    %582 = arith.select %3, %577, %581 : vector<16x128xi1>, vector<16x128xf32>
    %cst_210 = arith.constant dense<0.000000e+00> : vector<16xf32>
    %583 = vector.multi_reduction <add>, %582, %cst_210 [1] : vector<16x128xf32> to vector<16xf32>
    %584 = vector.shape_cast %583 : vector<16xf32> to vector<16x1xf32>
    %cst_211 = arith.constant 3.125000e-02 : f32
    %585 = vector.broadcast %cst_211 : f32 to vector<16x1xf32>
    %586 = arith.mulf %584, %585 : vector<16x1xf32>
    %587 = vector.broadcast %586 : vector<16x1xf32> to vector<16x128xf32>
    %588 = arith.subf %582, %587 : vector<16x128xf32>
    %cst_212 = arith.constant 0.000000e+00 : f32
    %589 = vector.broadcast %cst_212 : f32 to vector<16x128xf32>
    %590 = arith.select %3, %588, %589 : vector<16x128xi1>, vector<16x128xf32>
    %591 = arith.mulf %590, %590 : vector<16x128xf32>
    %cst_213 = arith.constant dense<0.000000e+00> : vector<16xf32>
    %592 = vector.multi_reduction <add>, %591, %cst_213 [1] : vector<16x128xf32> to vector<16xf32>
    %593 = vector.shape_cast %592 : vector<16xf32> to vector<16x1xf32>
    %cst_214 = arith.constant 3.125000e-02 : f32
    %594 = vector.broadcast %cst_214 : f32 to vector<16x1xf32>
    %595 = arith.mulf %593, %594 : vector<16x1xf32>
    %cst_215 = arith.constant 9.99999974E-6 : f32
    %596 = vector.broadcast %cst_215 : f32 to vector<16x1xf32>
    %597 = arith.addf %595, %596 : vector<16x1xf32>
    %598 = math.rsqrt %597 : vector<16x1xf32>
    %599 = vector.broadcast %598 : vector<16x1xf32> to vector<16x128xf32>
    %600 = arith.mulf %590, %599 : vector<16x128xf32>
    %601 = vector.broadcast %579 : vector<1x128xf32> to vector<16x128xf32>
    %602 = arith.mulf %600, %601 : vector<16x128xf32>
    %603 = vector.broadcast %580 : vector<1x128xf32> to vector<16x128xf32>
    %604 = arith.addf %602, %603 : vector<16x128xf32>
    %c0_216 = arith.constant 0 : index
    %c0_217 = arith.constant 0 : index
    %605 = vector.load %arg9[%c0_216, %c0_217] : memref<128x128xf32, #tpu.memory_space<vmem>>, vector<128x128xf32>
    %cst_218 = arith.constant dense<0.000000e+00> : vector<16x128xf32>
    %606 = tpu.matmul %604, %605, %cst_218 {dimension_numbers = #tpu.dot_dimension_numbers<[1], [0], [0], [1], [0, 0, 1, 1], [], []>} : vector<16x128xf32>, vector<128x128xf32>, vector<16x128xf32> -> vector<16x128xf32>
    %607 = vector.extract_strided_slice %578 {offsets = [2, 0], sizes = [1, 128], strides = [1, 1]} : vector<8x128xf32> to vector<1x128xf32>
    %608 = vector.broadcast %607 : vector<1x128xf32> to vector<16x128xf32>
    %609 = arith.addf %606, %608 : vector<16x128xf32>
    %c0_219 = arith.constant 0 : index
    %c0_220 = arith.constant 0 : index
    %610 = vector.load %arg11[%c0_219, %c0_220] : memref<16x128xf32, #tpu.memory_space<vmem>>, vector<16x128xf32>
    tpu.vector_store %arg11[%c0_219, %c0_220], %609 {strides = array<i32>} : memref<16x128xf32, #tpu.memory_space<vmem>>, vector<16x128xf32>,
    %c16_i32_221 = arith.constant 16 : i32
    %611 = vector.broadcast %c16_i32_221 : i32 to vector<16x128xi32>
    %612 = arith.cmpi slt, %0, %611 : vector<16x128xi32>
    %cst_222 = arith.constant -1.000000e+30 : f32
    %613 = vector.broadcast %cst_222 : f32 to vector<16x128xf32>
    %614 = arith.select %612, %609, %613 : vector<16x128xi1>, vector<16x128xf32>
    %cst_223 = arith.constant dense<0xFF800000> : vector<16xf32>
    %615 = vector.multi_reduction <maximumf>, %614, %cst_223 [1] : vector<16x128xf32> to vector<16xf32>
    %616 = vector.shape_cast %615 : vector<16xf32> to vector<16x1xf32>
    %617 = vector.broadcast %616 : vector<16x1xf32> to vector<16x128xf32>
    %618 = arith.subf %614, %617 : vector<16x128xf32>
    %619 = math.exp %618 : vector<16x128xf32>
    %cst_224 = arith.constant dense<0.000000e+00> : vector<16xf32>
    %620 = vector.multi_reduction <add>, %619, %cst_224 [1] : vector<16x128xf32> to vector<16xf32>
    %621 = vector.shape_cast %620 : vector<16xf32> to vector<16x1xf32>
    %622 = math.log %621 : vector<16x1xf32>
    %623 = vector.broadcast %622 : vector<16x1xf32> to vector<16x128xf32>
    %624 = arith.subf %618, %623 : vector<16x128xf32>
    %c0_225 = arith.constant 0 : index
    %c0_226 = arith.constant 0 : index
    %625 = vector.load %arg3[%c0_225, %c0_226] : memref<16x1xi32, #tpu.memory_space<vmem>>, vector<16x1xi32>
    %626 = vector.broadcast %625 : vector<16x1xi32> to vector<16x128xi32>
    %627 = arith.cmpi eq, %0, %626 : vector<16x128xi32>
    %cst_227 = arith.constant 0.000000e+00 : f32
    %628 = vector.broadcast %cst_227 : f32 to vector<16x128xf32>
    %629 = arith.select %627, %624, %628 : vector<16x128xi1>, vector<16x128xf32>
    %cst_228 = arith.constant dense<0.000000e+00> : vector<16xf32>
    %630 = vector.multi_reduction <add>, %629, %cst_228 [1] : vector<16x128xf32> to vector<16xf32>
    %631 = vector.shape_cast %630 : vector<16xf32> to vector<16x1xf32>
    %cst_229 = arith.constant 0.000000e+00 : f32
    %632 = vector.broadcast %cst_229 : f32 to vector<16x1xf32>
    %633 = arith.subf %632, %631 : vector<16x1xf32>
    %c0_i32_230 = arith.constant 0 : i32
    %634 = vector.broadcast %c0_i32_230 : i32 to vector<16x1xi32>
    %635 = arith.cmpi ne, %625, %634 : vector<16x1xi32>
    %636 = arith.extui %635 : vector<16x1xi1> to vector<16x1xi32>
    %637 = arith.sitofp %636 : vector<16x1xi32> to vector<16x1xf32>
    %638 = arith.mulf %633, %637 : vector<16x1xf32>
    %cst_231 = arith.constant dense<0.000000e+00> : vector<1xf32>
    %639 = vector.multi_reduction <add>, %638, %cst_231 [0] : vector<16x1xf32> to vector<1xf32>
    %640 = vector.shape_cast %639 : vector<1xf32> to vector<1x1xf32>
    %cst_232 = arith.constant dense<0.000000e+00> : vector<1xf32>
    %641 = vector.multi_reduction <add>, %637, %cst_232 [0] : vector<16x1xf32> to vector<1xf32>
    %642 = vector.shape_cast %641 : vector<1xf32> to vector<1x1xf32>
    %cst_233 = arith.constant 1.000000e+00 : f32
    %643 = vector.broadcast %cst_233 : f32 to vector<1x1xf32>
    %644 = arith.maximumf %642, %643 : vector<1x1xf32>
    %645 = arith.divf %640, %644 : vector<1x1xf32>
    %c0_234 = arith.constant 0 : index
    %c0_235 = arith.constant 0 : index
    %646 = vector.load %arg12[%c0_234, %c0_235] : memref<1x1xf32, #tpu.memory_space<vmem>>, vector<1x1xf32>
    tpu.vector_store %arg12[%c0_234, %c0_235], %645 {strides = array<i32>} : memref<1x1xf32, #tpu.memory_space<vmem>>, vector<1x1xf32>,
    return
  }
}

</mosaic_0001>

<bundles_post_ra>
// kernel: traj_gpt_forward.1
= control target key start
LH: loop header
LB: loop body
LE: loop exit
PB: predicated region body
PF: predicated region fallthrough
CT: control target
= control target key end

     0   :  { %18 = vsyncpa [#allocation3], 0  ;;  %s2782_s0 = inlined_call_operand.vmem [shape: f32[16,128], index: 0, kind: input, shape index: {}]   ;;  %s2783_s1 = inlined_call_operand.vmem [shape: f32[2,8,1], index: 1, kind: input, shape index: {}]   ;;  %s2784_s2 = inlined_call_operand.vmem [shape: f32[2,1,8], index: 2, kind: input, shape index: {}]   ;;  %s2785_s3 = inlined_call_operand.vmem [shape: s32[16,1], index: 3, kind: input, shape index: {}]   ;;  %s2786_s4 = inlined_call_operand.hbm [shape: f32[2,128,896], index: 4, kind: input, shape index: {}]   ;;  %s2787_s5 = inlined_call_operand.hbm [shape: f32[2,128,128], index: 5, kind: input, shape index: {}]   ;;  %s2788_s6 = inlined_call_operand.hbm [shape: f32[2,128,128], index: 6, kind: input, shape index: {}]   ;;  %s2789_s7 = inlined_call_operand.hbm [shape: f32[2,128,128], index: 7, kind: input, shape index: {}]   ;;  %s2790_s8 = inlined_call_operand.vmem [shape: f32[2,8,128], index: 8, kind: input, shape index: {}]   ;;  %s2791_s9 = inlined_call_operand.vmem [shape: f32[128,128], index: 9, kind: input, shape index: {}]   ;;  %s2792_s10 = inlined_call_operand.vmem [shape: f32[8,128], index: 10, kind: input, shape index: {}]   ;;  %s2793_s11 = inlined_call_operand.vmem [shape: f32[16,128], index: 11, kind: output, shape index: {0}]   ;;  %s2794_s12 = inlined_call_operand.hbm [shape: f32[1,1], index: 12, kind: output, shape index: {1}]  }
   0x1   :  { %19 = vsyncpa [#allocation6], 0 }
   0x2   :  { %20 = vsyncpa [#allocation9], 0  ;;  %s47_s23 = sshll.u32 %s2787_s5, 4  ;;  %s48_s23 = int_to_ptr.hbm [resolvable:$true] %s47_s23 }
   0x3   :  { %21 = vsyncpa [#allocation4], 0  ;;  %s2303_s24 = smov [#allocation5]   ;;  %s34_s28 = sshll.u32 %s2786_s4, 4  ;;  %s35_s28 = int_to_ptr.hbm [resolvable:$true] %s34_s28 }
   0x4   :  { %s49_s25 = sshll.u32 %s2303_s24, 4  ;;  %s2304_s29 = smov 128   ;;  %s50_s25 = int_to_ptr.vmem [resolvable:$true] %s49_s25 }
   0x5   :  { %s2305_s30 = smov 8   ;;  %s2306_s13 = smov [#allocation2]  }
   0x6   :  { %55 = dma.hbm_to_vmem [thread:$0]  %s48_s23, 4096, %s50_s25, [#allocation6], %s2304_s29, %s2304_s29, %s2305_s30  }
   0x7   :  { %s36_s14 = sshll.u32 %s2306_s13, 4  ;;  %s2307_s15 = smov 896   ;;  %s37_s14 = int_to_ptr.vmem [resolvable:$true] %s36_s14 }
   0x8   :  { %s2308_s16 = smov 56   ;;  %s60_s18 = sshll.u32 %s2788_s6, 4  ;;  %s61_s18 = int_to_ptr.hbm [resolvable:$true] %s60_s18 }
   0x9   :  { %42 = dma.hbm_to_vmem [thread:$0]  %s35_s28, 28672, %s37_s14, [#allocation3], %s2307_s15, %s2307_s15, %s2308_s16  }
   0xa   :  { %s2309_s19 = smov [#allocation7]   ;;  %s73_s22 = sshll.u32 %s2789_s7, 4  ;;  %s74_s22 = int_to_ptr.hbm [resolvable:$true] %s73_s22 }
   0xb   :  { %s62_s20 = sshll.u32 %s2309_s19, 4  ;;  %s2310_s23 = smov [#allocation8]   ;;  %s63_s20 = int_to_ptr.vmem [resolvable:$true] %s62_s20 }
   0xc   :  { %68 = dma.hbm_to_vmem [thread:$0]  %s61_s18, 4096, %s63_s20, [#allocation6], %s2304_s29, %s2304_s29, %s2305_s30  }
   0xd   :  { %s75_s24 = sshll.u32 %s2310_s23, 4  ;;  %s76_s24 = int_to_ptr.vmem [resolvable:$true] %s75_s24 }
   0xe   :  { %81 = dma.hbm_to_vmem [thread:$0]  %s74_s22, 4096, %s76_s24, [#allocation9], %s2304_s29, %s2304_s29, %s2305_s30  }
   0xf   :  { %2295 = dma.done.wait [#allocation3], 28672  }
  0x10   :  { %2296 = vsyncadd [#allocation3], 4294938624 }
  0x11   :  { %2297 = dma.done.wait [#allocation6], 8192  }
  0x12   :  { %2298 = vsyncadd [#allocation6], 4294959104 }
  0x13   :  { %2299 = dma.done.wait [#allocation9], 4096  }
  0x14   :  { %2300 = vsyncadd [#allocation9], 4294963200  ;;  %v104_v0 = vlaneseq  ;;  %v112_v2 = vld [vmem:[%s2782_s0 + $0x8] sm:$0xff]  ;;  %v111_v3 = vld [vmem:[%s2782_s0] sm:$0xff]  ;;  %vm500_vm9 = vcmask 64512  }
  0x15   :  { %v271_v6 = vld [vmem:[#allocation2 + $0x348] sm:$0xff]  ;;  %v272_v7 = vld [vmem:[#allocation2 + $0x350] sm:$0xff]  ;;  %v273_v8 = vld [vmem:[#allocation2 + $0x358] sm:$0xff] }
  0x16   :  { %v2393_v1 = vand.u32 127, %v104_v0  ;;  %278 = vmatpush.msra.mxu0 %v271_v6  ;;  %301 = vmatpush.msra.mxu1 %v272_v7  ;;  %v264_v9 = vld [vmem:[#allocation2 + $0x310] sm:$0xff]  ;;  %v265_v10 = vld [vmem:[#allocation2 + $0x318] sm:$0xff]  ;;  %v266_v11 = vld [vmem:[#allocation2 + $0x320] sm:$0xff] }
  0x17   :  { %324 = vmatpush.msra.mxu2 %v273_v8  ;;  %v257_v12 = vld [vmem:[#allocation2 + $0x2d8] sm:$0xff]  ;;  %v258_v13 = vld [vmem:[#allocation2 + $0x2e0] sm:$0xff]  ;;  %v259_v14 = vld [vmem:[#allocation2 + $0x2e8] sm:$0xff] }
  0x18   :  { %vm106_vm0 = vcmp.lt.s32.totalorder %v2393_v1, 32  ;;  %279 = vmatpush.msra.mxu0 %v264_v9  ;;  %302 = vmatpush.msra.mxu1 %v265_v10  ;;  %v250_v15 = vld [vmem:[#allocation2 + $0x2a0] sm:$0xff]  ;;  %v251_v16 = vld [vmem:[#allocation2 + $0x2a8] sm:$0xff]  ;;  %v252_v17 = vld [vmem:[#allocation2 + $0x2b0] sm:$0xff]  ;;  %vm107_vm7 = vcmp.eq.s32.totalorder %v2393_v1, 127  ;;  %vm626_vm14 = vcmp.ge.s32.totalorder %v2393_v1, 16 }
  0x19   :  { %v2404_v4 = vsel %vm106_vm0, %v112_v2, 0.0  ;;  %v2408_v5 = vsel %vm106_vm0, %v111_v3, 0.0  ;;  %325 = vmatpush.msra.mxu2 %v266_v11  ;;  %v243_v18 = vld [vmem:[#allocation2 + $0x268] sm:$0xff]  ;;  %v244_v19 = vld [vmem:[#allocation2 + $0x270] sm:$0xff]  ;;  %v245_v20 = vld [vmem:[#allocation2 + $0x278] sm:$0xff] }
  0x1a   :  { %118 = vadd.xlane.f32.xlu1 %v2404_v4  ;;  %116 = vadd.xlane.f32.xlu0 %v2408_v5  ;;  %v236_v21 = vld [vmem:[#allocation2 + $0x230] sm:$0xff]  ;;  %v237_v22 = vld [vmem:[#allocation2 + $0x238] sm:$0xff]  ;;  %v274_v23 = vld [vmem:[#allocation2 + $0x360] sm:$0xff] }
  0x1b   :  { %280 = vmatpush.msra.mxu0 %v257_v12  ;;  %303 = vmatpush.msra.mxu1 %v258_v13  ;;  %v238_v24 = vld [vmem:[#allocation2 + $0x240] sm:$0xff]  ;;  %v229_v25 = vld [vmem:[#allocation2 + $0x1f8] sm:$0xff]  ;;  %v231_v27 = vld [vmem:[#allocation2 + $0x208] sm:$0xff] }
  0x1c   :  { %326 = vmatpush.msra.mxu2 %v259_v14  ;;  %v230_v26 = vld [vmem:[#allocation2 + $0x200] sm:$0xff]  ;;  %347 = vmatpush.msra.mxu3 %v274_v23  ;;  %v223_v29 = vld [vmem:[#allocation2 + $0x1c8] sm:$0xff]  ;;  %v224_v30 = vld [vmem:[#allocation2 + $0x1d0] sm:$0xff] }
  0x1d   :  { %281 = vmatpush.msra.mxu0 %v250_v15  ;;  %304 = vmatpush.msra.mxu1 %v251_v16  ;;  %v222_v28 = vld [vmem:[#allocation2 + $0x1c0] sm:$0xff]  ;;  %v215_v31 = vld [vmem:[#allocation2 + $0x188] sm:$0xff]  ;;  %v216_v32 = vld [vmem:[#allocation2 + $0x190] sm:$0xff] }
  0x1e   :  { %327 = vmatpush.msra.mxu2 %v252_v17  ;;  %v217_v33 = vld [vmem:[#allocation2 + $0x198] sm:$0xff]  ;;  %v267_v44 = vld [vmem:[#allocation2 + $0x328] sm:$0xff]  ;;  %v208_v45 = vld [vmem:[#allocation2 + $0x150] sm:$0xff] }
  0x1f   :  { %282 = vmatpush.msra.mxu0 %v243_v18  ;;  %305 = vmatpush.msra.mxu1 %v244_v19  ;;  %v209_v46 = vld [vmem:[#allocation2 + $0x158] sm:$0xff]  ;;  %v210_v47 = vld [vmem:[#allocation2 + $0x160] sm:$0xff]  ;;  %v260_v48 = vld [vmem:[#allocation2 + $0x2f0] sm:$0xff] }
  0x20   :  { %328 = vmatpush.msra.mxu2 %v245_v20  ;;  %348 = vmatpush.msra.mxu3 %v267_v44  ;;  %v201_v49 = vld [vmem:[#allocation2 + $0x118] sm:$0xff]  ;;  %v202_v50 = vld [vmem:[#allocation2 + $0x120] sm:$0xff]  ;;  %v203_v51 = vld [vmem:[#allocation2 + $0x128] sm:$0xff] }
  0x21   :  { %283 = vmatpush.msra.mxu0 %v236_v21  ;;  %306 = vmatpush.msra.mxu1 %v237_v22  ;;  %v253_v52 = vld [vmem:[#allocation2 + $0x2b8] sm:$0xff]  ;;  %v194_v53 = vld [vmem:[#allocation2 + $0xe0] sm:$0xff]  ;;  %v195_v54 = vld [vmem:[#allocation2 + $0xe8] sm:$0xff] }
  0x22   :  { %329 = vmatpush.msra.mxu2 %v238_v24  ;;  %349 = vmatpush.msra.mxu3 %v260_v48  ;;  %v196_v55 = vld [vmem:[#allocation2 + $0xf0] sm:$0xff]  ;;  %v246_v56 = vld [vmem:[#allocation2 + $0x280] sm:$0xff]  ;;  %v187_v57 = vld [vmem:[#allocation2 + $0xa8] sm:$0xff] }
  0x23   :  { %284 = vmatpush.msra.mxu0 %v229_v25  ;;  %307 = vmatpush.msra.mxu1 %v230_v26  ;;  %v188_v58 = vld [vmem:[#allocation2 + $0xb0] sm:$0xff]  ;;  %v189_v59 = vld [vmem:[#allocation2 + $0xb8] sm:$0xff]  ;;  %v239_v60 = vld [vmem:[#allocation2 + $0x248] sm:$0xff] }
  0x24   :  { %330 = vmatpush.msra.mxu2 %v231_v27  ;;  %350 = vmatpush.msra.mxu3 %v253_v52  ;;  %v180_v61 = vld [vmem:[#allocation2 + $0x70] sm:$0xff]  ;;  %v181_v62 = vld [vmem:[#allocation2 + $0x78] sm:$0xff]  ;;  %v182_v63 = vld [vmem:[#allocation2 + $0x80] sm:$0xff] }
  0x25   :  { %285 = vmatpush.msra.mxu0 %v222_v28  ;;  %308 = vmatpush.msra.mxu1 %v223_v29  ;;  %v232_v2 = vld [vmem:[#allocation2 + $0x210] sm:$0xff]  ;;  %v173_v3 = vld [vmem:[#allocation2 + $0x38] sm:$0xff]  ;;  %v166_v7 = vld [vmem:[#allocation2] sm:$0xff] }
  0x26   :  { %331 = vmatpush.msra.mxu2 %v224_v30  ;;  %351 = vmatpush.msra.mxu3 %v246_v56  ;;  %v225_v6 = vld [vmem:[#allocation2 + $0x1d8] sm:$0xff]  ;;  %v167_v8 = vld [vmem:[#allocation2 + $0x8] sm:$0xff]  ;;  %v168_v9 = vld [vmem:[#allocation2 + $0x10] sm:$0xff] }
  0x27   :  { %286 = vmatpush.msra.mxu0 %v215_v31  ;;  %309 = vmatpush.msra.mxu1 %v216_v32  ;;  %v218_v10 = vld [vmem:[#allocation2 + $0x1a0] sm:$0xff]  ;;  %v275_v11 = vld [vmem:[#allocation2 + $0x368] sm:$0xff]  ;;  %v276_v12 = vld [vmem:[#allocation2 + $0x370] sm:$0xff] }
  0x28   :  { %332 = vmatpush.msra.mxu2 %v217_v33  ;;  %352 = vmatpush.msra.mxu3 %v239_v60  ;;  %v277_v13 = vld [vmem:[#allocation2 + $0x378] sm:$0xff]  ;;  %v211_v14 = vld [vmem:[#allocation2 + $0x168] sm:$0xff]  ;;  %v268_v15 = vld [vmem:[#allocation2 + $0x330] sm:$0xff] }
  0x29   :  { %287 = vmatpush.msra.mxu0 %v208_v45  ;;  %310 = vmatpush.msra.mxu1 %v209_v46  ;;  %v269_v16 = vld [vmem:[#allocation2 + $0x338] sm:$0xff]  ;;  %v270_v17 = vld [vmem:[#allocation2 + $0x340] sm:$0xff]  ;;  %v204_v18 = vld [vmem:[#allocation2 + $0x130] sm:$0xff] }
  0x2a   :  { %333 = vmatpush.msra.mxu2 %v210_v47  ;;  %353 = vmatpush.msra.mxu3 %v232_v2  ;;  %v261_v19 = vld [vmem:[#allocation2 + $0x2f8] sm:$0xff]  ;;  %v262_v20 = vld [vmem:[#allocation2 + $0x300] sm:$0xff]  ;;  %v263_v21 = vld [vmem:[#allocation2 + $0x308] sm:$0xff] }
  0x2b   :  { %288 = vmatpush.msra.mxu0 %v201_v49  ;;  %311 = vmatpush.msra.mxu1 %v202_v50  ;;  %v197_v22 = vld [vmem:[#allocation2 + $0xf8] sm:$0xff]  ;;  %v254_v23 = vld [vmem:[#allocation2 + $0x2c0] sm:$0xff]  ;;  %v255_v24 = vld [vmem:[#allocation2 + $0x2c8] sm:$0xff] }
  0x2c   :  { %334 = vmatpush.msra.mxu2 %v203_v51  ;;  %354 = vmatpush.msra.mxu3 %v225_v6  ;;  %v256_v25 = vld [vmem:[#allocation2 + $0x2d0] sm:$0xff]  ;;  %v190_v26 = vld [vmem:[#allocation2 + $0xc0] sm:$0xff]  ;;  %v247_v27 = vld [vmem:[#allocation2 + $0x288] sm:$0xff] }
  0x2d   :  { %289 = vmatpush.msra.mxu0 %v194_v53  ;;  %312 = vmatpush.msra.mxu1 %v195_v54  ;;  %v248_v28 = vld [vmem:[#allocation2 + $0x290] sm:$0xff]  ;;  %v249_v29 = vld [vmem:[#allocation2 + $0x298] sm:$0xff]  ;;  %v183_v30 = vld [vmem:[#allocation2 + $0x88] sm:$0xff] }
  0x2e   :  { %335 = vmatpush.msra.mxu2 %v196_v55  ;;  %355 = vmatpush.msra.mxu3 %v218_v10  ;;  %v240_v31 = vld [vmem:[#allocation2 + $0x250] sm:$0xff]  ;;  %v241_v32 = vld [vmem:[#allocation2 + $0x258] sm:$0xff]  ;;  %v242_v33 = vld [vmem:[#allocation2 + $0x260] sm:$0xff] }
  0x2f   :  { %290 = vmatpush.msra.mxu0 %v187_v57  ;;  %313 = vmatpush.msra.mxu1 %v188_v58  ;;  %v219_v46 = vld [vmem:[#allocation2 + $0x1a8] sm:$0xff]  ;;  %v220_v47 = vld [vmem:[#allocation2 + $0x1b0] sm:$0xff]  ;;  %v221_v48 = vld [vmem:[#allocation2 + $0x1b8] sm:$0xff] }
  0x30   :  { %336 = vmatpush.msra.mxu2 %v189_v59  ;;  %356 = vmatpush.msra.mxu3 %v211_v14  ;;  %v212_v51 = vld [vmem:[#allocation2 + $0x170] sm:$0xff]  ;;  %v213_v52 = vld [vmem:[#allocation2 + $0x178] sm:$0xff]  ;;  %v214_v53 = vld [vmem:[#allocation2 + $0x180] sm:$0xff] }
  0x31   :  { %291 = vmatpush.msra.mxu0 %v180_v61  ;;  %314 = vmatpush.msra.mxu1 %v181_v62  ;;  %v205_v54 = vld [vmem:[#allocation2 + $0x138] sm:$0xff]  ;;  %v206_v55 = vld [vmem:[#allocation2 + $0x140] sm:$0xff]  ;;  %v207_v58 = vld [vmem:[#allocation2 + $0x148] sm:$0xff] }
  0x32   :  { %337 = vmatpush.msra.mxu2 %v182_v63  ;;  %357 = vmatpush.msra.mxu3 %v204_v18  ;;  %v198_v59 = vld [vmem:[#allocation2 + $0x100] sm:$0xff]  ;;  %v199_v60 = vld [vmem:[#allocation2 + $0x108] sm:$0xff]  ;;  %v200_v61 = vld [vmem:[#allocation2 + $0x110] sm:$0xff] }
  0x33   :  { %292 = vmatpush.msra.mxu0 %v173_v3  ;;  %v191_v62 = vld [vmem:[#allocation2 + $0xc8] sm:$0xff]  ;;  %v192_v63 = vld [vmem:[#allocation2 + $0xd0] sm:$0xff]  ;;  %v193_v2 = vld [vmem:[#allocation2 + $0xd8] sm:$0xff] }
  0x34   :  { %358 = vmatpush.msra.mxu3 %v197_v22  ;;  %v184_v3 = vld [vmem:[#allocation2 + $0x90] sm:$0xff]  ;;  %v177_v6 = vld [vmem:[#allocation2 + $0x58] sm:$0xff] }
  0x35   :  { %293 = vmatpush.msra.mxu0 %v166_v7  ;;  %v178_v7 = vld [vmem:[#allocation2 + $0x60] sm:$0xff] }
  0x36   :  { %359 = vmatpush.msra.mxu3 %v190_v26 }
  0x37   :  { %370 = vmatpush.msrb.mxu0 %v275_v11 }
  0x38   :  { %360 = vmatpush.msra.mxu3 %v183_v30 }
  0x39   :  { %371 = vmatpush.msrb.mxu0 %v268_v15  ;;  %v172_v15 = vld [vmem:[#allocation2 + $0x30] sm:$0xff] }
  0x3b   :  { %372 = vmatpush.msrb.mxu0 %v261_v19 }
  0x3d   :  { %373 = vmatpush.msrb.mxu0 %v254_v23 }
  0x3f   :  { %374 = vmatpush.msrb.mxu0 %v247_v27 }
  0x41   :  { %375 = vmatpush.msrb.mxu0 %v240_v31 }
  0x8d   :  { %v119_v34 = vpop.xlane.xlu1 %118  ;;  %v117_v35 = vpop.xlane.xlu0 %116 }
  0x8e   :  { %v121_v36 = vmul.f32 0.03125, %v119_v34  ;;  %v120_v37 = vmul.f32 0.03125, %v117_v35  ;;  %v176_v34 = vld [vmem:[#allocation2 + $0x50] sm:$0xff]  ;;  %v233_v35 = vld [vmem:[#allocation2 + $0x218] sm:$0xff] }
  0x8f   :  { %361 = vmatpush.msra.mxu3 %v176_v34  ;;  %376 = vmatpush.msrb.mxu0 %v233_v35 }
  0x90   :  { %v123_v38 = vsub.f32 %v2404_v4, %v121_v36  ;;  %v122_v39 = vsub.f32 %v2408_v5, %v120_v37  ;;  %v174_v4 = vld [vmem:[#allocation2 + $0x40] sm:$0xff]  ;;  %v175_v5 = vld [vmem:[#allocation2 + $0x48] sm:$0xff] }
  0x91   :  { %315 = vmatpush.msra.mxu1 %v174_v4  ;;  %338 = vmatpush.msra.mxu2 %v175_v5  ;;  %v234_v36 = vld [vmem:[#allocation2 + $0x220] sm:$0xff]  ;;  %v235_v37 = vld [vmem:[#allocation2 + $0x228] sm:$0xff]  ;;  %v185_v4 = vld [vmem:[#allocation2 + $0x98] sm:$0xff] }
  0x92   :  { %v2416_v40 = vsel %vm106_vm0, %v123_v38, 0.0  ;;  %v2420_v41 = vsel %vm106_vm0, %v122_v39, 0.0  ;;  %v169_v38 = vld [vmem:[#allocation2 + $0x18] sm:$0xff]  ;;  %v226_v39 = vld [vmem:[#allocation2 + $0x1e0] sm:$0xff] }
  0x93   :  { %v127_v42 = vmul.f32 %v2416_v40, %v2416_v40  ;;  %v126_v43 = vmul.f32 %v2420_v41, %v2420_v41  ;;  %316 = vmatpush.msra.mxu1 %v167_v8  ;;  %339 = vmatpush.msra.mxu2 %v168_v9  ;;  %v186_v5 = vld [vmem:[#allocation2 + $0xa0] sm:$0xff]  ;;  %v179_v9 = vld [vmem:[#allocation2 + $0x68] sm:$0xff] }
  0x94   :  { %362 = vmatpush.msra.mxu3 %v169_v38  ;;  %377 = vmatpush.msrb.mxu0 %v226_v39 }
  0x95   :  { %130 = vadd.xlane.f32.xlu1 %v127_v42  ;;  %128 = vadd.xlane.f32.xlu0 %v126_v43  ;;  %v227_v42 = vld [vmem:[#allocation2 + $0x1e8] sm:$0xff]  ;;  %v228_v43 = vld [vmem:[#allocation2 + $0x1f0] sm:$0xff] }
  0x96   :  { %393 = vmatpush.msrb.mxu1 %v276_v12  ;;  %416 = vmatpush.msrb.mxu2 %v277_v13  ;;  %v170_v12 = vld [vmem:[#allocation2 + $0x20] sm:$0xff]  ;;  %v171_v13 = vld [vmem:[#allocation2 + $0x28] sm:$0xff] }
  0x97   :  { %378 = vmatpush.msrb.mxu0 %v219_v46 }
  0x98   :  { %394 = vmatpush.msrb.mxu1 %v269_v16  ;;  %417 = vmatpush.msrb.mxu2 %v270_v17 }
  0x99   :  { %379 = vmatpush.msrb.mxu0 %v212_v51 }
  0x9a   :  { %395 = vmatpush.msrb.mxu1 %v262_v20  ;;  %418 = vmatpush.msrb.mxu2 %v263_v21  ;;  %v2429_v21 = vld [vmem:[%s2790_s8] sm:$0xff] }
  0x9b   :  { %380 = vmatpush.msrb.mxu0 %v205_v54 }
  0x9c   :  { %396 = vmatpush.msrb.mxu1 %v255_v24  ;;  %419 = vmatpush.msrb.mxu2 %v256_v25  ;;  %v158_v25 = vperm.slane %v2429_v21, 0 }
  0x9d   :  { %381 = vmatpush.msrb.mxu0 %v198_v59 }
  0x9e   :  { %397 = vmatpush.msrb.mxu1 %v248_v28  ;;  %420 = vmatpush.msrb.mxu2 %v249_v29  ;;  %v161_v29 = vperm.slane %v2429_v21, 1 }
  0x9f   :  { %382 = vmatpush.msrb.mxu0 %v191_v62 }
  0xa0   :  { %398 = vmatpush.msrb.mxu1 %v241_v32  ;;  %421 = vmatpush.msrb.mxu2 %v242_v33 }
  0xa1   :  { %383 = vmatpush.msrb.mxu0 %v184_v3 }
  0xa2   :  { %399 = vmatpush.msrb.mxu1 %v234_v36  ;;  %422 = vmatpush.msrb.mxu2 %v235_v37  ;;  %v2053_v36 = vld [vmem:[%s2783_s1 + $0x8] sm:$0xff] }
  0xa3   :  { %384 = vmatpush.msrb.mxu0 %v177_v6 }
  0xa4   :  { %400 = vmatpush.msrb.mxu1 %v227_v42  ;;  %423 = vmatpush.msrb.mxu2 %v228_v43 }
  0xa5   :  { %385 = vmatpush.msrb.mxu0 %v170_v12  ;;  %v109_v12 = vshrl.u32 %v104_v0, 7  ;;  %v2086_v0 = vld [vmem:[%s2784_s2 + $0x1] ss:$0 sm:$0xff] }
  0xa6   :  { %401 = vmatpush.msrb.mxu1 %v220_v47  ;;  %424 = vmatpush.msrb.mxu2 %v221_v48  ;;  %v2312_v48 = vmov 1  }
  0xa7   :  { %2077 = vset.pattern.permute.xlu0 %v2312_v48  ;;  %vm2462_vm8 = vcmp.ge.s32.totalorder %v109_v12, %v2393_v1  ;;  %v808_v12 = vld [vmem:[#allocation5 + $0x48] sm:$0xff] }
  0xa8   :  { %402 = vmatpush.msrb.mxu1 %v213_v52  ;;  %425 = vmatpush.msrb.mxu2 %v214_v53 }
  0xaa   :  { %403 = vmatpush.msrb.mxu1 %v206_v55  ;;  %426 = vmatpush.msrb.mxu2 %v207_v58 }
  0xac   :  { %404 = vmatpush.msrb.mxu1 %v199_v60  ;;  %427 = vmatpush.msrb.mxu2 %v200_v61 }
  0xae   :  { %405 = vmatpush.msrb.mxu1 %v192_v63  ;;  %428 = vmatpush.msrb.mxu2 %v193_v2 }
  0xb0   :  { %406 = vmatpush.msrb.mxu1 %v185_v4  ;;  %429 = vmatpush.msrb.mxu2 %v186_v5 }
  0xb2   :  { %407 = vmatpush.msrb.mxu1 %v178_v7  ;;  %430 = vmatpush.msrb.mxu2 %v179_v9 }
  0xb4   :  { %408 = vmatpush.msrb.mxu1 %v171_v13  ;;  %431 = vmatpush.msrb.mxu2 %v172_v15 }
 0x108   :  { %v131_v44 = vpop.xlane.xlu1 %130  ;;  %v129_v45 = vpop.xlane.xlu0 %128 }
 0x109   :  { %v133_v49 = vmul.f32 0.03125, %v131_v44  ;;  %v132_v50 = vmul.f32 0.03125, %v129_v45  ;;  %v457_v44 = vld [vmem:[%s2783_s1] sm:$0xff]  ;;  %s2037_s1 = sshll.u32 %s2794_s12, 4  ;;  %s2038_s1 = int_to_ptr.hbm [resolvable:$true] %s2037_s1 }
 0x10b   :  { %v135_v56 = vadd.f32 1e-05, %v133_v49  ;;  %v134_v57 = vadd.f32 1e-05, %v132_v50 }
 0x10d   :  { %2087 = vrsqrt.f32 %v135_v56  ;;  %vm152_vm1 = vweird.f32 %v135_v56  ;;  %vm142_vm5 = vweird.f32 %v134_v57 }
 0x10e   :  { %2089 = vrsqrt.f32 %v134_v57 }
 0x113   :  { %v2088_v8 = vpop.eup %2087 }
 0x114   :  { %v2090_v10 = vpop.eup %2089  ;;  %v147_v11 = vmul.f32 %v2088_v8, %v135_v56  ;;  %vm153_vm2 = vweird.f32 %v2088_v8 }
 0x115   :  { %v137_v14 = vmul.f32 %v2090_v10, %v134_v57  ;;  %vm143_vm3 = vweird.f32 %v2090_v10  ;;  %vm154_vm4 = vmor %vm152_vm1, %vm153_vm2  ;;  %vm547_vm2 = vcmp.lt.s32.totalorder %v2393_v1, 16 }
 0x116   :  { %v148_v16 = vmul.f32 %v2088_v8, %v147_v11  ;;  %vm144_vm6 = vmor %vm142_vm5, %vm143_vm3 }
 0x117   :  { %v138_v17 = vmul.f32 %v2090_v10, %v137_v14  ;;  %vm2523_vm3 = vmand %vm626_vm14, %vm106_vm0 }
 0x118   :  { %v149_v18 = vmul.f32 0.5, %v148_v16 }
 0x119   :  { %v139_v19 = vmul.f32 0.5, %v138_v17 }
 0x11a   :  { %v150_v20 = vsub.f32 1.5, %v149_v18 }
 0x11b   :  { %v140_v22 = vsub.f32 1.5, %v139_v19 }
 0x11c   :  { %v151_v23 = vmul.f32 %v2088_v8, %v150_v20 }
 0x11d   :  { %v141_v24 = vmul.f32 %v2090_v10, %v140_v22 }
 0x11e   :  { %v155_v26 = vsel %vm154_vm4, %v2088_v8, %v151_v23 }
 0x11f   :  { %v145_v27 = vsel %vm144_vm6, %v2090_v10, %v141_v24  ;;  %v157_v30 = vmul.f32 %v155_v26, %v2416_v40  ;;  %v2311_v40 = vmov 0   ;;  %v2085_v10 = vld [vmem:[%s2784_s2] ss:$0 sm:$0xff] }
 0x120   :  { %v156_v28 = vmul.f32 %v145_v27, %v2420_v41  ;;  %2078 = vset.pattern.permute.xlu1 %v2311_v40  ;;  %2076 = vset.pattern.permute.xlu2 %v2311_v40 }
 0x121   :  { %v160_v33 = vmul.f32 %v158_v25, %v157_v30  ;;  %636 = vperm.xlu1 %2078, %v2053_v36   ;;  %461 = vperm.xlu2 %2076, %v457_v44  }
 0x122   :  { %v159_v31 = vmul.f32 %v158_v25, %v156_v28 }
 0x123   :  { %v163_v35 = vadd.f32 %v161_v29, %v160_v33 }
 0x124   :  { %v162_v32 = vadd.f32 %v161_v29, %v159_v31 }
 0x125   :  { %v165_v41 = vsel %vm107_vm7, 1.0, %v163_v35 }
 0x126   :  { %v164_v34 = vsel %vm107_vm7, 1.0, %v162_v32 }
 0x127   :  { %294 = vmatmul.f32.vlgmr.msra.gmra.mxu0 %v164_v34  ;;  %317 = vmatmul.f32.vlgmr.msra.gmra.mxu1 %v164_v34 }
 0x128   :  { %340 = vmatmul.f32.vlgmr.msra.gmra.mxu2 %v164_v34  ;;  %363 = vmatmul.f32.vlgmr.msra.gmra.mxu3 %v164_v34 }
 0x12f   :  { %297 = vmatmul.f32.gmra.mxu0 %v165_v41  ;;  %320 = vmatmul.f32.gmra.mxu1 %v165_v41 }
 0x130   :  { %343 = vmatmul.f32.gmra.mxu2 %v165_v41  ;;  %366 = vmatmul.f32.gmra.mxu3 %v165_v41 }
 0x137   :  { %386 = vmatmul.f32.vlgmr.msrb.gmra.mxu0 %v164_v34  ;;  %409 = vmatmul.f32.vlgmr.msrb.gmra.mxu1 %v164_v34 }
 0x138   :  { %432 = vmatmul.f32.vlgmr.msrb.gmra.mxu2 %v164_v34 }
 0x13f   :  { %389 = vmatmul.f32.gmra.mxu0 %v165_v41  ;;  %412 = vmatmul.f32.gmra.mxu1 %v165_v41 }
 0x140   :  { %435 = vmatmul.f32.gmra.mxu2 %v165_v41 }
 0x17b   :  { %v462_v9 = vpop.permute.xlu2 %461 }
 0x17c   :  { %v467_v11 = vsub.f32 %v462_v9, %v2085_v10  ;;  %v809_v9 = vld [vmem:[#allocation5 + $0x50] sm:$0xff] }
 0x17e   :  { %v2459_v13 = vmax.f32 %v467_v11, 0.0 }
 0x193   :  { %v637_v22 = vpop.permute.xlu1 %636 }
 0x194   :  { %v642_v27 = vsub.f32 %v637_v22, %v2086_v0  ;;  %v804_v0 = vld [vmem:[#allocation5 + $0x28] sm:$0xff]  ;;  %v802_v22 = vld [vmem:[#allocation5 + $0x18] sm:$0xff] }
 0x196   :  { %v2473_v28 = vmax.f32 %v642_v27, 0.0 }
 0x1a4   :  { %v295_v37 = vpop.f32.mrf.mxu0  ;;  %v2445_v42 = vpop.f32.mrf.mxu1 }
 0x1ab   :  { %v341_v38 = vpop.f32.mrf.mxu2  ;;  %v364_v39 = vpop.f32.mrf.mxu3 }
 0x1ac   :  { %484 = vmatpush.xpose.msrb.mxu3 %v341_v38  ;;  %v298_v43 = vpop.f32.mrf.mxu0  ;;  %v321_v49 = vpop.f32.mrf.mxu1 }
 0x1af   :  { %485 = vmatmul.f32.vlgmr.msrb.gmra.mxu3 %v295_v37 }
 0x1b3   :  { %v344_v45 = vpop.f32.mrf.mxu2  ;;  %v367_v46 = vpop.f32.mrf.mxu3 }
 0x1b4   :  { %659 = vmatpush.xpose.msra.mxu0 %v344_v45  ;;  %737 = vmatpush.xpose.msra.mxu2 %v367_v46  ;;  %v387_v47 = vpop.f32.mrf.mxu0  ;;  %v410_v25 = vpop.f32.mrf.mxu1 }
 0x1b5   :  { %519 = vmatpush.msra.mxu3 %v387_v47 }
 0x1b7   :  { %566 = vmatpush.xpose.msrb.mxu3 %v364_v39  ;;  %660 = vmatmul.f32.vlgmr.msra.gmra.mxu0 %v298_v43 }
 0x1b8   :  { %738 = vmatmul.f32.vlgmr.msra.gmra.mxu2 %v321_v49 }
 0x1bb   :  { %v433_v50 = vpop.f32.mrf.mxu2 }
 0x1bc   :  { %v441_v51 = vand.u32 2147483647, %v433_v50  ;;  %v390_v52 = vpop.f32.mrf.mxu0  ;;  %v439_v2 = vmin.f32 %v433_v50, 0.0  ;;  %v413_v33 = vpop.f32.mrf.mxu1 }
 0x1bd   :  { %693 = vmatpush.msra.mxu1 %v390_v52 }
 0x1be   :  { %v443_v53 = vsub.f32 0.0, %v441_v51 }
 0x1c0   :  { %v445_v54 = vmul.f32 1.442695, %v443_v53 }
 0x1c2   :  { %2091 = vpow2.f32 %v445_v54 }
 0x1c3   :  { %v436_v55 = vpop.f32.mrf.mxu2 }
 0x1c4   :  { %v442_v56 = vand.u32 2147483647, %v436_v55  ;;  %v440_v6 = vmin.f32 %v436_v55, 0.0 }
 0x1c6   :  { %v444_v57 = vsub.f32 0.0, %v442_v56 }
 0x1c8   :  { %v2092_v58 = vpop.eup %2091  ;;  %v447_v59 = vmul.f32 1.442695, %v444_v57 }
 0x1c9   :  { %v449_v60 = vadd.f32 1.0, %v2092_v58 }
 0x1ca   :  { %2093 = vpow2.f32 %v447_v59 }
 0x1cb   :  { %2095 = vlog2.f32 %v449_v60 }
 0x1d0   :  { %v2094_v61 = vpop.eup %2093 }
 0x1d1   :  { %v2096_v62 = vpop.eup %2095  ;;  %v450_v63 = vadd.f32 1.0, %v2094_v61 }
 0x1d2   :  { %v452_v3 = vmul.f32 0.6931472, %v2096_v62 }
 0x1d3   :  { %2097 = vlog2.f32 %v450_v63  ;;  %v814_v63 = vld [vmem:[#allocation5 + $0x78] sm:$0xff] }
 0x1d4   :  { %v455_v4 = vsub.f32 %v439_v2, %v452_v3  ;;  %815 = vmatpush.msrb.mxu0 %v814_v63  ;;  %v813_v2 = vld [vmem:[#allocation5 + $0x70] sm:$0xff]  ;;  %v812_v3 = vld [vmem:[#allocation5 + $0x68] sm:$0xff] }
 0x1d6   :  { %573 = vperm.xlu0 %2077, %v455_v4   ;;  %492 = vperm.xlu2 %2076, %v455_v4  }
 0x1d7   :  { %816 = vmatpush.msrb.mxu0 %v813_v2 }
 0x1d9   :  { %v2098_v5 = vpop.eup %2097  ;;  %817 = vmatpush.msrb.mxu0 %v812_v3 }
 0x1da   :  { %v454_v7 = vmul.f32 0.6931472, %v2098_v5  ;;  %v811_v5 = vld [vmem:[#allocation5 + $0x60] sm:$0xff] }
 0x1db   :  { %818 = vmatpush.msrb.mxu0 %v811_v5 }
 0x1dc   :  { %v456_v8 = vsub.f32 %v440_v6, %v454_v7  ;;  %v810_v7 = vld [vmem:[#allocation5 + $0x58] sm:$0xff] }
 0x1dd   :  { %819 = vmatpush.msrb.mxu0 %v810_v7 }
 0x1de   :  { %2079 = vset.pattern.permute.xlu2 %v2312_v48  ;;  %2082 = vset.pattern.permute.xlu0 %v2311_v40 }
 0x1df   :  { %744 = vperm.xlu2 %2079, %v456_v8   ;;  %820 = vmatpush.msrb.mxu0 %v809_v9 }
 0x1e1   :  { %821 = vmatpush.msrb.mxu0 %v808_v12 }
 0x1e7   :  { %2080 = vset.pattern.permute.xlu2 %v2311_v40 }
 0x1e8   :  { %667 = vperm.xlu2 %2080, %v456_v8  }
 0x1f0   :  { %2081 = vset.pattern.permute.xlu2 %v2312_v48 }
 0x230   :  { %v493_v15 = vpop.permute.xlu2 %492 }
 0x231   :  { %v495_v16 = vmul.f32 %v493_v15, %v2459_v13  ;;  %v807_v15 = vld [vmem:[#allocation5 + $0x40] sm:$0xff] }
 0x232   :  { %v486_v19 = vpop.f32.mrf.mxu3  ;;  %822 = vmatpush.msrb.mxu0 %v807_v15 }
 0x233   :  { %v496_v17 = vsel %vm2462_vm8, %v495_v16, -1e+30  ;;  %v489_v23 = vmul.f32 0.25, %v486_v19 }
 0x234   :  { %v497_v18 = vmul.f32 1.442695, %v496_v17  ;;  %v661_v34 = vpop.f32.mrf.mxu0  ;;  %v806_v17 = vld [vmem:[#allocation5 + $0x38] sm:$0xff] }
 0x235   :  { %v664_v35 = vmul.f32 0.25, %v661_v34  ;;  %823 = vmatpush.msrb.mxu0 %v806_v17 }
 0x236   :  { %2099 = vpow2.f32 %v497_v18  ;;  %v805_v18 = vld [vmem:[#allocation5 + $0x30] sm:$0xff] }
 0x237   :  { %824 = vmatpush.msrb.mxu0 %v805_v18 }
 0x239   :  { %v745_v20 = vpop.permute.xlu2 %744  ;;  %825 = vmatpush.msrb.mxu0 %v804_v0 }
 0x23a   :  { %v747_v43 = vmul.f32 %v745_v20, %v2473_v28  ;;  %v803_v20 = vld [vmem:[#allocation5 + $0x20] sm:$0xff] }
 0x23b   :  { %v739_v53 = vpop.f32.mrf.mxu2  ;;  %826 = vmatpush.msrb.mxu0 %v803_v20 }
 0x23c   :  { %v2100_v24 = vpop.eup %2099  ;;  %v748_v46 = vsel %vm2462_vm8, %v747_v43, -1e+30  ;;  %v742_v55 = vmul.f32 0.25, %v739_v53 }
 0x23d   :  { %v499_v26 = vmul.f32 %v2100_v24, %v489_v23  ;;  %v749_v47 = vmul.f32 1.442695, %v748_v46  ;;  %827 = vmatpush.msrb.mxu0 %v802_v22  ;;  %v801_v23 = vld [vmem:[#allocation5 + $0x10] sm:$0xff]  ;;  %v800_v24 = vld [vmem:[#allocation5 + $0x8] sm:$0xff] }
 0x23f   :  { %2051 = vmatmul.msk.f32.vlgmr.msra.gmra.mxu3 %vm500_vm9, %v499_v26  ;;  %828 = vmatpush.msrb.mxu0 %v801_v23  ;;  %v799_v26 = vld [vmem:[#allocation5] sm:$0xff] }
 0x240   :  { %599 = vmatpush.msra.mxu3 %v410_v25 }
 0x241   :  { %829 = vmatpush.msrb.mxu0 %v800_v24 }
 0x242   :  { %v668_v29 = vpop.permute.xlu2 %667 }
 0x243   :  { %v670_v30 = vmul.f32 %v668_v29, %v2473_v28  ;;  %830 = vmatpush.msrb.mxu0 %v799_v26 }
 0x245   :  { %v671_v31 = vsel %vm2462_vm8, %v670_v30, -1e+30 }
 0x246   :  { %v672_v32 = vmul.f32 1.442695, %v671_v31 }
 0x247   :  { %567 = vmatmul.f32.vlgmr.msrb.gmra.mxu3 %v2445_v42 }
 0x248   :  { %2101 = vpow2.f32 %v672_v32  ;;  %770 = vmatpush.msrb.mxu3 %v413_v33  ;;  %v574_v37 = vpop.permute.xlu0 %573 }
 0x249   :  { %v576_v38 = vmul.f32 %v574_v37, %v2459_v13 }
 0x24b   :  { %v577_v39 = vsel %vm2462_vm8, %v576_v38, -1e+30 }
 0x24c   :  { %v578_v44 = vmul.f32 1.442695, %v577_v39 }
 0x24e   :  { %v2102_v41 = vpop.eup %2101  ;;  %2103 = vpow2.f32 %v578_v44 }
 0x24f   :  { %v674_v36 = vmul.f32 %v2102_v41, %v664_v35  ;;  %2105 = vpow2.f32 %v749_v47 }
 0x251   :  { %2055 = vmatmul.msk.f32.vlgmr.msra.gmra.mxu1 %vm500_vm9, %v674_v36 }
 0x254   :  { %v2104_v51 = vpop.eup %2103 }
 0x255   :  { %v2106_v54 = vpop.eup %2105 }
 0x256   :  { %v751_v56 = vmul.f32 %v2106_v54, %v742_v55 }
 0x2c2   :  { %v2484_v45 = vpop.f32.mrf.mxu3 }
 0x2c3   :  { %524 = vadd.xlane.f32.xlu2 %v2484_v45  ;;  %v527_v42 = vmul.f32 %v2484_v45, %v2484_v45 }
 0x2c5   :  { %528 = vadd.xlane.f32.xlu0 %v527_v42 }
 0x2ca   :  { %v568_v49 = vpop.f32.mrf.mxu3 }
 0x2cb   :  { %v571_v50 = vmul.f32 0.25, %v568_v49 }
 0x2cd   :  { %v580_v52 = vmul.f32 %v2104_v51, %v571_v50 }
 0x2ce   :  { %v2501_v60 = vpop.f32.mrf.mxu1 }
 0x2cf   :  { %2052 = vmatmul.msk.f32.vlgmr.msra.gmra.mxu3 %vm500_vm9, %v580_v52  ;;  %v701_v62 = vmul.f32 %v2501_v60, %v2501_v60 }
 0x2d7   :  { %2056 = vmatmul.msk.f32.vlgmr.msrb.gmra.mxu3 %vm500_vm9, %v751_v56 }
 0x336   :  { %v525_v4 = vpop.xlane.xlu2 %524 }
 0x337   :  { %v2508_v6 = vmul.f32 0.0625, %v525_v4 }
 0x338   :  { %v529_v8 = vpop.xlane.xlu0 %528 }
 0x339   :  { %v531_v10 = vmul.f32 %v2508_v6, %v2508_v6  ;;  %v530_v11 = vmul.f32 0.0625, %v529_v8  ;;  %v533_v3 = vsub.f32 %v2484_v45, %v2508_v6 }
 0x33b   :  { %v532_v16 = vsub.f32 %v530_v11, %v531_v10 }
 0x33d   :  { %v534_v19 = vadd.f32 1e-05, %v532_v16 }
 0x33f   :  { %2107 = vrsqrt.f32 %v534_v19  ;;  %vm541_vm11 = vweird.f32 %v534_v19 }
 0x345   :  { %v2108_v25 = vpop.eup %2107 }
 0x346   :  { %v536_v30 = vmul.f32 %v2108_v25, %v534_v19  ;;  %vm542_vm10 = vweird.f32 %v2108_v25 }
 0x347   :  { %vm543_vm12 = vmor %vm541_vm11, %vm542_vm10 }
 0x348   :  { %v537_v35 = vmul.f32 %v2108_v25, %v536_v30 }
 0x34a   :  { %v538_v37 = vmul.f32 0.5, %v537_v35 }
 0x34c   :  { %v539_v43 = vsub.f32 1.5, %v538_v37 }
 0x34e   :  { %v540_v51 = vmul.f32 %v2108_v25, %v539_v43  ;;  %v2174_v43 = vld [vmem:[%s2782_s0 + $0x8] sm:$0xff] }
 0x350   :  { %v544_v63 = vsel %vm543_vm12, %v2108_v25, %v540_v51 }
 0x351   :  { %v545_v8 = vmul.f32 %v544_v63, %v533_v3  ;;  %v906_v63 = vld [vmem:[#allocation7 + $0x68] sm:$0xff]  ;;  %v904_v3 = vld [vmem:[#allocation7 + $0x58] sm:$0xff] }
 0x352   :  { %v2493_v57 = vpop.f32.mrf.mxu3 }
 0x353   :  { %604 = vadd.xlane.f32.xlu1 %v2493_v57  ;;  %v607_v58 = vmul.f32 %v2493_v57, %v2493_v57  ;;  %v549_v11 = vsel %vm547_vm2, %v545_v8, 0.0  ;;  %v900_v8 = vld [vmem:[#allocation7 + $0x38] sm:$0xff] }
 0x355   :  { %608 = vadd.xlane.f32.xlu2 %v607_v58 }
 0x35a   :  { %v2498_v59 = vpop.f32.mrf.mxu3 }
 0x35b   :  { %775 = vadd.xlane.f32.xlu1 %v2498_v59  ;;  %v778_v61 = vmul.f32 %v2498_v59, %v2498_v59 }
 0x35d   :  { %698 = vadd.xlane.f32.xlu2 %v2501_v60 }
 0x363   :  { %779 = vadd.xlane.f32.xlu1 %v778_v61 }
 0x365   :  { %702 = vadd.xlane.f32.xlu2 %v701_v62 }
 0x3c6   :  { %v605_v27 = vpop.xlane.xlu1 %604 }
 0x3c7   :  { %v606_v29 = vmul.f32 0.0625, %v605_v27 }
 0x3c8   :  { %v609_v31 = vpop.xlane.xlu2 %608 }
 0x3c9   :  { %v611_v32 = vmul.f32 %v606_v29, %v606_v29  ;;  %v610_v33 = vmul.f32 0.0625, %v609_v31  ;;  %v613_v7 = vsub.f32 %v2493_v57, %v606_v29 }
 0x3cb   :  { %v612_v34 = vsub.f32 %v610_v33, %v611_v32 }
 0x3cd   :  { %v614_v41 = vadd.f32 1e-05, %v612_v34 }
 0x3ce   :  { %v776_v36 = vpop.xlane.xlu1 %775 }
 0x3cf   :  { %2109 = vrsqrt.f32 %v614_v41  ;;  %v2512_v39 = vmul.f32 0.0625, %v776_v36  ;;  %vm621_vm15 = vweird.f32 %v614_v41  ;;  %v2173_v36 = vld [vmem:[%s2782_s0] sm:$0xff] }
 0x3d0   :  { %v699_v38 = vpop.xlane.xlu2 %698 }
 0x3d1   :  { %v700_v42 = vmul.f32 0.0625, %v699_v38  ;;  %v782_v49 = vmul.f32 %v2512_v39, %v2512_v39  ;;  %v784_v25 = vsub.f32 %v2498_v59, %v2512_v39  ;;  %v840_v59 = vperm.slane %v2429_v21, 2 }
 0x3d3   :  { %v705_v54 = vmul.f32 %v700_v42, %v700_v42  ;;  %v707_v29 = vsub.f32 %v2501_v60, %v700_v42 }
 0x3d5   :  { %v2110_v44 = vpop.eup %2109 }
 0x3d6   :  { %v616_v46 = vmul.f32 %v2110_v44, %v614_v41  ;;  %v780_v47 = vpop.xlane.xlu1 %779  ;;  %vm622_vm13 = vweird.f32 %v2110_v44 }
 0x3d7   :  { %v781_v50 = vmul.f32 0.0625, %v780_v47  ;;  %vm623_vm1 = vmor %vm621_vm15, %vm622_vm13  ;;  %v908_v47 = vld [vmem:[#allocation7 + $0x78] sm:$0xff] }
 0x3d8   :  { %v617_v52 = vmul.f32 %v2110_v44, %v616_v46  ;;  %v703_v53 = vpop.xlane.xlu2 %702  ;;  %910 = vmatpush.msrb.mxu1 %v908_v47 }
 0x3d9   :  { %v783_v55 = vsub.f32 %v781_v50, %v782_v49  ;;  %v704_v56 = vmul.f32 0.0625, %v703_v53  ;;  %v907_v49 = vld [vmem:[#allocation7 + $0x70] sm:$0xff] }
 0x3da   :  { %v618_v58 = vmul.f32 0.5, %v617_v52  ;;  %911 = vmatpush.msrb.mxu1 %v907_v49 }
 0x3db   :  { %v785_v61 = vadd.f32 1e-05, %v783_v55  ;;  %v706_v62 = vsub.f32 %v704_v56, %v705_v54 }
 0x3dc   :  { %v619_v2 = vsub.f32 1.5, %v618_v58  ;;  %912 = vmatpush.msrb.mxu1 %v906_v63  ;;  %v954_v63 = vld [vmem:[#allocation8 + $0x18] sm:$0xff] }
 0x3dd   :  { %2111 = vrsqrt.f32 %v785_v61  ;;  %v708_v4 = vadd.f32 1e-05, %v706_v62  ;;  %vm792_vm5 = vweird.f32 %v785_v61 }
 0x3de   :  { %v620_v5 = vmul.f32 %v2110_v44, %v619_v2  ;;  %v905_v2 = vld [vmem:[#allocation7 + $0x60] sm:$0xff] }
 0x3df   :  { %2113 = vrsqrt.f32 %v708_v4  ;;  %vm715_vm11 = vweird.f32 %v708_v4  ;;  %913 = vmatpush.msrb.mxu1 %v905_v2  ;;  %v953_v2 = vld [vmem:[#allocation8 + $0x10] sm:$0xff] }
 0x3e0   :  { %v624_v9 = vsel %vm623_vm1, %v2110_v44, %v620_v5  ;;  %v902_v5 = vld [vmem:[#allocation7 + $0x48] sm:$0xff] }
 0x3e1   :  { %v625_v45 = vmul.f32 %v624_v9, %v613_v7  ;;  %914 = vmatpush.msrb.mxu1 %v904_v3  ;;  %v901_v7 = vld [vmem:[#allocation7 + $0x40] sm:$0xff]  ;;  %v899_v9 = vld [vmem:[#allocation7 + $0x30] sm:$0xff]  ;;  %v952_v3 = vld [vmem:[#allocation8 + $0x8] sm:$0xff] }
 0x3e3   :  { %v2112_v6 = vpop.eup %2111  ;;  %v628_v57 = vsel %vm2523_vm3, %v625_v45, 0.0  ;;  %v898_v45 = vld [vmem:[#allocation7 + $0x28] sm:$0xff] }
 0x3e4   :  { %v787_v12 = vmul.f32 %v2112_v6, %v785_v61  ;;  %v629_v15 = vadd.f32 %v628_v57, %v549_v11  ;;  %vm793_vm4 = vweird.f32 %v2112_v6  ;;  %v896_v11 = vld [vmem:[#allocation7 + $0x18] sm:$0xff]  ;;  %v895_v57 = vld [vmem:[#allocation7 + $0x10] sm:$0xff] }
 0x3e5   :  { %v2114_v16 = vpop.eup %2113  ;;  %vm794_vm10 = vmor %vm792_vm5, %vm793_vm4 }
 0x3e6   :  { %v788_v17 = vmul.f32 %v2112_v6, %v787_v12  ;;  %v710_v18 = vmul.f32 %v2114_v16, %v708_v4  ;;  %831 = vmatmul.f32.vlgmr.msrb.gmra.mxu0 %v629_v15  ;;  %vm716_vm6 = vweird.f32 %v2114_v16  ;;  %v903_v4 = vld [vmem:[#allocation7 + $0x50] sm:$0xff]  ;;  %v894_v12 = vld [vmem:[#allocation7 + $0x8] sm:$0xff]  ;;  %v893_v15 = vld [vmem:[#allocation7] sm:$0xff] }
 0x3e7   :  { %vm717_vm12 = vmor %vm715_vm11, %vm716_vm6  ;;  %915 = vmatpush.msrb.mxu1 %v903_v4  ;;  %v951_v4 = vld [vmem:[#allocation8] sm:$0xff] }
 0x3e8   :  { %v789_v19 = vmul.f32 0.5, %v788_v17  ;;  %v711_v0 = vmul.f32 %v2114_v16, %v710_v18 }
 0x3e9   :  { %916 = vmatpush.msrb.mxu1 %v902_v5  ;;  %v909_v5 = vperm.slane %v2429_v21, 5 }
 0x3ea   :  { %v790_v20 = vsub.f32 1.5, %v789_v19  ;;  %v712_v22 = vmul.f32 0.5, %v711_v0 }
 0x3eb   :  { %917 = vmatpush.msrb.mxu1 %v901_v7 }
 0x3ec   :  { %v713_v23 = vsub.f32 1.5, %v712_v22  ;;  %v791_v24 = vmul.f32 %v2112_v6, %v790_v20  ;;  %v966_v20 = vld [vmem:[#allocation8 + $0x78] sm:$0xff]  ;;  %v965_v22 = vld [vmem:[#allocation8 + $0x70] sm:$0xff] }
 0x3ed   :  { %918 = vmatpush.msrb.mxu1 %v900_v8  ;;  %967 = vmatpush.msrb.mxu2 %v966_v20 }
 0x3ee   :  { %v714_v26 = vmul.f32 %v2114_v16, %v713_v23  ;;  %v795_v27 = vsel %vm794_vm10, %v2112_v6, %v791_v24  ;;  %v897_v6 = vld [vmem:[#allocation7 + $0x20] sm:$0xff]  ;;  %v964_v24 = vld [vmem:[#allocation8 + $0x68] sm:$0xff] }
 0x3ef   :  { %v796_v30 = vmul.f32 %v795_v27, %v784_v25  ;;  %919 = vmatpush.msrb.mxu1 %v899_v9  ;;  %968 = vmatpush.msrb.mxu2 %v965_v22 }
 0x3f0   :  { %v718_v31 = vsel %vm717_vm12, %v2114_v16, %v714_v26 }
 0x3f1   :  { %v719_v32 = vmul.f32 %v718_v31, %v707_v29  ;;  %v797_v34 = vsel %vm2523_vm3, %v796_v30, 0.0  ;;  %920 = vmatpush.msrb.mxu1 %v898_v45  ;;  %969 = vmatpush.msrb.mxu2 %v964_v24 }
 0x3f3   :  { %v720_v33 = vsel %vm547_vm2, %v719_v32, 0.0  ;;  %921 = vmatpush.msrb.mxu1 %v897_v6  ;;  %v887_v32 = vperm.slane %v2429_v21, 3 }
 0x3f4   :  { %v798_v35 = vadd.f32 %v797_v34, %v720_v33 }
 0x3f5   :  { %922 = vmatpush.msrb.mxu1 %v896_v11 }
 0x3f6   :  { %834 = vmatmul.f32.gmra.mxu0 %v798_v35  ;;  %v890_v35 = vperm.slane %v2429_v21, 4 }
 0x3f7   :  { %923 = vmatpush.msrb.mxu1 %v895_v57 }
 0x3f9   :  { %924 = vmatpush.msrb.mxu1 %v894_v12 }
 0x3fb   :  { %925 = vmatpush.msrb.mxu1 %v893_v15 }
 0x463   :  { %v832_v41 = vpop.f32.mrf.mxu0 }
 0x464   :  { %v838_v60 = vadd.f32 %v2173_v36, %v832_v41 }
 0x466   :  { %v2542_v37 = vadd.f32 %v840_v59, %v838_v60 }
 0x468   :  { %v843_v38 = vsel %vm106_vm0, %v2542_v37, 0.0 }
 0x469   :  { %845 = vadd.xlane.f32.xlu2 %v843_v38 }
 0x473   :  { %v835_v39 = vpop.f32.mrf.mxu0 }
 0x474   :  { %v839_v44 = vadd.f32 %v2174_v43, %v835_v39 }
 0x476   :  { %v2550_v42 = vadd.f32 %v840_v59, %v839_v44 }
 0x478   :  { %v844_v46 = vsel %vm106_vm0, %v2550_v42, 0.0 }
 0x479   :  { %847 = vadd.xlane.f32.xlu0 %v844_v46 }
 0x4dc   :  { %v846_v50 = vpop.xlane.xlu2 %845 }
 0x4dd   :  { %v849_v51 = vmul.f32 0.03125, %v846_v50 }
 0x4df   :  { %v851_v52 = vsub.f32 %v843_v38, %v849_v51  ;;  %v963_v51 = vld [vmem:[#allocation8 + $0x60] sm:$0xff] }
 0x4e0   :  { %970 = vmatpush.msrb.mxu2 %v963_v51  ;;  %v1136_v51 = vld [vmem:[#allocation2 + $0x630] sm:$0xff] }
 0x4e1   :  { %v2557_v53 = vsel %vm106_vm0, %v851_v52, 0.0  ;;  %v962_v52 = vld [vmem:[#allocation8 + $0x58] sm:$0xff] }
 0x4e2   :  { %v855_v54 = vmul.f32 %v2557_v53, %v2557_v53  ;;  %971 = vmatpush.msrb.mxu2 %v962_v52  ;;  %v1127_v52 = vld [vmem:[#allocation2 + $0x5e8] sm:$0xff] }
 0x4e4   :  { %857 = vadd.xlane.f32.xlu1 %v855_v54  ;;  %v960_v54 = vld [vmem:[#allocation8 + $0x48] sm:$0xff] }
 0x4ec   :  { %v848_v55 = vpop.xlane.xlu0 %847 }
 0x4ed   :  { %v850_v56 = vmul.f32 0.03125, %v848_v55  ;;  %v959_v55 = vld [vmem:[#allocation8 + $0x40] sm:$0xff] }
 0x4ef   :  { %v852_v58 = vsub.f32 %v844_v46, %v850_v56  ;;  %v958_v56 = vld [vmem:[#allocation8 + $0x38] sm:$0xff] }
 0x4f1   :  { %v2563_v61 = vsel %vm106_vm0, %v852_v58, 0.0  ;;  %v957_v58 = vld [vmem:[#allocation8 + $0x30] sm:$0xff] }
 0x4f2   :  { %v856_v62 = vmul.f32 %v2563_v61, %v2563_v61 }
 0x4f4   :  { %859 = vadd.xlane.f32.xlu2 %v856_v62  ;;  %v956_v62 = vld [vmem:[#allocation8 + $0x28] sm:$0xff] }
 0x557   :  { %v858_v16 = vpop.xlane.xlu1 %857 }
 0x558   :  { %v861_v17 = vmul.f32 0.03125, %v858_v16 }
 0x55a   :  { %v863_v18 = vadd.f32 1e-05, %v861_v17 }
 0x55c   :  { %2115 = vrsqrt.f32 %v863_v18  ;;  %vm871_vm14 = vweird.f32 %v863_v18 }
 0x562   :  { %v2116_v19 = vpop.eup %2115 }
 0x563   :  { %v866_v0 = vmul.f32 %v2116_v19, %v863_v18  ;;  %vm872_vm13 = vweird.f32 %v2116_v19 }
 0x564   :  { %vm873_vm15 = vmor %vm871_vm14, %vm872_vm13 }
 0x565   :  { %v867_v23 = vmul.f32 %v2116_v19, %v866_v0 }
 0x567   :  { %v868_v25 = vmul.f32 0.5, %v867_v23  ;;  %v860_v26 = vpop.xlane.xlu2 %859 }
 0x568   :  { %v862_v27 = vmul.f32 0.03125, %v860_v26 }
 0x569   :  { %v869_v29 = vsub.f32 1.5, %v868_v25 }
 0x56a   :  { %v864_v30 = vadd.f32 1e-05, %v862_v27 }
 0x56b   :  { %v870_v31 = vmul.f32 %v2116_v19, %v869_v29 }
 0x56c   :  { %2117 = vrsqrt.f32 %v864_v30  ;;  %vm881_vm4 = vweird.f32 %v864_v30 }
 0x56d   :  { %v874_v33 = vsel %vm873_vm15, %v2116_v19, %v870_v31 }
 0x56e   :  { %v885_v34 = vmul.f32 %v874_v33, %v2557_v53  ;;  %v961_v53 = vld [vmem:[#allocation8 + $0x50] sm:$0xff] }
 0x56f   :  { %972 = vmatpush.msrb.mxu2 %v961_v53  ;;  %v1128_v53 = vld [vmem:[#allocation2 + $0x5f0] sm:$0xff] }
 0x570   :  { %v888_v59 = vmul.f32 %v887_v32, %v885_v34 }
 0x571   :  { %973 = vmatpush.msrb.mxu2 %v960_v54  ;;  %v1129_v54 = vld [vmem:[#allocation2 + $0x5f8] sm:$0xff] }
 0x572   :  { %v2118_v41 = vpop.eup %2117  ;;  %v891_v36 = vadd.f32 %v890_v35, %v888_v59 }
 0x573   :  { %v876_v60 = vmul.f32 %v2118_v41, %v864_v30  ;;  %vm882_vm1 = vweird.f32 %v2118_v41  ;;  %974 = vmatpush.msrb.mxu2 %v959_v55  ;;  %v992_v30 = vperm.slane %v2429_v21, 6  ;;  %v1155_v21 = vld [vmem:[#allocation2 + $0x6c8] sm:$0xff] }
 0x574   :  { %926 = vmatmul.f32.vlgmr.msrb.gmra.mxu1 %v891_v36  ;;  %vm883_vm5 = vmor %vm881_vm4, %vm882_vm1  ;;  %1162 = vmatpush.msra.mxu3 %v1155_v21  ;;  %v1071_v21 = vld [vmem:[#allocation2 + $0x428] sm:$0xff] }
 0x575   :  { %v877_v38 = vmul.f32 %v2118_v41, %v876_v60  ;;  %975 = vmatpush.msrb.mxu2 %v958_v56  ;;  %v1156_v60 = vld [vmem:[#allocation2 + $0x6d0] sm:$0xff] }
 0x576   :  { %1185 = vmatpush.msra.mxu0 %v1156_v60  ;;  %v1072_v60 = vld [vmem:[#allocation2 + $0x430] sm:$0xff] }
 0x577   :  { %v878_v39 = vmul.f32 0.5, %v877_v38  ;;  %976 = vmatpush.msrb.mxu2 %v957_v58  ;;  %v1148_v38 = vld [vmem:[#allocation2 + $0x690] sm:$0xff] }
 0x578   :  { %1163 = vmatpush.msra.mxu3 %v1148_v38  ;;  %v1095_v38 = vld [vmem:[#allocation2 + $0x4e8] sm:$0xff] }
 0x579   :  { %v879_v43 = vsub.f32 1.5, %v878_v39  ;;  %977 = vmatpush.msrb.mxu2 %v956_v62  ;;  %v1149_v39 = vld [vmem:[#allocation2 + $0x698] sm:$0xff] }
 0x57a   :  { %1186 = vmatpush.msra.mxu0 %v1149_v39  ;;  %v1064_v39 = vld [vmem:[#allocation2 + $0x3f0] sm:$0xff] }
 0x57b   :  { %v880_v44 = vmul.f32 %v2118_v41, %v879_v43  ;;  %v1150_v43 = vld [vmem:[#allocation2 + $0x6a0] sm:$0xff] }
 0x57d   :  { %v884_v46 = vsel %vm883_vm5, %v2118_v41, %v880_v44  ;;  %v1141_v44 = vld [vmem:[#allocation2 + $0x658] sm:$0xff] }
 0x57e   :  { %v886_v47 = vmul.f32 %v884_v46, %v2563_v61  ;;  %v955_v61 = vld [vmem:[#allocation8 + $0x20] sm:$0xff]  ;;  %1164 = vmatpush.msra.mxu3 %v1141_v44 }
 0x57f   :  { %978 = vmatpush.msrb.mxu2 %v955_v61  ;;  %v1142_v46 = vld [vmem:[#allocation2 + $0x660] sm:$0xff] }
 0x580   :  { %v889_v49 = vmul.f32 %v887_v32, %v886_v47  ;;  %v1134_v47 = vld [vmem:[#allocation2 + $0x620] sm:$0xff]  ;;  %1187 = vmatpush.msra.mxu0 %v1142_v46  ;;  %v1088_v46 = vld [vmem:[#allocation2 + $0x4b0] sm:$0xff] }
 0x581   :  { %979 = vmatpush.msrb.mxu2 %v954_v63  ;;  %1165 = vmatpush.msra.mxu3 %v1134_v47  ;;  %v1066_v44 = vld [vmem:[#allocation2 + $0x400] sm:$0xff] }
 0x582   :  { %v892_v50 = vadd.f32 %v890_v35, %v889_v49  ;;  %v1135_v49 = vld [vmem:[#allocation2 + $0x628] sm:$0xff]  ;;  %v1058_v47 = vld [vmem:[#allocation2 + $0x3c0] sm:$0xff] }
 0x583   :  { %980 = vmatpush.msrb.mxu2 %v953_v2  ;;  %1188 = vmatpush.msra.mxu0 %v1135_v49  ;;  %v1059_v49 = vld [vmem:[#allocation2 + $0x3c8] sm:$0xff] }
 0x584   :  { %929 = vmatmul.f32.gmra.mxu1 %v892_v50  ;;  %v1158_v50 = vld [vmem:[#allocation2 + $0x6e0] sm:$0xff]  ;;  %1166 = vmatpush.msra.mxu3 %v1127_v52  ;;  %v1051_v52 = vld [vmem:[#allocation2 + $0x388] sm:$0xff] }
 0x585   :  { %981 = vmatpush.msrb.mxu2 %v952_v3  ;;  %1189 = vmatpush.msra.mxu0 %v1128_v53  ;;  %v1052_v53 = vld [vmem:[#allocation2 + $0x390] sm:$0xff] }
 0x587   :  { %982 = vmatpush.msrb.mxu2 %v951_v4 }
 0x589   :  { %1231 = vmatpush.msra.mxu2 %v1158_v50  ;;  %v1081_v50 = vld [vmem:[#allocation2 + $0x478] sm:$0xff] }
 0x5f1   :  { %v927_v7 = vpop.f32.mrf.mxu1 }
 0x5f2   :  { %v928_v8 = vadd.f32 %v927_v7, %v909_v5  ;;  %v1151_v7 = vld [vmem:[#allocation2 + $0x6a8] sm:$0xff] }
 0x5f3   :  { %1232 = vmatpush.msra.mxu2 %v1151_v7  ;;  %v1145_v7 = vld [vmem:[#allocation2 + $0x678] sm:$0xff] }
 0x5f4   :  { %v933_v9 = vmul.f32 %v928_v8, %v928_v8 }
 0x5f6   :  { %v935_v45 = vmul.f32 %v933_v9, %v928_v8  ;;  %v1121_v9 = vld [vmem:[#allocation2 + $0x5b8] sm:$0xff] }
 0x5f7   :  { %1190 = vmatpush.msra.mxu0 %v1121_v9  ;;  %v1147_v9 = vld [vmem:[#allocation2 + $0x688] sm:$0xff] }
 0x5f8   :  { %v937_v6 = vmul.f32 0.044715, %v935_v45  ;;  %v1122_v45 = vld [vmem:[#allocation2 + $0x5c0] sm:$0xff] }
 0x5fa   :  { %v939_v11 = vadd.f32 %v937_v6, %v928_v8  ;;  %v1144_v6 = vld [vmem:[#allocation2 + $0x670] sm:$0xff] }
 0x5fb   :  { %1233 = vmatpush.msra.mxu2 %v1144_v6  ;;  %v1138_v6 = vld [vmem:[#allocation2 + $0x640] sm:$0xff] }
 0x5fc   :  { %v941_v57 = vmul.f32 0.7978846, %v939_v11  ;;  %v1113_v11 = vld [vmem:[#allocation2 + $0x578] sm:$0xff] }
 0x5fe   :  { %2119 = vtanh.f32 %v941_v57  ;;  %v1114_v57 = vld [vmem:[#allocation2 + $0x580] sm:$0xff] }
 0x5ff   :  { %1191 = vmatpush.msra.mxu0 %v1114_v57  ;;  %v1140_v57 = vld [vmem:[#allocation2 + $0x650] sm:$0xff] }
 0x601   :  { %v930_v12 = vpop.f32.mrf.mxu1 }
 0x602   :  { %v931_v15 = vadd.f32 %v930_v12, %v909_v5  ;;  %v1115_v12 = vld [vmem:[#allocation2 + $0x588] sm:$0xff] }
 0x604   :  { %v2120_v16 = vpop.eup %2119  ;;  %v934_v17 = vmul.f32 %v931_v15, %v931_v15 }
 0x605   :  { %v945_v18 = vadd.f32 1.0, %v2120_v16  ;;  %v1106_v16 = vld [vmem:[#allocation2 + $0x540] sm:$0xff] }
 0x606   :  { %v936_v19 = vmul.f32 %v934_v17, %v931_v15  ;;  %v1107_v17 = vld [vmem:[#allocation2 + $0x548] sm:$0xff] }
 0x607   :  { %v947_v0 = vmul.f32 0.5, %v945_v18  ;;  %v1108_v18 = vld [vmem:[#allocation2 + $0x550] sm:$0xff]  ;;  %1192 = vmatpush.msra.mxu0 %v1107_v17 }
 0x608   :  { %v938_v20 = vmul.f32 0.044715, %v936_v19  ;;  %v1130_v19 = vld [vmem:[#allocation2 + $0x600] sm:$0xff] }
 0x609   :  { %v949_v22 = vmul.f32 %v947_v0, %v928_v8  ;;  %v1120_v8 = vld [vmem:[#allocation2 + $0x5b0] sm:$0xff]  ;;  %v1099_v0 = vld [vmem:[#allocation2 + $0x508] sm:$0xff] }
 0x60a   :  { %v940_v23 = vadd.f32 %v938_v20, %v931_v15  ;;  %1167 = vmatpush.msra.mxu3 %v1120_v8  ;;  %v1100_v20 = vld [vmem:[#allocation2 + $0x510] sm:$0xff]  ;;  %v1146_v8 = vld [vmem:[#allocation2 + $0x680] sm:$0xff] }
 0x60b   :  { %983 = vmatmul.f32.vlgmr.msrb.gmra.mxu2 %v949_v22  ;;  %v1101_v22 = vld [vmem:[#allocation2 + $0x518] sm:$0xff]  ;;  %1193 = vmatpush.msra.mxu0 %v1100_v20  ;;  %v1126_v20 = vld [vmem:[#allocation2 + $0x5e0] sm:$0xff] }
 0x60c   :  { %v942_v24 = vmul.f32 0.7978846, %v940_v23  ;;  %1168 = vmatpush.msra.mxu3 %v1113_v11  ;;  %v1123_v23 = vld [vmem:[#allocation2 + $0x5c8] sm:$0xff] }
 0x60d   :  { %v1139_v11 = vld [vmem:[#allocation2 + $0x648] sm:$0xff] }
 0x60e   :  { %2121 = vtanh.f32 %v942_v24  ;;  %1169 = vmatpush.msra.mxu3 %v1106_v16  ;;  %v1092_v24 = vld [vmem:[#allocation2 + $0x4d0] sm:$0xff]  ;;  %v1133_v16 = vld [vmem:[#allocation2 + $0x618] sm:$0xff] }
 0x610   :  { %1170 = vmatpush.msra.mxu3 %v1099_v0  ;;  %v1125_v0 = vld [vmem:[#allocation2 + $0x5d8] sm:$0xff] }
 0x612   :  { %1171 = vmatpush.msra.mxu3 %v1092_v24  ;;  %v1118_v24 = vld [vmem:[#allocation2 + $0x5a0] sm:$0xff] }
 0x614   :  { %v2122_v25 = vpop.eup %2121 }
 0x615   :  { %v946_v26 = vadd.f32 1.0, %v2122_v25  ;;  %v1093_v25 = vld [vmem:[#allocation2 + $0x4d8] sm:$0xff] }
 0x616   :  { %1194 = vmatpush.msra.mxu0 %v1093_v25  ;;  %v1119_v25 = vld [vmem:[#allocation2 + $0x5a8] sm:$0xff] }
 0x617   :  { %v948_v27 = vmul.f32 0.5, %v946_v26  ;;  %v1094_v26 = vld [vmem:[#allocation2 + $0x4e0] sm:$0xff] }
 0x619   :  { %v950_v29 = vmul.f32 %v948_v27, %v931_v15  ;;  %v1137_v15 = vld [vmem:[#allocation2 + $0x638] sm:$0xff]  ;;  %v1116_v27 = vld [vmem:[#allocation2 + $0x590] sm:$0xff] }
 0x61a   :  { %1234 = vmatpush.msra.mxu2 %v1137_v15  ;;  %v1132_v15 = vld [vmem:[#allocation2 + $0x610] sm:$0xff] }
 0x61b   :  { %986 = vmatmul.f32.gmra.mxu2 %v950_v29  ;;  %v1085_v29 = vld [vmem:[#allocation2 + $0x498] sm:$0xff] }
 0x61c   :  { %1235 = vmatpush.msra.mxu2 %v1130_v19  ;;  %1172 = vmatpush.msra.mxu3 %v1085_v29  ;;  %v1124_v19 = vld [vmem:[#allocation2 + $0x5d0] sm:$0xff] }
 0x61d   :  { %v1112_v29 = vld [vmem:[#allocation2 + $0x570] sm:$0xff] }
 0x61e   :  { %1236 = vmatpush.msra.mxu2 %v1123_v23  ;;  %v1117_v23 = vld [vmem:[#allocation2 + $0x598] sm:$0xff] }
 0x620   :  { %1237 = vmatpush.msra.mxu2 %v1116_v27  ;;  %v1111_v27 = vld [vmem:[#allocation2 + $0x568] sm:$0xff] }
 0x68e   :  { %v984_v31 = vpop.f32.mrf.mxu2 }
 0x68f   :  { %v990_v32 = vadd.f32 %v984_v31, %v2542_v37  ;;  %v1157_v37 = vld [vmem:[#allocation2 + $0x6d8] sm:$0xff]  ;;  %v1087_v31 = vld [vmem:[#allocation2 + $0x4a8] sm:$0xff] }
 0x690   :  { %1208 = vmatpush.msra.mxu1 %v1157_v37  ;;  %v1073_v37 = vld [vmem:[#allocation2 + $0x438] sm:$0xff] }
 0x691   :  { %v2574_v33 = vadd.f32 %v992_v30, %v990_v32  ;;  %v1109_v32 = vld [vmem:[#allocation2 + $0x558] sm:$0xff] }
 0x692   :  { %1209 = vmatpush.msra.mxu1 %v1150_v43  ;;  %1238 = vmatpush.msra.mxu2 %v1109_v32  ;;  %v1065_v43 = vld [vmem:[#allocation2 + $0x3f8] sm:$0xff] }
 0x693   :  { %v997_v34 = vsel %vm106_vm0, %v2574_v33, 0.0  ;;  %v1105_v32 = vld [vmem:[#allocation2 + $0x538] sm:$0xff] }
 0x694   :  { %999 = vadd.xlane.f32.xlu0 %v997_v34 }
 0x69e   :  { %v987_v35 = vpop.f32.mrf.mxu2 }
 0x69f   :  { %v991_v59 = vadd.f32 %v987_v35, %v2550_v42  ;;  %v1143_v42 = vld [vmem:[#allocation2 + $0x668] sm:$0xff] }
 0x6a0   :  { %1210 = vmatpush.msra.mxu1 %v1143_v42  ;;  %v1079_v35 = vld [vmem:[#allocation2 + $0x468] sm:$0xff]  ;;  %v1057_v42 = vld [vmem:[#allocation2 + $0x3b8] sm:$0xff] }
 0x6a1   :  { %v2580_v41 = vadd.f32 %v992_v30, %v991_v59  ;;  %v1086_v30 = vld [vmem:[#allocation2 + $0x4a0] sm:$0xff]  ;;  %v1080_v59 = vld [vmem:[#allocation2 + $0x470] sm:$0xff] }
 0x6a2   :  { %1211 = vmatpush.msra.mxu1 %v1136_v51  ;;  %1195 = vmatpush.msra.mxu0 %v1086_v30  ;;  %v1050_v51 = vld [vmem:[#allocation2 + $0x380] sm:$0xff]  ;;  %v1103_v30 = vld [vmem:[#allocation2 + $0x528] sm:$0xff] }
 0x6a3   :  { %v998_v36 = vsel %vm106_vm0, %v2580_v41, 0.0 }
 0x6a4   :  { %1001 = vadd.xlane.f32.xlu1 %v998_v36  ;;  %1212 = vmatpush.msra.mxu1 %v1129_v54  ;;  %v1074_v54 = vld [vmem:[#allocation2 + $0x440] sm:$0xff] }
 0x6a5   :  { %1196 = vmatpush.msra.mxu0 %v1079_v35  ;;  %v1097_v35 = vld [vmem:[#allocation2 + $0x4f8] sm:$0xff] }
 0x6a6   :  { %1213 = vmatpush.msra.mxu1 %v1122_v45  ;;  %v1053_v45 = vld [vmem:[#allocation2 + $0x398] sm:$0xff] }
 0x6a7   :  { %1197 = vmatpush.msra.mxu0 %v1072_v60 }
 0x6a8   :  { %1214 = vmatpush.msra.mxu1 %v1115_v12  ;;  %v1131_v12 = vld [vmem:[#allocation2 + $0x608] sm:$0xff] }
 0x6a9   :  { %1198 = vmatpush.msra.mxu0 %v1065_v43  ;;  %v1083_v43 = vld [vmem:[#allocation2 + $0x488] sm:$0xff] }
 0x6aa   :  { %1215 = vmatpush.msra.mxu1 %v1108_v18 }
 0x6ab   :  { %1199 = vmatpush.msra.mxu0 %v1058_v47  ;;  %v1076_v47 = vld [vmem:[#allocation2 + $0x450] sm:$0xff] }
 0x6ac   :  { %1216 = vmatpush.msra.mxu1 %v1101_v22 }
 0x6ad   :  { %1200 = vmatpush.msra.mxu0 %v1051_v52  ;;  %v1068_v52 = vld [vmem:[#allocation2 + $0x410] sm:$0xff] }
 0x6ae   :  { %1217 = vmatpush.msra.mxu1 %v1094_v26  ;;  %v1110_v26 = vld [vmem:[#allocation2 + $0x560] sm:$0xff] }
 0x6b0   :  { %1218 = vmatpush.msra.mxu1 %v1087_v31  ;;  %v1104_v31 = vld [vmem:[#allocation2 + $0x530] sm:$0xff] }
 0x6b2   :  { %1219 = vmatpush.msra.mxu1 %v1080_v59  ;;  %v1098_v59 = vld [vmem:[#allocation2 + $0x500] sm:$0xff] }
 0x6b4   :  { %1220 = vmatpush.msra.mxu1 %v1073_v37  ;;  %v1091_v37 = vld [vmem:[#allocation2 + $0x4c8] sm:$0xff] }
 0x6b6   :  { %1221 = vmatpush.msra.mxu1 %v1066_v44  ;;  %v1084_v44 = vld [vmem:[#allocation2 + $0x490] sm:$0xff] }
 0x6b8   :  { %1222 = vmatpush.msra.mxu1 %v1059_v49  ;;  %v1077_v49 = vld [vmem:[#allocation2 + $0x458] sm:$0xff] }
 0x6ba   :  { %1223 = vmatpush.msra.mxu1 %v1052_v53  ;;  %v1069_v53 = vld [vmem:[#allocation2 + $0x418] sm:$0xff] }
 0x707   :  { %v1000_v55 = vpop.xlane.xlu0 %999 }
 0x708   :  { %v1003_v56 = vmul.f32 0.03125, %v1000_v55  ;;  %v1159_v55 = vld [vmem:[#allocation2 + $0x6e8] sm:$0xff] }
 0x70a   :  { %v1005_v58 = vsub.f32 %v997_v34, %v1003_v56  ;;  %v1078_v34 = vld [vmem:[#allocation2 + $0x460] sm:$0xff]  ;;  %v1160_v56 = vld [vmem:[#allocation2 + $0x6f0] sm:$0xff] }
 0x70b   :  { %1173 = vmatpush.msra.mxu3 %v1078_v34  ;;  %1277 = vmatpush.msrb.mxu0 %v1160_v56  ;;  %v1096_v34 = vld [vmem:[#allocation2 + $0x4f0] sm:$0xff]  ;;  %v2604_v56 = vld [vmem:[%s2790_s8 + $0x8] sm:$0xff] }
 0x70c   :  { %v2587_v62 = vsel %vm106_vm0, %v1005_v58, 0.0  ;;  %v1161_v58 = vld [vmem:[#allocation2 + $0x6f8] sm:$0xff] }
 0x70d   :  { %v1009_v61 = vmul.f32 %v2587_v62, %v2587_v62  ;;  %1174 = vmatpush.msra.mxu3 %v1071_v21  ;;  %1300 = vmatpush.msrb.mxu1 %v1161_v58  ;;  %v1090_v21 = vld [vmem:[#allocation2 + $0x4c0] sm:$0xff] }
 0x70f   :  { %1011 = vadd.xlane.f32.xlu2 %v1009_v61  ;;  %1175 = vmatpush.msra.mxu3 %v1064_v39  ;;  %v1067_v61 = vld [vmem:[#allocation2 + $0x408] sm:$0xff]  ;;  %v1082_v39 = vld [vmem:[#allocation2 + $0x480] sm:$0xff] }
 0x711   :  { %1176 = vmatpush.msra.mxu3 %v1057_v42  ;;  %v1075_v42 = vld [vmem:[#allocation2 + $0x448] sm:$0xff] }
 0x713   :  { %1177 = vmatpush.msra.mxu3 %v1050_v51 }
 0x715   :  { %1254 = vmatpush.msrb.mxu3 %v1159_v55  ;;  %v1070_v55 = vld [vmem:[#allocation2 + $0x420] sm:$0xff] }
 0x717   :  { %v1002_v63 = vpop.xlane.xlu1 %1001 }
 0x718   :  { %v1004_v2 = vmul.f32 0.03125, %v1002_v63  ;;  %v1152_v63 = vld [vmem:[#allocation2 + $0x6b0] sm:$0xff] }
 0x719   :  { %1255 = vmatpush.msrb.mxu3 %v1152_v63  ;;  %v1062_v63 = vld [vmem:[#allocation2 + $0x3e0] sm:$0xff] }
 0x71a   :  { %v1006_v3 = vsub.f32 %v998_v36, %v1004_v2  ;;  %v1102_v36 = vld [vmem:[#allocation2 + $0x520] sm:$0xff]  ;;  %v1153_v2 = vld [vmem:[#allocation2 + $0x6b8] sm:$0xff] }
 0x71b   :  { %1239 = vmatpush.msra.mxu2 %v1102_v36  ;;  %1278 = vmatpush.msrb.mxu0 %v1153_v2  ;;  %v1089_v36 = vld [vmem:[#allocation2 + $0x4b8] sm:$0xff] }
 0x71c   :  { %v2593_v4 = vsel %vm106_vm0, %v1006_v3, 0.0  ;;  %v1154_v3 = vld [vmem:[#allocation2 + $0x6c0] sm:$0xff]  ;;  %1256 = vmatpush.msrb.mxu3 %v1145_v7 }
 0x71d   :  { %v1010_v5 = vmul.f32 %v2593_v4, %v2593_v4  ;;  %1240 = vmatpush.msra.mxu2 %v1095_v38  ;;  %1301 = vmatpush.msrb.mxu1 %v1154_v3  ;;  %v1063_v3 = vld [vmem:[#allocation2 + $0x3e8] sm:$0xff]  ;;  %v1054_v7 = vld [vmem:[#allocation2 + $0x3a0] sm:$0xff] }
 0x71e   :  { %1279 = vmatpush.msrb.mxu0 %v1146_v8  ;;  %1257 = vmatpush.msrb.mxu3 %v1138_v6  ;;  %v1055_v8 = vld [vmem:[#allocation2 + $0x3a8] sm:$0xff] }
 0x71f   :  { %1013 = vadd.xlane.f32.xlu0 %v1010_v5  ;;  %1241 = vmatpush.msra.mxu2 %v1088_v46  ;;  %v1060_v5 = vld [vmem:[#allocation2 + $0x3d0] sm:$0xff] }
 0x720   :  { %1302 = vmatpush.msrb.mxu1 %v1147_v9  ;;  %1280 = vmatpush.msrb.mxu0 %v1139_v11  ;;  %v1041_v9 = vperm.slane %v2604_v56, 0 }
 0x721   :  { %1242 = vmatpush.msra.mxu2 %v1081_v50  ;;  %1258 = vmatpush.msrb.mxu3 %v1131_v12 }
 0x722   :  { %1303 = vmatpush.msrb.mxu1 %v1140_v57  ;;  %1281 = vmatpush.msrb.mxu0 %v1132_v15  ;;  %v1044_v57 = vperm.slane %v2604_v56, 1 }
 0x723   :  { %1243 = vmatpush.msra.mxu2 %v1074_v54  ;;  %1259 = vmatpush.msrb.mxu3 %v1124_v19 }
 0x724   :  { %1304 = vmatpush.msrb.mxu1 %v1133_v16  ;;  %1282 = vmatpush.msrb.mxu0 %v1125_v0 }
 0x725   :  { %1244 = vmatpush.msra.mxu2 %v1067_v61  ;;  %1260 = vmatpush.msrb.mxu3 %v1117_v23  ;;  %v1061_v61 = vld [vmem:[#allocation2 + $0x3d8] sm:$0xff] }
 0x726   :  { %1305 = vmatpush.msrb.mxu1 %v1126_v20  ;;  %1283 = vmatpush.msrb.mxu0 %v1118_v24 }
 0x727   :  { %1245 = vmatpush.msra.mxu2 %v1060_v5  ;;  %1261 = vmatpush.msrb.mxu3 %v1110_v26 }
 0x728   :  { %1306 = vmatpush.msrb.mxu1 %v1119_v25  ;;  %1284 = vmatpush.msrb.mxu0 %v1111_v27 }
 0x729   :  { %1246 = vmatpush.msra.mxu2 %v1053_v45  ;;  %1262 = vmatpush.msrb.mxu3 %v1103_v30  ;;  %v1056_v45 = vld [vmem:[#allocation2 + $0x3b0] sm:$0xff] }
 0x72a   :  { %1307 = vmatpush.msrb.mxu1 %v1112_v29  ;;  %1285 = vmatpush.msrb.mxu0 %v1104_v31 }
 0x72b   :  { %1263 = vmatpush.msrb.mxu3 %v1096_v34 }
 0x72c   :  { %1308 = vmatpush.msrb.mxu1 %v1105_v32  ;;  %1286 = vmatpush.msrb.mxu0 %v1097_v35 }
 0x72d   :  { %1264 = vmatpush.msrb.mxu3 %v1089_v36 }
 0x72e   :  { %1309 = vmatpush.msrb.mxu1 %v1098_v59  ;;  %1287 = vmatpush.msrb.mxu0 %v1090_v21 }
 0x72f   :  { %1265 = vmatpush.msrb.mxu3 %v1082_v39 }
 0x730   :  { %1310 = vmatpush.msrb.mxu1 %v1091_v37  ;;  %1288 = vmatpush.msrb.mxu0 %v1083_v43 }
 0x731   :  { %1266 = vmatpush.msrb.mxu3 %v1075_v42 }
 0x732   :  { %1311 = vmatpush.msrb.mxu1 %v1084_v44  ;;  %1289 = vmatpush.msrb.mxu0 %v1076_v47 }
 0x733   :  { %1267 = vmatpush.msrb.mxu3 %v1068_v52 }
 0x734   :  { %1312 = vmatpush.msrb.mxu1 %v1077_v49  ;;  %1290 = vmatpush.msrb.mxu0 %v1069_v53 }
 0x735   :  { %1268 = vmatpush.msrb.mxu3 %v1061_v61 }
 0x736   :  { %1313 = vmatpush.msrb.mxu1 %v1070_v55  ;;  %1291 = vmatpush.msrb.mxu0 %v1062_v63 }
 0x737   :  { %1269 = vmatpush.msrb.mxu3 %v1054_v7 }
 0x738   :  { %1314 = vmatpush.msrb.mxu1 %v1063_v3  ;;  %1292 = vmatpush.msrb.mxu0 %v1055_v8 }
 0x73a   :  { %1315 = vmatpush.msrb.mxu1 %v1056_v45 }
 0x782   :  { %v1012_v17 = vpop.xlane.xlu2 %1011 }
 0x783   :  { %v1015_v18 = vmul.f32 0.03125, %v1012_v17 }
 0x785   :  { %v2597_v22 = vadd.f32 1e-05, %v1015_v18 }
 0x787   :  { %2123 = vrsqrt.f32 %v2597_v22  ;;  %vm1025_vm10 = vweird.f32 %v2597_v22 }
 0x78d   :  { %v2124_v60 = vpop.eup %2123 }
 0x78e   :  { %v1020_v38 = vmul.f32 %v2124_v60, %v2597_v22  ;;  %vm1026_vm6 = vweird.f32 %v2124_v60 }
 0x78f   :  { %vm1027_vm11 = vmor %vm1025_vm10, %vm1026_vm6 }
 0x790   :  { %v1021_v46 = vmul.f32 %v2124_v60, %v1020_v38 }
 0x792   :  { %v1022_v50 = vmul.f32 0.5, %v1021_v46  ;;  %v1014_v51 = vpop.xlane.xlu0 %1013 }
 0x793   :  { %v1016_v54 = vmul.f32 0.03125, %v1014_v51 }
 0x794   :  { %v1023_v58 = vsub.f32 1.5, %v1022_v50 }
 0x795   :  { %v1018_v2 = vadd.f32 1e-05, %v1016_v54 }
 0x796   :  { %v1024_v5 = vmul.f32 %v2124_v60, %v1023_v58 }
 0x797   :  { %2125 = vrsqrt.f32 %v1018_v2  ;;  %vm1035_vm13 = vweird.f32 %v1018_v2 }
 0x798   :  { %v1028_v6 = vsel %vm1027_vm11, %v2124_v60, %v1024_v5 }
 0x799   :  { %v1039_v11 = vmul.f32 %v1028_v6, %v2587_v62 }
 0x79b   :  { %v1042_v12 = vmul.f32 %v1041_v9, %v1039_v11 }
 0x79d   :  { %v2126_v15 = vpop.eup %2125  ;;  %v1045_v16 = vadd.f32 %v1044_v57, %v1042_v12 }
 0x79e   :  { %v1030_v17 = vmul.f32 %v2126_v15, %v1018_v2  ;;  %vm1036_vm12 = vweird.f32 %v2126_v15 }
 0x79f   :  { %v1047_v18 = vsel %vm107_vm7, 1.0, %v1045_v16  ;;  %vm1037_vm14 = vmor %vm1035_vm13, %vm1036_vm12 }
 0x7a0   :  { %v1031_v19 = vmul.f32 %v2126_v15, %v1030_v17  ;;  %1178 = vmatmul.f32.vlgmr.msra.gmra.mxu3 %v1047_v18  ;;  %1201 = vmatmul.f32.vlgmr.msra.gmra.mxu0 %v1047_v18 }
 0x7a1   :  { %1224 = vmatmul.f32.vlgmr.msra.gmra.mxu1 %v1047_v18  ;;  %1247 = vmatmul.f32.vlgmr.msra.gmra.mxu2 %v1047_v18 }
 0x7a2   :  { %v1032_v0 = vmul.f32 0.5, %v1031_v19 }
 0x7a4   :  { %v1033_v20 = vsub.f32 1.5, %v1032_v0 }
 0x7a6   :  { %v1034_v62 = vmul.f32 %v2126_v15, %v1033_v20 }
 0x7a8   :  { %v1038_v22 = vsel %vm1037_vm14, %v2126_v15, %v1034_v62 }
 0x7a9   :  { %v1040_v23 = vmul.f32 %v1038_v22, %v2593_v4 }
 0x7ab   :  { %v1043_v24 = vmul.f32 %v1041_v9, %v1040_v23 }
 0x7ad   :  { %v1046_v25 = vadd.f32 %v1044_v57, %v1043_v24 }
 0x7af   :  { %v1048_v26 = vsel %vm107_vm7, 1.0, %v1046_v25 }
 0x7b0   :  { %1181 = vmatmul.f32.gmra.mxu3 %v1048_v26  ;;  %1204 = vmatmul.f32.gmra.mxu0 %v1048_v26 }
 0x7b1   :  { %1227 = vmatmul.f32.gmra.mxu1 %v1048_v26  ;;  %1250 = vmatmul.f32.gmra.mxu2 %v1048_v26 }
 0x7b8   :  { %1270 = vmatmul.f32.vlgmr.msrb.gmra.mxu3 %v1047_v18  ;;  %1293 = vmatmul.f32.vlgmr.msrb.gmra.mxu0 %v1047_v18 }
 0x7b9   :  { %1316 = vmatmul.f32.vlgmr.msrb.gmra.mxu1 %v1047_v18 }
 0x7c0   :  { %1273 = vmatmul.f32.gmra.mxu3 %v1048_v26  ;;  %1296 = vmatmul.f32.gmra.mxu0 %v1048_v26 }
 0x7c1   :  { %1319 = vmatmul.f32.gmra.mxu1 %v1048_v26 }
 0x81d   :  { %v1202_v4 = vpop.f32.mrf.mxu0 }
 0x81e   :  { %v1225_v27 = vpop.f32.mrf.mxu1 }
 0x81f   :  { %1356 = vmatpush.xpose.msrb.mxu2 %v1225_v27 }
 0x823   :  { %v1179_v29 = vpop.f32.mrf.mxu3 }
 0x824   :  { %v1248_v30 = vpop.f32.mrf.mxu2  ;;  %1357 = vmatmul.f32.vlgmr.msrb.gmra.mxu2 %v1179_v29 }
 0x825   :  { %1434 = vmatpush.xpose.msra.mxu2 %v1248_v30 }
 0x82c   :  { %1435 = vmatmul.f32.vlgmr.msra.gmra.mxu2 %v1202_v4 }
 0x82d   :  { %v1205_v32 = vpop.f32.mrf.mxu0 }
 0x82e   :  { %v1228_v31 = vpop.f32.mrf.mxu1 }
 0x82f   :  { %1511 = vmatpush.xpose.msrb.mxu2 %v1228_v31 }
 0x833   :  { %v1182_v34 = vpop.f32.mrf.mxu3 }
 0x834   :  { %v1251_v35 = vpop.f32.mrf.mxu2  ;;  %1512 = vmatmul.f32.vlgmr.msrb.gmra.mxu2 %v1182_v34 }
 0x835   :  { %1589 = vmatpush.xpose.msra.mxu2 %v1251_v35  ;;  %v1294_v38 = vpop.f32.mrf.mxu0 }
 0x836   :  { %v1317_v59 = vpop.f32.mrf.mxu1 }
 0x837   :  { %v1325_v36 = vand.u32 2147483647, %v1317_v59  ;;  %v1323_v52 = vmin.f32 %v1317_v59, 0.0 }
 0x839   :  { %v1327_v21 = vsub.f32 0.0, %v1325_v36 }
 0x83b   :  { %v1329_v60 = vmul.f32 1.442695, %v1327_v21  ;;  %v1271_v37 = vpop.f32.mrf.mxu3 }
 0x83c   :  { %1390 = vmatpush.msra.mxu3 %v1271_v37  ;;  %1590 = vmatmul.f32.vlgmr.msra.gmra.mxu2 %v1205_v32 }
 0x83d   :  { %2127 = vpow2.f32 %v1329_v60  ;;  %v1297_v25 = vpop.f32.mrf.mxu0 }
 0x83e   :  { %1467 = vmatpush.msrb.mxu3 %v1294_v38  ;;  %v1320_v39 = vpop.f32.mrf.mxu1  ;;  %v1667_v38 = vld [vmem:[#allocation5 + $0xf8] sm:$0xff] }
 0x83f   :  { %v1326_v43 = vand.u32 2147483647, %v1320_v39  ;;  %v1324_v58 = vmin.f32 %v1320_v39, 0.0  ;;  %1668 = vmatpush.msra.mxu0 %v1667_v38  ;;  %v1666_v39 = vld [vmem:[#allocation5 + $0xf0] sm:$0xff] }
 0x841   :  { %v1328_v44 = vsub.f32 0.0, %v1326_v43  ;;  %1669 = vmatpush.msra.mxu0 %v1666_v39  ;;  %v1665_v43 = vld [vmem:[#allocation5 + $0xe8] sm:$0xff] }
 0x843   :  { %v2128_v46 = vpop.eup %2127  ;;  %v1331_v42 = vmul.f32 1.442695, %v1328_v44  ;;  %v1274_v18 = vpop.f32.mrf.mxu3  ;;  %1670 = vmatpush.msra.mxu0 %v1665_v43  ;;  %v1664_v44 = vld [vmem:[#allocation5 + $0xe0] sm:$0xff] }
 0x844   :  { %v1333_v47 = vadd.f32 1.0, %v2128_v46  ;;  %v1663_v46 = vld [vmem:[#allocation5 + $0xd8] sm:$0xff] }
 0x845   :  { %2129 = vpow2.f32 %v1331_v42  ;;  %1671 = vmatpush.msra.mxu0 %v1664_v44  ;;  %v1662_v42 = vld [vmem:[#allocation5 + $0xd0] sm:$0xff] }
 0x846   :  { %2131 = vlog2.f32 %v1333_v47  ;;  %v1661_v47 = vld [vmem:[#allocation5 + $0xc8] sm:$0xff] }
 0x847   :  { %1672 = vmatpush.msra.mxu0 %v1663_v46 }
 0x849   :  { %1673 = vmatpush.msra.mxu0 %v1662_v42 }
 0x84b   :  { %v2130_v49 = vpop.eup %2129  ;;  %1674 = vmatpush.msra.mxu0 %v1661_v47 }
 0x84c   :  { %v2132_v50 = vpop.eup %2131  ;;  %v1334_v51 = vadd.f32 1.0, %v2130_v49  ;;  %v1660_v49 = vld [vmem:[#allocation5 + $0xc0] sm:$0xff] }
 0x84d   :  { %v1336_v53 = vmul.f32 0.6931472, %v2132_v50  ;;  %1675 = vmatpush.msra.mxu0 %v1660_v49  ;;  %v1659_v50 = vld [vmem:[#allocation5 + $0xb8] sm:$0xff] }
 0x84e   :  { %2133 = vlog2.f32 %v1334_v51  ;;  %v1658_v51 = vld [vmem:[#allocation5 + $0xb0] sm:$0xff] }
 0x84f   :  { %v1339_v54 = vsub.f32 %v1323_v52, %v1336_v53  ;;  %1676 = vmatpush.msra.mxu0 %v1659_v50  ;;  %v1657_v52 = vld [vmem:[#allocation5 + $0xa8] sm:$0xff]  ;;  %v1656_v53 = vld [vmem:[#allocation5 + $0xa0] sm:$0xff] }
 0x851   :  { %1441 = vperm.xlu2 %2081, %v1339_v54   ;;  %1364 = vperm.xlu1 %2078, %v1339_v54  }
 0x852   :  { %1677 = vmatpush.msra.mxu0 %v1658_v51 }
 0x854   :  { %v2134_v55 = vpop.eup %2133  ;;  %1678 = vmatpush.msra.mxu0 %v1657_v52 }
 0x855   :  { %v1338_v61 = vmul.f32 0.6931472, %v2134_v55 }
 0x856   :  { %1679 = vmatpush.msra.mxu0 %v1656_v53 }
 0x857   :  { %v1340_v63 = vsub.f32 %v1324_v58, %v1338_v61  ;;  %v1655_v58 = vld [vmem:[#allocation5 + $0x98] sm:$0xff] }
 0x858   :  { %1680 = vmatpush.msra.mxu0 %v1655_v58 }
 0x859   :  { %2083 = vset.pattern.permute.xlu1 %v2312_v48  ;;  %1519 = vperm.xlu0 %2082, %v1340_v63  }
 0x85a   :  { %1596 = vperm.xlu1 %2083, %v1340_v63  }
 0x862   :  { %2084 = vset.pattern.permute.xlu1 %v2311_v40 }
 0x8a7   :  { %v1358_v8 = vpop.f32.mrf.mxu2 }
 0x8a8   :  { %v1361_v40 = vmul.f32 0.25, %v1358_v8 }
 0x8ab   :  { %v1442_v2 = vpop.permute.xlu2 %1441 }
 0x8ac   :  { %v1444_v5 = vmul.f32 %v1442_v2, %v2459_v13 }
 0x8ae   :  { %v1445_v6 = vsel %vm2462_vm8, %v1444_v5, -1e+30 }
 0x8af   :  { %v1446_v48 = vmul.f32 1.442695, %v1445_v6  ;;  %v1436_v15 = vpop.f32.mrf.mxu2 }
 0x8b0   :  { %v1439_v62 = vmul.f32 0.25, %v1436_v15 }
 0x8b7   :  { %v1513_v24 = vpop.f32.mrf.mxu2 }
 0x8b8   :  { %v1516_v29 = vmul.f32 0.25, %v1513_v24 }
 0x8c3   :  { %v1365_v3 = vpop.permute.xlu1 %1364 }
 0x8c4   :  { %v1367_v7 = vmul.f32 %v1365_v3, %v2459_v13  ;;  %v1654_v3 = vld [vmem:[#allocation5 + $0x90] sm:$0xff] }
 0x8c5   :  { %1681 = vmatpush.msra.mxu0 %v1654_v3 }
 0x8c6   :  { %v1368_v9 = vsel %vm2462_vm8, %v1367_v7, -1e+30  ;;  %v1653_v7 = vld [vmem:[#allocation5 + $0x88] sm:$0xff] }
 0x8c7   :  { %v1369_v45 = vmul.f32 1.442695, %v1368_v9  ;;  %1682 = vmatpush.msra.mxu0 %v1653_v7  ;;  %v1652_v9 = vld [vmem:[#allocation5 + $0x80] sm:$0xff] }
 0x8c9   :  { %2135 = vpow2.f32 %v1369_v45  ;;  %1683 = vmatpush.msra.mxu0 %v1652_v9 }
 0x8ca   :  { %2137 = vpow2.f32 %v1446_v48 }
 0x8cb   :  { %v1520_v11 = vpop.permute.xlu0 %1519 }
 0x8cc   :  { %v1522_v57 = vmul.f32 %v1520_v11, %v2473_v28  ;;  %v1597_v17 = vpop.permute.xlu1 %1596 }
 0x8cd   :  { %v1599_v0 = vmul.f32 %v1597_v17, %v2473_v28  ;;  %v1591_v28 = vpop.f32.mrf.mxu2 }
 0x8ce   :  { %v1523_v13 = vsel %vm2462_vm8, %v1522_v57, -1e+30  ;;  %v1594_v31 = vmul.f32 0.25, %v1591_v28 }
 0x8cf   :  { %v2136_v12 = vpop.eup %2135  ;;  %v1524_v19 = vmul.f32 1.442695, %v1523_v13  ;;  %v1600_v23 = vsel %vm2462_vm8, %v1599_v0, -1e+30 }
 0x8d0   :  { %v1371_v16 = vmul.f32 %v2136_v12, %v1361_v40  ;;  %v2138_v20 = vpop.eup %2137  ;;  %v1601_v26 = vmul.f32 1.442695, %v1600_v23 }
 0x8d1   :  { %2139 = vpow2.f32 %v1524_v19  ;;  %v1448_v22 = vmul.f32 %v2138_v20, %v1439_v62 }
 0x8d2   :  { %2058 = vmatmul.msk.f32.vlgmr.msra.gmra.mxu3 %vm500_vm9, %v1371_v16  ;;  %2141 = vpow2.f32 %v1601_v26 }
 0x8d3   :  { %1545 = vmatpush.msra.mxu3 %v1274_v18 }
 0x8d7   :  { %v2140_v27 = vpop.eup %2139 }
 0x8d8   :  { %v1526_v30 = vmul.f32 %v2140_v27, %v1516_v29  ;;  %v2142_v4 = vpop.eup %2141 }
 0x8d9   :  { %v1603_v32 = vmul.f32 %v2142_v4, %v1594_v31 }
 0x8da   :  { %2059 = vmatmul.msk.f32.vlgmr.msrb.gmra.mxu3 %vm500_vm9, %v1448_v22 }
 0x8db   :  { %1622 = vmatpush.msrb.mxu3 %v1297_v25 }
 0x8e2   :  { %2060 = vmatmul.msk.f32.vlgmr.msra.gmra.mxu3 %vm500_vm9, %v1526_v30 }
 0x8ea   :  { %2061 = vmatmul.msk.f32.vlgmr.msrb.gmra.mxu3 %vm500_vm9, %v1603_v32 }
 0x955   :  { %v2633_v14 = vpop.f32.mrf.mxu3 }
 0x956   :  { %1395 = vadd.xlane.f32.xlu2 %v2633_v14  ;;  %v1398_v34 = vmul.f32 %v2633_v14, %v2633_v14 }
 0x958   :  { %1399 = vadd.xlane.f32.xlu0 %v1398_v34 }
 0x95d   :  { %v2638_v35 = vpop.f32.mrf.mxu3 }
 0x95e   :  { %1472 = vadd.xlane.f32.xlu1 %v2638_v35  ;;  %v1475_v59 = vmul.f32 %v2638_v35, %v2638_v35 }
 0x960   :  { %1476 = vadd.xlane.f32.xlu2 %v1475_v59 }
 0x965   :  { %v2643_v36 = vpop.f32.mrf.mxu3 }
 0x966   :  { %1550 = vadd.xlane.f32.xlu1 %v2643_v36  ;;  %v1553_v21 = vmul.f32 %v2643_v36, %v2643_v36 }
 0x96d   :  { %v2648_v60 = vpop.f32.mrf.mxu3 }
 0x96e   :  { %1554 = vadd.xlane.f32.xlu1 %v1553_v21  ;;  %1627 = vadd.xlane.f32.xlu2 %v2648_v60  ;;  %v1630_v37 = vmul.f32 %v2648_v60, %v2648_v60 }
 0x976   :  { %1631 = vadd.xlane.f32.xlu2 %v1630_v37 }
 0x9c9   :  { %v1396_v54 = vpop.xlane.xlu2 %1395 }
 0x9ca   :  { %v1397_v55 = vmul.f32 0.0625, %v1396_v54 }
 0x9cb   :  { %v1400_v61 = vpop.xlane.xlu0 %1399 }
 0x9cc   :  { %v1402_v63 = vmul.f32 %v1397_v55, %v1397_v55  ;;  %v1401_v2 = vmul.f32 0.0625, %v1400_v61  ;;  %v1404_v34 = vsub.f32 %v2633_v14, %v1397_v55 }
 0x9ce   :  { %v1403_v5 = vsub.f32 %v1401_v2, %v1402_v63 }
 0x9d0   :  { %v1405_v8 = vadd.f32 1e-05, %v1403_v5 }
 0x9d1   :  { %v1473_v45 = vpop.xlane.xlu1 %1472 }
 0x9d2   :  { %2143 = vrsqrt.f32 %v1405_v8  ;;  %v1474_v6 = vmul.f32 0.0625, %v1473_v45  ;;  %vm1412_vm8 = vweird.f32 %v1405_v8 }
 0x9d3   :  { %v1477_v48 = vpop.xlane.xlu2 %1476 }
 0x9d4   :  { %v1479_v11 = vmul.f32 %v1474_v6, %v1474_v6  ;;  %v1478_v57 = vmul.f32 0.0625, %v1477_v48  ;;  %v1481_v37 = vsub.f32 %v2638_v35, %v1474_v6 }
 0x9d6   :  { %v1480_v40 = vsub.f32 %v1478_v57, %v1479_v11 }
 0x9d8   :  { %v2144_v12 = vpop.eup %2143  ;;  %v1482_v15 = vadd.f32 1e-05, %v1480_v40 }
 0x9d9   :  { %v1407_v16 = vmul.f32 %v2144_v12, %v1405_v8  ;;  %v1551_v13 = vpop.xlane.xlu1 %1550  ;;  %vm1413_vm7 = vweird.f32 %v2144_v12 }
 0x9da   :  { %2145 = vrsqrt.f32 %v1482_v15  ;;  %v1552_v19 = vmul.f32 0.0625, %v1551_v13  ;;  %vm1414_vm9 = vmor %vm1412_vm8, %vm1413_vm7  ;;  %vm1489_vm1 = vweird.f32 %v1482_v15 }
 0x9db   :  { %v1408_v17 = vmul.f32 %v2144_v12, %v1407_v16 }
 0x9dc   :  { %v1557_v24 = vmul.f32 %v1552_v19, %v1552_v19  ;;  %v1559_v7 = vsub.f32 %v2643_v36, %v1552_v19  ;;  %v1762_v19 = vld [vmem:[#allocation7 + $0xf8] sm:$0xff] }
 0x9dd   :  { %v1409_v18 = vmul.f32 0.5, %v1408_v17  ;;  %1764 = vmatpush.msra.mxu1 %v1762_v19  ;;  %v1815_v19 = vld [vmem:[#allocation8 + $0xc8] sm:$0xff] }
 0x9df   :  { %v1410_v0 = vsub.f32 1.5, %v1409_v18 }
 0x9e0   :  { %v2146_v20 = vpop.eup %2145 }
 0x9e1   :  { %v1484_v62 = vmul.f32 %v2146_v20, %v1482_v15  ;;  %v1555_v22 = vpop.xlane.xlu1 %1554  ;;  %v1628_v23 = vpop.xlane.xlu2 %1627  ;;  %v1411_v26 = vmul.f32 %v2144_v12, %v1410_v0  ;;  %vm1490_vm15 = vweird.f32 %v2146_v20  ;;  %v1761_v0 = vld [vmem:[#allocation7 + $0xf0] sm:$0xff] }
 0x9e2   :  { %v1556_v25 = vmul.f32 0.0625, %v1555_v22  ;;  %v1629_v4 = vmul.f32 0.0625, %v1628_v23  ;;  %vm1491_vm4 = vmor %vm1489_vm1, %vm1490_vm15  ;;  %1765 = vmatpush.msra.mxu1 %v1761_v0  ;;  %v1814_v0 = vld [vmem:[#allocation8 + $0xc0] sm:$0xff] }
 0x9e3   :  { %v1485_v27 = vmul.f32 %v2146_v20, %v1484_v62  ;;  %v1415_v31 = vsel %vm1414_vm9, %v2144_v12, %v1411_v26  ;;  %v1693_v12 = vperm.slane %v2604_v56, 2 }
 0x9e4   :  { %v1558_v29 = vsub.f32 %v1556_v25, %v1557_v24  ;;  %v1634_v38 = vmul.f32 %v1629_v4, %v1629_v4  ;;  %v1416_v43 = vmul.f32 %v1415_v31, %v1404_v34  ;;  %v1636_v9 = vsub.f32 %v2648_v60, %v1629_v4  ;;  %v1757_v4 = vld [vmem:[#allocation7 + $0xd0] sm:$0xff]  ;;  %v1756_v31 = vld [vmem:[#allocation7 + $0xc8] sm:$0xff]  ;;  %v1754_v34 = vld [vmem:[#allocation7 + $0xb8] sm:$0xff] }
 0x9e5   :  { %v1486_v30 = vmul.f32 0.5, %v1485_v27 }
 0x9e6   :  { %v1560_v28 = vadd.f32 1e-05, %v1558_v29  ;;  %v1417_v50 = vsel %vm547_vm2, %v1416_v43, 0.0  ;;  %v1760_v29 = vld [vmem:[#allocation7 + $0xe8] sm:$0xff] }
 0x9e7   :  { %v1487_v32 = vsub.f32 1.5, %v1486_v30  ;;  %1766 = vmatpush.msra.mxu1 %v1760_v29  ;;  %v1759_v30 = vld [vmem:[#allocation7 + $0xe0] sm:$0xff]  ;;  %v1748_v43 = vld [vmem:[#allocation7 + $0x88] sm:$0xff] }
 0x9e8   :  { %2147 = vrsqrt.f32 %v1560_v28  ;;  %vm1567_vm6 = vweird.f32 %v1560_v28 }
 0x9e9   :  { %v1488_v59 = vmul.f32 %v2146_v20, %v1487_v32  ;;  %v1632_v21 = vpop.xlane.xlu2 %1631  ;;  %1767 = vmatpush.msra.mxu1 %v1759_v30  ;;  %v1755_v32 = vld [vmem:[#allocation7 + $0xc0] sm:$0xff] }
 0x9ea   :  { %v1633_v39 = vmul.f32 0.0625, %v1632_v21  ;;  %v1752_v21 = vld [vmem:[#allocation7 + $0xa8] sm:$0xff] }
 0x9eb   :  { %v1492_v44 = vsel %vm1491_vm4, %v2146_v20, %v1488_v59  ;;  %v1753_v59 = vld [vmem:[#allocation7 + $0xb0] sm:$0xff] }
 0x9ec   :  { %v1635_v46 = vsub.f32 %v1633_v39, %v1634_v38  ;;  %v1493_v42 = vmul.f32 %v1492_v44, %v1481_v37  ;;  %v1751_v37 = vld [vmem:[#allocation7 + $0xa0] sm:$0xff]  ;;  %v1750_v38 = vld [vmem:[#allocation7 + $0x98] sm:$0xff]  ;;  %v1749_v39 = vld [vmem:[#allocation7 + $0x90] sm:$0xff] }
 0x9ed   :  { %v1747_v44 = vld [vmem:[#allocation7 + $0x80] sm:$0xff] }
 0x9ee   :  { %v2148_v47 = vpop.eup %2147  ;;  %v1637_v49 = vadd.f32 1e-05, %v1635_v46  ;;  %v1494_v14 = vsel %vm2523_vm3, %v1493_v42, 0.0 }
 0x9ef   :  { %v1562_v51 = vmul.f32 %v2148_v47, %v1560_v28  ;;  %v1495_v52 = vadd.f32 %v1494_v14, %v1417_v50  ;;  %vm1568_vm5 = vweird.f32 %v2148_v47  ;;  %v1758_v28 = vld [vmem:[#allocation7 + $0xd8] sm:$0xff] }
 0x9f0   :  { %2149 = vrsqrt.f32 %v1637_v49  ;;  %vm1569_vm10 = vmor %vm1567_vm6, %vm1568_vm5  ;;  %vm1644_vm12 = vweird.f32 %v1637_v49  ;;  %1768 = vmatpush.msra.mxu1 %v1758_v28 }
 0x9f1   :  { %v1563_v53 = vmul.f32 %v2148_v47, %v1562_v51  ;;  %1684 = vmatmul.f32.vlgmr.msra.gmra.mxu0 %v1495_v52 }
 0x9f2   :  { %1769 = vmatpush.msra.mxu1 %v1757_v4 }
 0x9f3   :  { %v1564_v35 = vmul.f32 0.5, %v1563_v53  ;;  %v1821_v53 = vld [vmem:[#allocation8 + $0xf8] sm:$0xff] }
 0x9f4   :  { %1770 = vmatpush.msra.mxu1 %v1756_v31  ;;  %1822 = vmatpush.msrb.mxu2 %v1821_v53 }
 0x9f5   :  { %v1565_v54 = vsub.f32 1.5, %v1564_v35  ;;  %v1820_v35 = vld [vmem:[#allocation8 + $0xf0] sm:$0xff] }
 0x9f6   :  { %v2150_v55 = vpop.eup %2149  ;;  %1771 = vmatpush.msra.mxu1 %v1755_v32  ;;  %1823 = vmatpush.msrb.mxu2 %v1820_v35 }
 0x9f7   :  { %v1639_v58 = vmul.f32 %v2150_v55, %v1637_v49  ;;  %v1566_v63 = vmul.f32 %v2148_v47, %v1565_v54  ;;  %vm1645_vm11 = vweird.f32 %v2150_v55 }
 0x9f8   :  { %vm1646_vm13 = vmor %vm1644_vm12, %vm1645_vm11  ;;  %1772 = vmatpush.msra.mxu1 %v1754_v34 }
 0x9f9   :  { %v1640_v61 = vmul.f32 %v2150_v55, %v1639_v58  ;;  %v1570_v5 = vsel %vm1569_vm10, %v2148_v47, %v1566_v63  ;;  %v1819_v58 = vld [vmem:[#allocation8 + $0xe8] sm:$0xff] }
 0x9fa   :  { %v1571_v45 = vmul.f32 %v1570_v5, %v1559_v7  ;;  %1773 = vmatpush.msra.mxu1 %v1753_v59  ;;  %v1743_v5 = vperm.slane %v2604_v56, 4  ;;  %1824 = vmatpush.msrb.mxu2 %v1819_v58 }
 0x9fb   :  { %v1641_v2 = vmul.f32 0.5, %v1640_v61 }
 0x9fc   :  { %v1572_v11 = vsel %vm547_vm2, %v1571_v45, 0.0  ;;  %1774 = vmatpush.msra.mxu1 %v1752_v21 }
 0x9fd   :  { %v1642_v3 = vsub.f32 1.5, %v1641_v2 }
 0x9fe   :  { %1775 = vmatpush.msra.mxu1 %v1751_v37 }
 0x9ff   :  { %v1643_v8 = vmul.f32 %v2150_v55, %v1642_v3 }
 0xa00   :  { %1776 = vmatpush.msra.mxu1 %v1750_v38 }
 0xa01   :  { %v1647_v6 = vsel %vm1646_vm13, %v2150_v55, %v1643_v8  ;;  %v1740_v55 = vperm.slane %v2604_v56, 3 }
 0xa02   :  { %v1648_v48 = vmul.f32 %v1647_v6, %v1636_v9  ;;  %1777 = vmatpush.msra.mxu1 %v1749_v39 }
 0xa04   :  { %v1649_v57 = vsel %vm2523_vm3, %v1648_v48, 0.0  ;;  %1778 = vmatpush.msra.mxu1 %v1748_v43 }
 0xa05   :  { %v1650_v40 = vadd.f32 %v1649_v57, %v1572_v11 }
 0xa06   :  { %1779 = vmatpush.msra.mxu1 %v1747_v44 }
 0xa07   :  { %1687 = vmatmul.f32.gmra.mxu0 %v1650_v40 }
 0xa6e   :  { %v1685_v15 = vpop.f32.mrf.mxu0 }
 0xa6f   :  { %v1691_v36 = vadd.f32 %v1685_v15, %v2574_v33 }
 0xa71   :  { %v2667_v16 = vadd.f32 %v1693_v12, %v1691_v36 }
 0xa73   :  { %v1696_v60 = vsel %vm106_vm0, %v2667_v16, 0.0 }
 0xa74   :  { %1698 = vadd.xlane.f32.xlu0 %v1696_v60 }
 0xa84   :  { %v1688_v13 = vpop.f32.mrf.mxu0 }
 0xa85   :  { %v1692_v17 = vadd.f32 %v1688_v13, %v2580_v41  ;;  %v1818_v13 = vld [vmem:[#allocation8 + $0xe0] sm:$0xff] }
 0xa86   :  { %1825 = vmatpush.msrb.mxu2 %v1818_v13  ;;  %v1908_v13 = vld [vmem:[%s2791_s9 + $0x38] sm:$0xff] }
 0xa87   :  { %v2673_v18 = vadd.f32 %v1693_v12, %v1692_v17  ;;  %v1817_v17 = vld [vmem:[#allocation8 + $0xd8] sm:$0xff] }
 0xa88   :  { %1826 = vmatpush.msrb.mxu2 %v1817_v17  ;;  %v1907_v17 = vld [vmem:[%s2791_s9 + $0x30] sm:$0xff] }
 0xa89   :  { %v1697_v10 = vsel %vm106_vm0, %v2673_v18, 0.0 }
 0xa8a   :  { %1700 = vadd.xlane.f32.xlu1 %v1697_v10 }
 0xae7   :  { %v1699_v33 = vpop.xlane.xlu0 %1698 }
 0xae8   :  { %v1702_v20 = vmul.f32 0.03125, %v1699_v33  ;;  %v1813_v33 = vld [vmem:[#allocation8 + $0xb8] sm:$0xff] }
 0xaea   :  { %v1704_v62 = vsub.f32 %v1696_v60, %v1702_v20  ;;  %v1812_v20 = vld [vmem:[#allocation8 + $0xb0] sm:$0xff] }
 0xaec   :  { %v1706_v22 = vsel %vm106_vm0, %v1704_v62, 0.0  ;;  %v1811_v62 = vld [vmem:[#allocation8 + $0xa8] sm:$0xff] }
 0xaed   :  { %v1708_v23 = vmul.f32 %v1706_v22, %v1706_v22 }
 0xaef   :  { %1710 = vadd.xlane.f32.xlu2 %v1708_v23  ;;  %v1809_v23 = vld [vmem:[#allocation8 + $0x98] sm:$0xff] }
 0xafd   :  { %v1701_v41 = vpop.xlane.xlu1 %1700 }
 0xafe   :  { %v1703_v24 = vmul.f32 0.03125, %v1701_v41  ;;  %v1808_v41 = vld [vmem:[#allocation8 + $0x90] sm:$0xff] }
 0xb00   :  { %v1705_v25 = vsub.f32 %v1697_v10, %v1703_v24  ;;  %v1816_v10 = vld [vmem:[#allocation8 + $0xd0] sm:$0xff]  ;;  %v1807_v24 = vld [vmem:[#allocation8 + $0x88] sm:$0xff] }
 0xb01   :  { %1827 = vmatpush.msrb.mxu2 %v1816_v10  ;;  %v1906_v10 = vld [vmem:[%s2791_s9 + $0x28] sm:$0xff] }
 0xb02   :  { %v2682_v26 = vsel %vm106_vm0, %v1705_v25, 0.0  ;;  %v1806_v25 = vld [vmem:[#allocation8 + $0x80] sm:$0xff] }
 0xb03   :  { %v1709_v27 = vmul.f32 %v2682_v26, %v2682_v26  ;;  %1828 = vmatpush.msrb.mxu2 %v1815_v19  ;;  %v1905_v19 = vld [vmem:[%s2791_s9 + $0x20] sm:$0xff] }
 0xb05   :  { %1712 = vadd.xlane.f32.xlu0 %v1709_v27  ;;  %1829 = vmatpush.msrb.mxu2 %v1814_v0  ;;  %v1904_v0 = vld [vmem:[%s2791_s9 + $0x18] sm:$0xff] }
 0xb07   :  { %1830 = vmatpush.msrb.mxu2 %v1813_v33  ;;  %v1903_v33 = vld [vmem:[%s2791_s9 + $0x10] sm:$0xff] }
 0xb09   :  { %1831 = vmatpush.msrb.mxu2 %v1812_v20  ;;  %v1902_v20 = vld [vmem:[%s2791_s9 + $0x8] sm:$0xff] }
 0xb0b   :  { %1832 = vmatpush.msrb.mxu2 %v1811_v62  ;;  %v1901_v62 = vld [vmem:[%s2791_s9] sm:$0xff] }
 0xb62   :  { %v1711_v46 = vpop.xlane.xlu2 %1710 }
 0xb63   :  { %v1714_v42 = vmul.f32 0.03125, %v1711_v46 }
 0xb65   :  { %v1716_v47 = vadd.f32 1e-05, %v1714_v42 }
 0xb67   :  { %2151 = vrsqrt.f32 %v1716_v47  ;;  %vm1724_vm14 = vweird.f32 %v1716_v47 }
 0xb6d   :  { %v2152_v49 = vpop.eup %2151 }
 0xb6e   :  { %v1719_v50 = vmul.f32 %v2152_v49, %v1716_v47  ;;  %vm1725_vm3 = vweird.f32 %v2152_v49 }
 0xb6f   :  { %vm1726_vm7 = vmor %vm1724_vm14, %vm1725_vm3  ;;  %vm1991_vm3 = vcmask 7168  }
 0xb70   :  { %v1720_v14 = vmul.f32 %v2152_v49, %v1719_v50 }
 0xb72   :  { %v1721_v51 = vmul.f32 0.5, %v1720_v14 }
 0xb74   :  { %v1722_v52 = vsub.f32 1.5, %v1721_v51 }
 0xb76   :  { %v1723_v54 = vmul.f32 %v2152_v49, %v1722_v52  ;;  %v1847_v52 = vperm.slane %v2604_v56, 6 }
 0xb78   :  { %v1727_v61 = vsel %vm1726_vm7, %v2152_v49, %v1723_v54  ;;  %v1713_v63 = vpop.xlane.xlu0 %1712 }
 0xb79   :  { %v1738_v2 = vmul.f32 %v1727_v61, %v1706_v22  ;;  %v1715_v3 = vmul.f32 0.03125, %v1713_v63  ;;  %v1810_v22 = vld [vmem:[#allocation8 + $0xa0] sm:$0xff] }
 0xb7a   :  { %1833 = vmatpush.msrb.mxu2 %v1810_v22 }
 0xb7b   :  { %v1717_v7 = vadd.f32 1e-05, %v1715_v3  ;;  %v1741_v8 = vmul.f32 %v1740_v55, %v1738_v2 }
 0xb7c   :  { %1834 = vmatpush.msrb.mxu2 %v1809_v23 }
 0xb7d   :  { %2153 = vrsqrt.f32 %v1717_v7  ;;  %v1744_v9 = vadd.f32 %v1743_v5, %v1741_v8  ;;  %vm1734_vm9 = vweird.f32 %v1717_v7 }
 0xb7e   :  { %1835 = vmatpush.msrb.mxu2 %v1808_v41 }
 0xb7f   :  { %1780 = vmatmul.f32.vlgmr.msra.gmra.mxu1 %v1744_v9 }
 0xb80   :  { %1836 = vmatpush.msrb.mxu2 %v1807_v24 }
 0xb82   :  { %1837 = vmatpush.msrb.mxu2 %v1806_v25 }
 0xb83   :  { %v2154_v45 = vpop.eup %2153 }
 0xb84   :  { %v1729_v6 = vmul.f32 %v2154_v45, %v1717_v7  ;;  %vm1735_vm8 = vweird.f32 %v2154_v45 }
 0xb85   :  { %vm1736_vm15 = vmor %vm1734_vm9, %vm1735_vm8 }
 0xb86   :  { %v1730_v48 = vmul.f32 %v2154_v45, %v1729_v6 }
 0xb88   :  { %v1731_v11 = vmul.f32 0.5, %v1730_v48 }
 0xb8a   :  { %v1732_v57 = vsub.f32 1.5, %v1731_v11 }
 0xb8c   :  { %v1733_v40 = vmul.f32 %v2154_v45, %v1732_v57  ;;  %v1914_v57 = vld [vmem:[%s2791_s9 + $0x68] sm:$0xff] }
 0xb8e   :  { %v1737_v12 = vsel %vm1736_vm15, %v2154_v45, %v1733_v40  ;;  %v1913_v40 = vld [vmem:[%s2791_s9 + $0x60] sm:$0xff]  ;;  %vm2026_vm15 = vcmask 0  }
 0xb8f   :  { %v1739_v15 = vmul.f32 %v1737_v12, %v2682_v26  ;;  %v1763_v26 = vperm.slane %v2604_v56, 5  ;;  %v1916_v56 = vld [vmem:[%s2791_s9 + $0x78] sm:$0xff] }
 0xb90   :  { %1918 = vmatpush.msra.mxu3 %v1916_v56  ;;  %v1912_v12 = vld [vmem:[%s2791_s9 + $0x58] sm:$0xff] }
 0xb91   :  { %v1742_v36 = vmul.f32 %v1740_v55, %v1739_v15  ;;  %v1911_v15 = vld [vmem:[%s2791_s9 + $0x50] sm:$0xff] }
 0xb93   :  { %v1745_v60 = vadd.f32 %v1743_v5, %v1742_v36  ;;  %v1910_v36 = vld [vmem:[%s2791_s9 + $0x48] sm:$0xff] }
 0xb95   :  { %1783 = vmatmul.f32.gmra.mxu1 %v1745_v60  ;;  %v1909_v60 = vld [vmem:[%s2791_s9 + $0x40] sm:$0xff] }
 0xbfc   :  { %v1781_v27 = vpop.f32.mrf.mxu1 }
 0xbfd   :  { %v1782_v29 = vadd.f32 %v1781_v27, %v1763_v26 }
 0xbff   :  { %v1787_v30 = vmul.f32 %v1782_v29, %v1782_v29 }
 0xc01   :  { %v1789_v28 = vmul.f32 %v1787_v30, %v1782_v29  ;;  %v1850_v30 = vld [vmem:[%s2792_s10] sm:$0xff] }
 0xc03   :  { %v1791_v4 = vmul.f32 0.044715, %v1789_v28 }
 0xc05   :  { %v1793_v31 = vadd.f32 %v1791_v4, %v1782_v29  ;;  %v1895_v4 = vperm.slane %v1850_v30, 0 }
 0xc07   :  { %v1795_v32 = vmul.f32 0.7978846, %v1793_v31 }
 0xc09   :  { %2155 = vtanh.f32 %v1795_v32 }
 0xc0f   :  { %v2156_v34 = vpop.eup %2155 }
 0xc10   :  { %v1799_v59 = vadd.f32 1.0, %v2156_v34 }
 0xc12   :  { %v1784_v21 = vpop.f32.mrf.mxu1  ;;  %v1801_v37 = vmul.f32 0.5, %v1799_v59 }
 0xc13   :  { %v1785_v38 = vadd.f32 %v1784_v21, %v1763_v26  ;;  %v1898_v21 = vperm.slane %v1850_v30, 1 }
 0xc14   :  { %v1803_v39 = vmul.f32 %v1801_v37, %v1782_v29 }
 0xc15   :  { %v1788_v43 = vmul.f32 %v1785_v38, %v1785_v38 }
 0xc16   :  { %1838 = vmatmul.f32.vlgmr.msrb.gmra.mxu2 %v1803_v39 }
 0xc17   :  { %v1790_v44 = vmul.f32 %v1788_v43, %v1785_v38 }
 0xc19   :  { %v1792_v46 = vmul.f32 0.044715, %v1790_v44 }
 0xc1b   :  { %v1794_v42 = vadd.f32 %v1792_v46, %v1785_v38 }
 0xc1d   :  { %v1796_v47 = vmul.f32 0.7978846, %v1794_v42 }
 0xc1f   :  { %2157 = vtanh.f32 %v1796_v47 }
 0xc25   :  { %v2158_v49 = vpop.eup %2157 }
 0xc26   :  { %v1800_v50 = vadd.f32 1.0, %v2158_v49 }
 0xc28   :  { %v1802_v14 = vmul.f32 0.5, %v1800_v50 }
 0xc2a   :  { %v1804_v51 = vmul.f32 %v1802_v14, %v1785_v38 }
 0xc2c   :  { %1841 = vmatmul.f32.gmra.mxu2 %v1804_v51 }
 0xc99   :  { %v1839_v53 = vpop.f32.mrf.mxu2 }
 0xc9a   :  { %v1845_v35 = vadd.f32 %v1839_v53, %v2667_v16  ;;  %v1915_v16 = vld [vmem:[%s2791_s9 + $0x70] sm:$0xff]  ;;  %v1917_v53 = vperm.slane %v1850_v30, 2 }
 0xc9b   :  { %1919 = vmatpush.msra.mxu3 %v1915_v16 }
 0xc9c   :  { %v1848_v54 = vadd.f32 %v1847_v52, %v1845_v35 }
 0xc9d   :  { %1920 = vmatpush.msra.mxu3 %v1914_v57 }
 0xc9e   :  { %v1851_v55 = vsel %vm106_vm0, %v1848_v54, 0.0 }
 0xc9f   :  { %1853 = vadd.xlane.f32.xlu1 %v1851_v55  ;;  %1921 = vmatpush.msra.mxu3 %v1913_v40 }
 0xca1   :  { %1922 = vmatpush.msra.mxu3 %v1912_v12 }
 0xca3   :  { %1923 = vmatpush.msra.mxu3 %v1911_v15 }
 0xca5   :  { %1924 = vmatpush.msra.mxu3 %v1910_v36 }
 0xca7   :  { %1925 = vmatpush.msra.mxu3 %v1909_v60 }
 0xca9   :  { %1926 = vmatpush.msra.mxu3 %v1908_v13 }
 0xcab   :  { %1927 = vmatpush.msra.mxu3 %v1907_v17 }
 0xcad   :  { %1928 = vmatpush.msra.mxu3 %v1906_v10 }
 0xcaf   :  { %v1842_v58 = vpop.f32.mrf.mxu2  ;;  %1929 = vmatpush.msra.mxu3 %v1905_v19  ;;  %v2313_v19 = vmov 0.0  }
 0xcb0   :  { %v1846_v61 = vadd.f32 %v1842_v58, %v2673_v18 }
 0xcb1   :  { %1930 = vmatpush.msra.mxu3 %v1904_v0 }
 0xcb2   :  { %v1849_v63 = vadd.f32 %v1847_v52, %v1846_v61 }
 0xcb3   :  { %1931 = vmatpush.msra.mxu3 %v1903_v33 }
 0xcb4   :  { %v1852_v2 = vsel %vm106_vm0, %v1849_v63, 0.0 }
 0xcb5   :  { %1855 = vadd.xlane.f32.xlu2 %v1852_v2  ;;  %1932 = vmatpush.msra.mxu3 %v1902_v20 }
 0xcb7   :  { %1933 = vmatpush.msra.mxu3 %v1901_v62 }
 0xd12   :  { %v1854_v3 = vpop.xlane.xlu1 %1853 }
 0xd13   :  { %v1857_v5 = vmul.f32 0.03125, %v1854_v3 }
 0xd15   :  { %v1859_v7 = vsub.f32 %v1851_v55, %v1857_v5 }
 0xd17   :  { %v1861_v18 = vsel %vm106_vm0, %v1859_v7, 0.0 }
 0xd18   :  { %v1863_v8 = vmul.f32 %v1861_v18, %v1861_v18 }
 0xd1a   :  { %1865 = vadd.xlane.f32.xlu0 %v1863_v8 }
 0xd28   :  { %v1856_v9 = vpop.xlane.xlu2 %1855 }
 0xd29   :  { %v1858_v45 = vmul.f32 0.03125, %v1856_v9 }
 0xd2b   :  { %v1860_v6 = vsub.f32 %v1852_v2, %v1858_v45  ;;  %v1965_v2 = vld [vmem:[%s2785_s3] sm:$0xff]  ;;  %v1966_v45 = vld [vmem:[%s2785_s3 + $0x8] sm:$0xff]  ;;  %s2314_s3 = smov [#allocation10]  }
 0xd2c   :  { %vm1983_vm12 = vcmp.ne.s32.totalorder %v1965_v2, 0  ;;  %vm1984_vm13 = vcmp.ne.s32.totalorder %v1966_v45, 0  ;;  %s2035_s30 = sshll.u32 %s2314_s3, 4  ;;  %s2036_s30 = int_to_ptr.vmem [resolvable:$true] %s2035_s30 }
 0xd2d   :  { %v2707_v48 = vsel %vm106_vm0, %v1860_v6, 0.0  ;;  %v2062_v0 = vsel %vm1983_vm12, 1.0, %v2313_v19  ;;  %v2063_v20 = vsel %vm1984_vm13, 1.0, %v2313_v19 }
 0xd2e   :  { %v1864_v11 = vmul.f32 %v2707_v48, %v2707_v48  ;;  %v2001_v33 = vsel %vm1991_vm3, %v2062_v0, 0.0  ;;  %v2002_v62 = vsel %vm1991_vm3, %v2063_v20, 0.0 }
 0xd30   :  { %1867 = vadd.xlane.f32.xlu1 %v1864_v11 }
 0xd8d   :  { %v1866_v22 = vpop.xlane.xlu0 %1865 }
 0xd8e   :  { %v1869_v23 = vmul.f32 0.03125, %v1866_v22  ;;  %v2003_v22 = vadd.f32 %v2002_v62, %v2001_v33 }
 0xd90   :  { %v1871_v41 = vadd.f32 1e-05, %v1869_v23  ;;  %v2004_v23 = vrot.slane %v2003_v22, 4 }
 0xd92   :  { %2159 = vrsqrt.f32 %v1871_v41  ;;  %vm1879_vm1 = vweird.f32 %v1871_v41 }
 0xd98   :  { %v2160_v24 = vpop.eup %2159 }
 0xd99   :  { %v1874_v25 = vmul.f32 %v2160_v24, %v1871_v41  ;;  %vm1880_vm0 = vweird.f32 %v2160_v24  ;;  %v2005_v41 = vadd.f32 %v2004_v23, %v2003_v22 }
 0xd9a   :  { %vm1881_vm4 = vmor %vm1879_vm1, %vm1880_vm0 }
 0xd9b   :  { %v1875_v26 = vmul.f32 %v2160_v24, %v1874_v25 }
 0xd9d   :  { %v1876_v27 = vmul.f32 0.5, %v1875_v26 }
 0xd9f   :  { %v1877_v29 = vsub.f32 1.5, %v1876_v27 }
 0xda1   :  { %v1878_v28 = vmul.f32 %v2160_v24, %v1877_v29 }
 0xda3   :  { %v1882_v31 = vsel %vm1881_vm4, %v2160_v24, %v1878_v28  ;;  %v1868_v32 = vpop.xlane.xlu1 %1867  ;;  %v2006_v24 = vrot.slane %v2005_v41, 2 }
 0xda4   :  { %v1893_v34 = vmul.f32 %v1882_v31, %v1861_v18  ;;  %v1870_v59 = vmul.f32 0.03125, %v1868_v32 }
 0xda5   :  { %v2007_v25 = vadd.f32 %v2006_v24, %v2005_v41 }
 0xda6   :  { %v1872_v37 = vadd.f32 1e-05, %v1870_v59  ;;  %v1896_v38 = vmul.f32 %v1895_v4, %v1893_v34 }
 0xda7   :  { %v2008_v26 = vrot.slane %v2007_v25, 1 }
 0xda8   :  { %2161 = vrsqrt.f32 %v1872_v37  ;;  %v1899_v39 = vadd.f32 %v1898_v21, %v1896_v38  ;;  %vm1889_vm6 = vweird.f32 %v1872_v37 }
 0xdaa   :  { %1934 = vmatmul.f32.vlgmr.msra.gmra.mxu3 %v1899_v39 }
 0xdae   :  { %v2162_v43 = vpop.eup %2161 }
 0xdaf   :  { %v1884_v44 = vmul.f32 %v2162_v43, %v1872_v37  ;;  %vm1890_vm5 = vweird.f32 %v2162_v43 }
 0xdb0   :  { %vm1891_vm10 = vmor %vm1889_vm6, %vm1890_vm5 }
 0xdb1   :  { %v1885_v46 = vmul.f32 %v2162_v43, %v1884_v44 }
 0xdb3   :  { %v1886_v42 = vmul.f32 0.5, %v1885_v46 }
 0xdb5   :  { %v1887_v47 = vsub.f32 1.5, %v1886_v42 }
 0xdb7   :  { %v1888_v49 = vmul.f32 %v2162_v43, %v1887_v47 }
 0xdb9   :  { %v1892_v50 = vsel %vm1891_vm10, %v2162_v43, %v1888_v49 }
 0xdba   :  { %v1894_v14 = vmul.f32 %v1892_v50, %v2707_v48 }
 0xdbc   :  { %v1897_v51 = vmul.f32 %v1895_v4, %v1894_v14 }
 0xdbe   :  { %v1900_v52 = vadd.f32 %v1898_v21, %v1897_v51 }
 0xdc0   :  { %1937 = vmatmul.f32.gmra.mxu3 %v1900_v52 }
 0xe2d   :  { %v1935_v35 = vpop.f32.mrf.mxu3 }
 0xe2e   :  { %v1936_v54 = vadd.f32 %v1935_v35, %v1917_v53 }
 0xe30   :  { %1941 = vst [vmem:[%s2793_s11] sm:$0xff] %v1936_v54  ;;  %v1943_v55 = vsel %vm547_vm2, %v1936_v54, -1e+30 }
 0xe31   :  { %1945 = vmax.xlane.f32.xlu2 %v1943_v55 }
 0xe43   :  { %v1938_v58 = vpop.f32.mrf.mxu3 }
 0xe44   :  { %v1939_v61 = vadd.f32 %v1938_v58, %v1917_v53 }
 0xe46   :  { %1942 = vst [vmem:[%s2793_s11 + $0x8] sm:$0xff] %v1939_v61  ;;  %v1944_v63 = vsel %vm547_vm2, %v1939_v61, -1e+30 }
 0xe47   :  { %1947 = vmax.xlane.f32.xlu0 %v1944_v63 }
 0xe5b   :  { %1968 = vperm.xlu0 %2082, %v1965_v2  }
 0xea4   :  { %v1946_v56 = vpop.xlane.xlu2 %1945 }
 0xea5   :  { %v1949_v16 = vsub.f32 %v1943_v55, %v1946_v56 }
 0xea7   :  { %v1951_v3 = vmul.f32 1.442695, %v1949_v16 }
 0xea9   :  { %2163 = vpow2.f32 %v1951_v3 }
 0xeaf   :  { %v2164_v5 = vpop.eup %2163 }
 0xeb0   :  { %1955 = vadd.xlane.f32.xlu1 %v2164_v5 }
 0xeba   :  { %v1948_v7 = vpop.xlane.xlu0 %1947 }
 0xebb   :  { %v1950_v18 = vsub.f32 %v1944_v63, %v1948_v7 }
 0xebd   :  { %v1953_v8 = vmul.f32 1.442695, %v1950_v18 }
 0xebf   :  { %2165 = vpow2.f32 %v1953_v8 }
 0xec5   :  { %v2166_v9 = vpop.eup %2165 }
 0xec6   :  { %1957 = vadd.xlane.f32.xlu2 %v2166_v9 }
 0xec9   :  { %1971 = vperm.xlu1 %2084, %v1966_v45  }
 0xecd   :  { %v1969_v11 = vpop.permute.xlu0 %1968 }
 0xece   :  { %vm1973_vm2 = vcmp.eq.s32.totalorder %v2393_v1, %v1969_v11 }
 0xf23   :  { %v1956_v6 = vpop.xlane.xlu1 %1955 }
 0xf24   :  { %2167 = vlog2.f32 %v1956_v6 }
 0xf2a   :  { %v2168_v48 = vpop.eup %2167 }
 0xf2b   :  { %v1960_v57 = vmul.f32 0.6931472, %v2168_v48 }
 0xf2d   :  { %v1963_v40 = vsub.f32 %v1949_v16, %v1960_v57 }
 0xf2f   :  { %v1975_v12 = vsel %vm1973_vm2, %v1963_v40, 0.0 }
 0xf30   :  { %1977 = vadd.xlane.f32.xlu2 %v1975_v12 }
 0xf39   :  { %v1958_v15 = vpop.xlane.xlu2 %1957 }
 0xf3a   :  { %2169 = vlog2.f32 %v1958_v15 }
 0xf3b   :  { %v1972_v36 = vpop.permute.xlu1 %1971 }
 0xf3c   :  { %vm1974_vm11 = vcmp.eq.s32.totalorder %v2393_v1, %v1972_v36  ;;  %v2009_v1 = vadd.f32 %v2008_v26, %v2007_v25 }
 0xf3e   :  { %v2010_v27 = vmax.f32 %v2009_v1, 1.0 }
 0xf40   :  { %v2170_v60 = vpop.eup %2169  ;;  %2171 = vrcp.f32 %v2010_v27  ;;  %vm2016_vm14 = vweird.f32 %v2010_v27  ;;  %v2022_v46 = vand.u32 2147483648, %v2010_v27  ;;  %v2020_v49 = vand.u32 2147483647, %v2010_v27 }
 0xf41   :  { %v1962_v13 = vmul.f32 0.6931472, %v2170_v60 }
 0xf42   :  { %v2023_v14 = vor.u32 1.1754944e-38, %v2022_v46  ;;  %vm2021_vm9 = vcmp.eq.f32.partialorder %v2020_v49, 8.507059e+37 }
 0xf43   :  { %v1964_v17 = vsub.f32 %v1950_v18, %v1962_v13 }
 0xf45   :  { %v1976_v10 = vsel %vm1974_vm11, %v1964_v17, 0.0 }
 0xf46   :  { %1979 = vadd.xlane.f32.xlu2 %v1976_v10  ;;  %v2172_v30 = vpop.eup %2171 }
 0xf47   :  { %v2012_v4 = vmul.f32 %v2172_v30, %v2010_v27  ;;  %vm2017_vm7 = vweird.f32 %v2172_v30 }
 0xf48   :  { %vm2018_vm8 = vmor %vm2016_vm14, %vm2017_vm7 }
 0xf49   :  { %v2013_v59 = vsub.f32 1.0, %v2012_v4 }
 0xf4b   :  { %v2014_v43 = vmul.f32 %v2172_v30, %v2013_v59 }
 0xf4d   :  { %v2015_v47 = vadd.f32 %v2172_v30, %v2014_v43 }
 0xf4f   :  { %v2019_v52 = vsel %vm2018_vm8, %v2172_v30, %v2015_v47 }
 0xf50   :  { %v2024_v35 = vsel %vm2021_vm9, %v2023_v14, %v2019_v52 }
 0xfa3   :  { %v1978_v29 = vpop.xlane.xlu2 %1977 }
 0xfa4   :  { %v1981_v28 = vsub.f32 0.0, %v1978_v29 }
 0xfa6   :  { %v1989_v32 = vmul.f32 %v2062_v0, %v1981_v28 }
 0xfa8   :  { %v1992_v37 = vsel %vm1991_vm3, %v1989_v32, 0.0 }
 0xfb9   :  { %v1980_v31 = vpop.xlane.xlu2 %1979 }
 0xfba   :  { %v1982_v34 = vsub.f32 0.0, %v1980_v31 }
 0xfbc   :  { %v1990_v21 = vmul.f32 %v2063_v20, %v1982_v34 }
 0xfbe   :  { %v1993_v38 = vsel %vm1991_vm3, %v1990_v21, 0.0 }
 0xfbf   :  { %v1994_v39 = vadd.f32 %v1993_v38, %v1992_v37 }
 0xfc1   :  { %v1995_v44 = vrot.slane %v1994_v39, 4 }
 0xfc3   :  { %v1996_v42 = vadd.f32 %v1995_v44, %v1994_v39 }
 0xfc5   :  { %v1997_v50 = vrot.slane %v1996_v42, 2 }
 0xfc7   :  { %v1998_v51 = vadd.f32 %v1997_v50, %v1996_v42 }
 0xfc9   :  { %v1999_v53 = vrot.slane %v1998_v51, 1 }
 0xfcb   :  { %v2000_v54 = vadd.f32 %v1999_v53, %v1998_v51 }
 0xfcd   :  { %v2025_v55 = vmul.f32 %v2024_v35, %v2000_v54 }
 0xfcf   :  { %2027 = vst.msk [vmem:[#allocation10] sm:$0x1] %vm2026_vm15, %v2025_v55 }
 0xfd0   :  { %2040 = dma.vmem_to_hbm [thread:$0]  %s2036_s30, 16, %s2038_s1, [#allocation4]  }
 0xfd1   :  { %2301 = dma.done.wait [#allocation4], 16  }
 0xfd2   :  { %2302 = vsyncadd [#allocation4], 4294967280 }
 0xfd3   :  { %2047 = vsyncpa [#allocation3], 1 }
 0xfd4   :  { %2048 = vsyncpa [#allocation6], 1 }
 0xfd5   :  { %2049 = vsyncpa [#allocation9], 1 }
 0xfd6   :  { %2050 = vsyncpa [#allocation4], 1 }

</bundles_post_ra>
